<compile_context>
chip_gen: v6e
topology: v6e:2x2x1
jax: 0.10.0
libtpu: 0.0.40
codegen_flags: <defaults>
</compile_context>

<pallas_src>
import math
from collections import namedtuple
from functools import partial

import jax
import jax.numpy as jnp
from jax.experimental import pallas as pl
from jax.experimental.pallas import tpu as pltpu

PRELU_ALPHA = 0.25  # nn.PReLU() default init (single shared parameter)

Cnf = namedtuple("Cnf", ["input_c", "kernel", "expanded_c", "out_c", "use_se", "stride"])

# Small synthetic inverted-residual setting (>=5 blocks so CrossStageBlock fires at
# i>=4; block 4 keeps out_c == prev_out so the 2*in_ch fuse conv is valid, exactly
# as the reference module requires).
SETTINGS = [
    Cnf(8, 3, 16, 8, False, 1),
    Cnf(8, 3, 24, 16, False, 2),
    Cnf(16, 3, 32, 16, True, 1),
    Cnf(16, 5, 48, 24, True, 2),
    Cnf(24, 3, 48, 24, True, 1),
]
LAST_CHANNEL = 64
NUM_CLASSES = 10
PACK_WIDTH = 6 * SETTINGS[-1].out_c  # 144: widest packed row (conv_last output)


def _make_divisible(ch, divisor=8, min_ch=None):
    if min_ch is None:
        min_ch = divisor
    new_ch = max(min_ch, int(ch + divisor / 2) // divisor * divisor)
    if new_ch < 0.9 * ch:
        new_ch += divisor
    return new_ch


def _prelu(y, alpha):
    return jnp.where(y >= 0.0, y, alpha * y)


# --------------------------------------------------------------------------
# Weight packing: many tiny tensors -> one slab, static 8-row-aligned offsets
# --------------------------------------------------------------------------

class _Packer:
    """Packs small 2-D tensors row-wise into one (rows, PACK_WIDTH) slab so the
    kernel needs a single DMA per slab; offsets are 8-row aligned so every
    in-kernel slice is sublane-aligned."""

    def __init__(self, width):
        self.width = width
        self.chunks = []
        self.off = 0
        self.layout = {}

    def add(self, name, arr):
        arr = jnp.asarray(arr, jnp.float32)
        r, c = arr.shape
        assert c <= self.width
        if self.off % 8:
            gap = 8 - self.off % 8
            self.chunks.append(jnp.zeros((gap, self.width), jnp.float32))
            self.off += gap
        self.chunks.append(jnp.pad(arr, ((0, 0), (0, self.width - c))))
        self.layout[name] = (self.off, r, c)
        self.off += r

    def finalize(self, dtype):
        return jnp.concatenate(self.chunks, axis=0).astype(dtype)


# --------------------------------------------------------------------------
# The single fused kernel: stem -> blocks (+SE/residual/cross) -> head
# --------------------------------------------------------------------------

def _net_kernel(cols_ref, wp_ref, fp_ref, out_ref, *xp_refs, L, H0, W0, alpha):
    Lw, Lf = L["w"], L["f"]

    def wmat(name):                       # bf16 matmul weight (static slice)
        o, r, c = Lw[name]
        return wp_ref[o:o + r, :c]

    def fvec(name):                       # f32 taps / shifts / biases
        o, r, c = Lf[name]
        return fp_ref[o:o + r, :c]

    def mm(a, name):                      # bf16 x bf16 MXU matmul, f32 accumulate
        return jnp.dot(a.astype(jnp.bfloat16), wmat(name),
                       preferred_element_type=jnp.float32)

    def run_block(x, h, w, cnf, idx, xp_ref):
        Cin, Ce, Co = cnf.input_c, cnf.expanded_c, cnf.out_c
        k, s = cnf.kernel, cnf.stride
        pad = (k - 1) // 2
        ho = (h + 2 * pad - k) // s + 1
        wo = (w + 2 * pad - k) // s + 1
        p = f"b{idx}_"

        # 1) expand 1x1 conv + BN(folded) + PReLU
        if Ce != Cin:
            e = _prelu(mm(x, p + "exp_w") + fvec(p + "exp_shift"), alpha)
        else:
            e = x

        # 2) zero only the pad border of the persistent VMEM scratch (interior is
        #    fully overwritten below; per-step so core-parallel batch split stays
        #    correct), then write the interior.
        Hp, Wp = h + 2 * pad, w + 2 * pad
        xp_ref[0:pad, :, :] = jnp.zeros((pad, Wp, Ce), jnp.float32)
        xp_ref[pad + h:Hp, :, :] = jnp.zeros((pad, Wp, Ce), jnp.float32)
        xp_ref[pad:pad + h, 0:pad, :] = jnp.zeros((h, pad, Ce), jnp.float32)
        xp_ref[pad:pad + h, pad + w:Wp, :] = jnp.zeros((h, pad, Ce), jnp.float32)
        if w % 8 == 0:
            # single box store (sublane-aligned width -> layout-preserving reshape)
            xp_ref[pad:pad + h, pad:pad + w, :] = e.reshape(h, w, Ce)
        else:
            for r in range(h):            # tiny blocks: h <= 4 rows
                xp_ref[pad + r, pad:pad + w, :] = e[r * w:(r + 1) * w, :]

        # 3) depthwise KxK, computed directly at the (possibly strided) output
        #    positions; f32 on the VPU (v5e-friendly), BN scale folded into taps.
        dww = fvec(p + "dw_w")                               # (k*k, Ce)
        acc = jnp.zeros((ho, wo, Ce), jnp.float32)
        for kh in range(k):
            for kw in range(k):
                tap = dww[kh * k + kw:kh * k + kw + 1, :].reshape(1, 1, Ce)
                if s == 1:
                    patch = xp_ref[kh:kh + ho, kw:kw + wo, :]
                else:                     # strided read at output positions only
                    patch = xp_ref[pl.ds(kh, ho, s), pl.ds(kw, wo, s), :]
                acc = acc + patch * tap
        y = _prelu(acc.reshape(ho * wo, Ce) + fvec(p + "dw_shift"), alpha)

        # 4) squeeze-excitation, fully fused (pooled vector never leaves vregs)
        if cnf.use_se:
            pooled = jnp.mean(y, axis=0, keepdims=True)       # (1, Ce)
            t = jnp.maximum(mm(pooled, p + "se_w1") + fvec(p + "se_b1"), 0.0)
            t = mm(t, p + "se_w2") + fvec(p + "se_b2")
            t = jnp.clip(t / 6.0 + 0.5, 0.0, 1.0)             # hardsigmoid
            y = y * t

        # 5) project 1x1 conv + BN(folded), Identity activation
        out = mm(y, p + "proj_w") + fvec(p + "proj_shift")

        # 6) residual connect
        if s == 1 and Cin == Co:
            out = out + x
        return out, ho, wo

    # ---- stem: one (Ho*Wo, 27) x (27, C0) matmul (im2col built in the wrapper) --
    x = _prelu(mm(cols_ref[0], "stem_w") + fvec("stem_shift"), alpha)
    h, w = H0, W0

    # ---- inverted-residual blocks (+ cross-stage fuse for i >= 4) ---------------
    for i, cnf in enumerate(SETTINGS):
        shortcut = x
        x, h, w = run_block(x, h, w, cnf, i, xp_refs[i])
        if i >= 4:
            # cross-stage fuse: 1x1 conv on concat([block_out, shortcut]) == split
            # matmul (wa acts on block output, wb on the shortcut), BN + PReLU.
            x = _prelu(mm(x, f"b{i}_cross_wa") + mm(shortcut, f"b{i}_cross_wb")
                       + fvec(f"b{i}_cross_shift"), alpha)

    # TODO(synk): GroupMixAttention is referenced by MobileNetV3 but its definition
    # is not included in the provided source; treated as identity here.

    # ---- head: conv_last + PReLU -> global avg pool -> classifier ---------------
    y = _prelu(mm(x, "last_w") + fvec("last_shift"), alpha)
    pooled = jnp.mean(y, axis=0, keepdims=True)               # (1, 6*C)
    hcls = _prelu(mm(pooled, "cls_w1") + fvec("cls_b1"), alpha)   # Dropout = id
    out_ref[0] = mm(hcls, "cls_w2") + fvec("cls_b2")          # (1, num_classes)


# --------------------------------------------------------------------------
# Wrapper
# --------------------------------------------------------------------------

def _stem_im2col(x_nhwc, k, stride, pad):
    """Pure layout (zero-FLOP) im2col for the stem, done in the XLA wrapper so the
    stem is a single K=k*k*Cin matmul at output resolution inside the kernel."""
    N, H, W, C = x_nhwc.shape
    xp = jnp.pad(x_nhwc, ((0, 0), (pad, pad), (pad, pad), (0, 0)))
    Ho = (H + 2 * pad - k) // stride + 1
    Wo = (W + 2 * pad - k) // stride + 1
    taps = []
    for kh in range(k):
        for kw in range(k):
            taps.append(xp[:, kh:kh + stride * (Ho - 1) + 1:stride,
                            kw:kw + stride * (Wo - 1) + 1:stride, :])
    cols = jnp.concatenate(taps, axis=-1)                     # (N, Ho, Wo, k*k*C)
    return cols.reshape(N, Ho * Wo, k * k * C), Ho, Wo


def mobilenetv3_forward(params, x_nchw, *, layout):
    N = x_nchw.shape[0]
    x = jnp.transpose(x_nchw, (0, 2, 3, 1)).astype(jnp.float32)   # NCHW -> NHWC
    cols, H0, W0 = _stem_im2col(x, k=3, stride=2, pad=1)
    HW0, KKC = cols.shape[1], cols.shape[2]

    # Per-block zero-padded VMEM scratch for the depthwise convs (persist across
    # grid steps; only the borders semantically need the zeros).
    scratch_shapes = []
    h, w = H0, W0
    for cnf in SETTINGS:
        pad = (cnf.kernel - 1) // 2
        scratch_shapes.append(
            pltpu.VMEM((h + 2 * pad, w + 2 * pad, cnf.expanded_c), jnp.float32))
        h = (h + 2 * pad - cnf.kernel) // cnf.stride + 1
        w = (w + 2 * pad - cnf.kernel) // cnf.stride + 1

    out = pl.pallas_call(
        partial(_net_kernel, L=layout, H0=H0, W0=W0, alpha=PRELU_ALPHA),
        out_shape=jax.ShapeDtypeStruct((N, 1, NUM_CLASSES), jnp.float32),
        grid=(N,),
        in_specs=[
            pl.BlockSpec((1, HW0, KKC), lambda n: (n, 0, 0)),
            pl.BlockSpec(params["wpack"].shape, lambda n: (0, 0)),
            pl.BlockSpec(params["fpack"].shape, lambda n: (0, 0)),
        ],
        out_specs=pl.BlockSpec((1, 1, NUM_CLASSES), lambda n: (n, 0, 0)),
        scratch_shapes=scratch_shapes,
        compiler_params=pltpu.CompilerParams(dimension_semantics=("parallel",)),
    )(cols, params["wpack"], params["fpack"])
    return out.reshape(N, NUM_CLASSES)


# --------------------------------------------------------------------------
# Parameters: deterministic synthetic init, BN scale pre-folded, packed slabs.
# --------------------------------------------------------------------------

def init_params(key):
    keys = iter(jax.random.split(key, 64))

    def nrm(shape, scale=0.1):
        return jax.random.normal(next(keys), shape, jnp.float32) * scale

    # gamma=1, beta=0, running_mean=0, running_var=1 -> scale only, shift 0
    s3 = 1.0 / math.sqrt(1.0 + 1e-3)   # norm_layer inside MobileNetV3 (eps=0.001)
    s5 = 1.0 / math.sqrt(1.0 + 1e-5)   # plain nn.BatchNorm2d inside CrossStageBlock

    wpk = _Packer(PACK_WIDTH)          # bf16 matmul weights
    fpk = _Packer(PACK_WIDTH)          # f32 depthwise taps / shifts / biases

    c0 = SETTINGS[0].input_c
    stem = nrm((3, 3, 3, c0)) * s3                      # (kh, kw, cin, cout)
    wpk.add("stem_w", stem.reshape(9 * 3, c0))          # rows ordered (kh, kw, cin)
    fpk.add("stem_shift", jnp.zeros((1, c0), jnp.float32))

    prev_out = c0
    for i, cnf in enumerate(SETTINGS):
        p = f"b{i}_"
        if cnf.expanded_c != cnf.input_c:
            wpk.add(p + "exp_w", nrm((cnf.input_c, cnf.expanded_c)) * s3)
            fpk.add(p + "exp_shift", jnp.zeros((1, cnf.expanded_c), jnp.float32))
        fpk.add(p + "dw_w", nrm((cnf.kernel * cnf.kernel, cnf.expanded_c)) * s3)
        fpk.add(p + "dw_shift", jnp.zeros((1, cnf.expanded_c), jnp.float32))
        if cnf.use_se:
            sq = _make_divisible(cnf.expanded_c // 4, 8)
            wpk.add(p + "se_w1", nrm((cnf.expanded_c, sq)))
            fpk.add(p + "se_b1", nrm((1, sq)))
            wpk.add(p + "se_w2", nrm((sq, cnf.expanded_c)))
            fpk.add(p + "se_b2", nrm((1, cnf.expanded_c)))
        wpk.add(p + "proj_w", nrm((cnf.expanded_c, cnf.out_c)) * s3)
        fpk.add(p + "proj_shift", jnp.zeros((1, cnf.out_c), jnp.float32))
        if i >= 4:
            assert cnf.stride == 1 and cnf.out_c == prev_out, \
                "CrossStageBlock requires out_c == prev_out (concat -> 1x1 conv)"
            cw = nrm((2 * prev_out, cnf.out_c)) * s5
            wpk.add(p + "cross_wa", cw[:cnf.out_c])       # acts on block output
            wpk.add(p + "cross_wb", cw[cnf.out_c:])       # acts on shortcut
            fpk.add(p + "cross_shift", jnp.zeros((1, cnf.out_c), jnp.float32))
        prev_out = cnf.out_c

    last_c = 6 * prev_out
    wpk.add("last_w", nrm((prev_out, last_c)) * s3)
    fpk.add("last_shift", jnp.zeros((1, last_c), jnp.float32))
    wpk.add("cls_w1", nrm((last_c, LAST_CHANNEL)))
    fpk.add("cls_b1", nrm((1, LAST_CHANNEL)))
    wpk.add("cls_w2", nrm((LAST_CHANNEL, NUM_CLASSES)))
    fpk.add("cls_b2", nrm((1, NUM_CLASSES)))

    params = {"wpack": wpk.finalize(jnp.bfloat16), "fpack": fpk.finalize(jnp.float32)}
    layout = {"w": wpk.layout, "f": fpk.layout}           # static Python ints
    return params, layout


if __name__ == "__main__":
    key = jax.random.PRNGKey(0)
    pkey, xkey = jax.random.split(key)
    params, layout = init_params(pkey)
    x = jax.random.normal(xkey, (2, 3, 16, 16), jnp.float32)   # NCHW, like PyTorch
    fwd = jax.jit(partial(mobilenetv3_forward, layout=layout))
    out = jax.block_until_ready(fwd(params, x))
    assert out.shape == (2, NUM_CLASSES), out.shape
    assert bool(jnp.all(jnp.isfinite(out)))
    print("KERNEL_OK")
</pallas_src>

<mosaic_0001>
module attributes {stable_mosaic.version = 11 : i64} {
  func.func @_net_kernel(%arg0: i32, %arg1: memref<1x64x27xf32, #tpu.memory_space<vmem>>, %arg2: memref<720x144xbf16, #tpu.memory_space<vmem>>, %arg3: memref<297x144xf32, #tpu.memory_space<vmem>>, %arg4: memref<1x1x10xf32, #tpu.memory_space<vmem>>, %arg5: memref<10x10x16xf32, #tpu.memory_space<vmem>>, %arg6: memref<10x10x24xf32, #tpu.memory_space<vmem>>, %arg7: memref<6x6x32xf32, #tpu.memory_space<vmem>>, %arg8: memref<8x8x48xf32, #tpu.memory_space<vmem>>, %arg9: memref<4x4x48xf32, #tpu.memory_space<vmem>>) attributes {dimension_semantics = [#tpu.dimension_semantics<parallel>], iteration_bounds = array<i64: 2>, scalar_prefetch = 0 : i64, scratch_operands = 5 : i64, tpu.core_type = #tpu.core_type<tc>, window_params = [{transform_indices = @transform_0, window_bounds = array<i64: 1, 64, 27>}, {pipeline_mode = #tpu.pipeline_mode<synchronous>, transform_indices = @transform_1, window_bounds = array<i64: 720, 144>}, {pipeline_mode = #tpu.pipeline_mode<synchronous>, transform_indices = @transform_2, window_bounds = array<i64: 297, 144>}, {transform_indices = @transform_3, window_bounds = array<i64: 1, 1, 10>}]} {
    %c0 = arith.constant 0 : index
    %c0_0 = arith.constant 0 : index
    %c0_1 = arith.constant 0 : index
    %0 = vector.load %arg1[%c0, %c0_0, %c0_1] : memref<1x64x27xf32, #tpu.memory_space<vmem>>, vector<1x64x27xf32>
    %1 = vector.shape_cast %0 : vector<1x64x27xf32> to vector<64x27xf32>
    %2 = arith.truncf %1 : vector<64x27xf32> to vector<64x27xbf16>
    %c0_2 = arith.constant 0 : index
    %c0_3 = arith.constant 0 : index
    %3 = vector.load %arg2[%c0_2, %c0_3] : memref<720x144xbf16, #tpu.memory_space<vmem>>, vector<27x8xbf16>
    %cst = arith.constant dense<0.000000e+00> : vector<64x8xf32>
    %4 = tpu.matmul %2, %3, %cst {dimension_numbers = #tpu.dot_dimension_numbers<[1], [0], [0], [1], [0, 0, 1, 1], [], []>} : vector<64x27xbf16>, vector<27x8xbf16>, vector<64x8xf32> -> vector<64x8xf32>
    %c0_4 = arith.constant 0 : index
    %c0_5 = arith.constant 0 : index
    %5 = vector.load %arg3[%c0_4, %c0_5] : memref<297x144xf32, #tpu.memory_space<vmem>>, vector<1x8xf32>
    %6 = vector.broadcast %5 : vector<1x8xf32> to vector<64x8xf32>
    %7 = arith.addf %4, %6 : vector<64x8xf32>
    %cst_6 = arith.constant 0.000000e+00 : f32
    %8 = vector.broadcast %cst_6 : f32 to vector<64x8xf32>
    %9 = arith.cmpf oge, %7, %8 : vector<64x8xf32>
    %cst_7 = arith.constant 2.500000e-01 : f32
    %10 = vector.broadcast %cst_7 : f32 to vector<64x8xf32>
    %11 = arith.mulf %10, %7 : vector<64x8xf32>
    %12 = arith.select %9, %7, %11 : vector<64x8xi1>, vector<64x8xf32>
    %13 = arith.truncf %12 : vector<64x8xf32> to vector<64x8xbf16>
    %c32 = arith.constant 32 : index
    %c0_8 = arith.constant 0 : index
    %14 = vector.load %arg2[%c32, %c0_8] : memref<720x144xbf16, #tpu.memory_space<vmem>>, vector<8x16xbf16>
    %cst_9 = arith.constant dense<0.000000e+00> : vector<64x16xf32>
    %15 = tpu.matmul %13, %14, %cst_9 {dimension_numbers = #tpu.dot_dimension_numbers<[1], [0], [0], [1], [0, 0, 1, 1], [], []>} : vector<64x8xbf16>, vector<8x16xbf16>, vector<64x16xf32> -> vector<64x16xf32>
    %c8 = arith.constant 8 : index
    %c0_10 = arith.constant 0 : index
    %16 = vector.load %arg3[%c8, %c0_10] : memref<297x144xf32, #tpu.memory_space<vmem>>, vector<1x16xf32>
    %17 = vector.broadcast %16 : vector<1x16xf32> to vector<64x16xf32>
    %18 = arith.addf %15, %17 : vector<64x16xf32>
    %cst_11 = arith.constant 0.000000e+00 : f32
    %19 = vector.broadcast %cst_11 : f32 to vector<64x16xf32>
    %20 = arith.cmpf oge, %18, %19 : vector<64x16xf32>
    %cst_12 = arith.constant 2.500000e-01 : f32
    %21 = vector.broadcast %cst_12 : f32 to vector<64x16xf32>
    %22 = arith.mulf %21, %18 : vector<64x16xf32>
    %23 = arith.select %20, %18, %22 : vector<64x16xi1>, vector<64x16xf32>
    %cst_13 = arith.constant 0.000000e+00 : f32
    %24 = vector.broadcast %cst_13 : f32 to vector<1x10x16xf32>
    %c0_14 = arith.constant 0 : index
    %c0_15 = arith.constant 0 : index
    %c0_16 = arith.constant 0 : index
    %25 = vector.load %arg5[%c0_14, %c0_15, %c0_16] : memref<10x10x16xf32, #tpu.memory_space<vmem>>, vector<1x10x16xf32>
    tpu.vector_store %arg5[%c0_14, %c0_15, %c0_16], %24 {strides = array<i32>} : memref<10x10x16xf32, #tpu.memory_space<vmem>>, vector<1x10x16xf32>,
    %cst_17 = arith.constant 0.000000e+00 : f32
    %26 = vector.broadcast %cst_17 : f32 to vector<1x10x16xf32>
    %c9 = arith.constant 9 : index
    %c0_18 = arith.constant 0 : index
    %c0_19 = arith.constant 0 : index
    %27 = vector.load %arg5[%c9, %c0_18, %c0_19] : memref<10x10x16xf32, #tpu.memory_space<vmem>>, vector<1x10x16xf32>
    tpu.vector_store %arg5[%c9, %c0_18, %c0_19], %26 {strides = array<i32>} : memref<10x10x16xf32, #tpu.memory_space<vmem>>, vector<1x10x16xf32>,
    %cst_20 = arith.constant 0.000000e+00 : f32
    %28 = vector.broadcast %cst_20 : f32 to vector<8x1x16xf32>
    %c1 = arith.constant 1 : index
    %c0_21 = arith.constant 0 : index
    %c0_22 = arith.constant 0 : index
    %29 = vector.load %arg5[%c1, %c0_21, %c0_22] : memref<10x10x16xf32, #tpu.memory_space<vmem>>, vector<8x1x16xf32>
    tpu.vector_store %arg5[%c1, %c0_21, %c0_22], %28 {strides = array<i32>} : memref<10x10x16xf32, #tpu.memory_space<vmem>>, vector<8x1x16xf32>,
    %cst_23 = arith.constant 0.000000e+00 : f32
    %30 = vector.broadcast %cst_23 : f32 to vector<8x1x16xf32>
    %c1_24 = arith.constant 1 : index
    %c9_25 = arith.constant 9 : index
    %c0_26 = arith.constant 0 : index
    %31 = vector.load %arg5[%c1_24, %c9_25, %c0_26] : memref<10x10x16xf32, #tpu.memory_space<vmem>>, vector<8x1x16xf32>
    tpu.vector_store %arg5[%c1_24, %c9_25, %c0_26], %30 {strides = array<i32>} : memref<10x10x16xf32, #tpu.memory_space<vmem>>, vector<8x1x16xf32>,
    %32 = vector.shape_cast %23 : vector<64x16xf32> to vector<8x8x16xf32>
    %c1_27 = arith.constant 1 : index
    %c1_28 = arith.constant 1 : index
    %c0_29 = arith.constant 0 : index
    %33 = vector.load %arg5[%c1_27, %c1_28, %c0_29] : memref<10x10x16xf32, #tpu.memory_space<vmem>>, vector<8x8x16xf32>
    tpu.vector_store %arg5[%c1_27, %c1_28, %c0_29], %32 {strides = array<i32>} : memref<10x10x16xf32, #tpu.memory_space<vmem>>, vector<8x8x16xf32>,
    %c16 = arith.constant 16 : index
    %c0_30 = arith.constant 0 : index
    %34 = vector.load %arg3[%c16, %c0_30] : memref<297x144xf32, #tpu.memory_space<vmem>>, vector<9x16xf32>
    %cst_31 = arith.constant 0.000000e+00 : f32
    %35 = vector.broadcast %cst_31 : f32 to vector<8x8x16xf32>
    %36 = vector.extract_strided_slice %34 {offsets = [0, 0], sizes = [1, 16], strides = [1, 1]} : vector<9x16xf32> to vector<1x16xf32>
    %37 = vector.shape_cast %36 : vector<1x16xf32> to vector<1x1x16xf32>
    %c0_32 = arith.constant 0 : index
    %c0_33 = arith.constant 0 : index
    %c0_34 = arith.constant 0 : index
    %38 = vector.load %arg5[%c0_32, %c0_33, %c0_34] : memref<10x10x16xf32, #tpu.memory_space<vmem>>, vector<8x8x16xf32>
    %39 = vector.broadcast %37 : vector<1x1x16xf32> to vector<8x8x16xf32>
    %40 = arith.mulf %38, %39 : vector<8x8x16xf32>
    %41 = arith.addf %35, %40 : vector<8x8x16xf32>
    %42 = vector.extract_strided_slice %34 {offsets = [1, 0], sizes = [1, 16], strides = [1, 1]} : vector<9x16xf32> to vector<1x16xf32>
    %43 = vector.shape_cast %42 : vector<1x16xf32> to vector<1x1x16xf32>
    %c0_35 = arith.constant 0 : index
    %c1_36 = arith.constant 1 : index
    %c0_37 = arith.constant 0 : index
    %44 = vector.load %arg5[%c0_35, %c1_36, %c0_37] : memref<10x10x16xf32, #tpu.memory_space<vmem>>, vector<8x8x16xf32>
    %45 = vector.broadcast %43 : vector<1x1x16xf32> to vector<8x8x16xf32>
    %46 = arith.mulf %44, %45 : vector<8x8x16xf32>
    %47 = arith.addf %41, %46 : vector<8x8x16xf32>
    %48 = vector.extract_strided_slice %34 {offsets = [2, 0], sizes = [1, 16], strides = [1, 1]} : vector<9x16xf32> to vector<1x16xf32>
    %49 = vector.shape_cast %48 : vector<1x16xf32> to vector<1x1x16xf32>
    %c0_38 = arith.constant 0 : index
    %c2 = arith.constant 2 : index
    %c0_39 = arith.constant 0 : index
    %50 = vector.load %arg5[%c0_38, %c2, %c0_39] : memref<10x10x16xf32, #tpu.memory_space<vmem>>, vector<8x8x16xf32>
    %51 = vector.broadcast %49 : vector<1x1x16xf32> to vector<8x8x16xf32>
    %52 = arith.mulf %50, %51 : vector<8x8x16xf32>
    %53 = arith.addf %47, %52 : vector<8x8x16xf32>
    %54 = vector.extract_strided_slice %34 {offsets = [3, 0], sizes = [1, 16], strides = [1, 1]} : vector<9x16xf32> to vector<1x16xf32>
    %55 = vector.shape_cast %54 : vector<1x16xf32> to vector<1x1x16xf32>
    %c1_40 = arith.constant 1 : index
    %c0_41 = arith.constant 0 : index
    %c0_42 = arith.constant 0 : index
    %56 = vector.load %arg5[%c1_40, %c0_41, %c0_42] : memref<10x10x16xf32, #tpu.memory_space<vmem>>, vector<8x8x16xf32>
    %57 = vector.broadcast %55 : vector<1x1x16xf32> to vector<8x8x16xf32>
    %58 = arith.mulf %56, %57 : vector<8x8x16xf32>
    %59 = arith.addf %53, %58 : vector<8x8x16xf32>
    %60 = vector.extract_strided_slice %34 {offsets = [4, 0], sizes = [1, 16], strides = [1, 1]} : vector<9x16xf32> to vector<1x16xf32>
    %61 = vector.shape_cast %60 : vector<1x16xf32> to vector<1x1x16xf32>
    %c1_43 = arith.constant 1 : index
    %c1_44 = arith.constant 1 : index
    %c0_45 = arith.constant 0 : index
    %62 = vector.load %arg5[%c1_43, %c1_44, %c0_45] : memref<10x10x16xf32, #tpu.memory_space<vmem>>, vector<8x8x16xf32>
    %63 = vector.broadcast %61 : vector<1x1x16xf32> to vector<8x8x16xf32>
    %64 = arith.mulf %62, %63 : vector<8x8x16xf32>
    %65 = arith.addf %59, %64 : vector<8x8x16xf32>
    %66 = vector.extract_strided_slice %34 {offsets = [5, 0], sizes = [1, 16], strides = [1, 1]} : vector<9x16xf32> to vector<1x16xf32>
    %67 = vector.shape_cast %66 : vector<1x16xf32> to vector<1x1x16xf32>
    %c1_46 = arith.constant 1 : index
    %c2_47 = arith.constant 2 : index
    %c0_48 = arith.constant 0 : index
    %68 = vector.load %arg5[%c1_46, %c2_47, %c0_48] : memref<10x10x16xf32, #tpu.memory_space<vmem>>, vector<8x8x16xf32>
    %69 = vector.broadcast %67 : vector<1x1x16xf32> to vector<8x8x16xf32>
    %70 = arith.mulf %68, %69 : vector<8x8x16xf32>
    %71 = arith.addf %65, %70 : vector<8x8x16xf32>
    %72 = vector.extract_strided_slice %34 {offsets = [6, 0], sizes = [1, 16], strides = [1, 1]} : vector<9x16xf32> to vector<1x16xf32>
    %73 = vector.shape_cast %72 : vector<1x16xf32> to vector<1x1x16xf32>
    %c2_49 = arith.constant 2 : index
    %c0_50 = arith.constant 0 : index
    %c0_51 = arith.constant 0 : index
    %74 = vector.load %arg5[%c2_49, %c0_50, %c0_51] : memref<10x10x16xf32, #tpu.memory_space<vmem>>, vector<8x8x16xf32>
    %75 = vector.broadcast %73 : vector<1x1x16xf32> to vector<8x8x16xf32>
    %76 = arith.mulf %74, %75 : vector<8x8x16xf32>
    %77 = arith.addf %71, %76 : vector<8x8x16xf32>
    %78 = vector.extract_strided_slice %34 {offsets = [7, 0], sizes = [1, 16], strides = [1, 1]} : vector<9x16xf32> to vector<1x16xf32>
    %79 = vector.shape_cast %78 : vector<1x16xf32> to vector<1x1x16xf32>
    %c2_52 = arith.constant 2 : index
    %c1_53 = arith.constant 1 : index
    %c0_54 = arith.constant 0 : index
    %80 = vector.load %arg5[%c2_52, %c1_53, %c0_54] : memref<10x10x16xf32, #tpu.memory_space<vmem>>, vector<8x8x16xf32>
    %81 = vector.broadcast %79 : vector<1x1x16xf32> to vector<8x8x16xf32>
    %82 = arith.mulf %80, %81 : vector<8x8x16xf32>
    %83 = arith.addf %77, %82 : vector<8x8x16xf32>
    %84 = vector.extract_strided_slice %34 {offsets = [8, 0], sizes = [1, 16], strides = [1, 1]} : vector<9x16xf32> to vector<1x16xf32>
    %85 = vector.shape_cast %84 : vector<1x16xf32> to vector<1x1x16xf32>
    %c2_55 = arith.constant 2 : index
    %c2_56 = arith.constant 2 : index
    %c0_57 = arith.constant 0 : index
    %86 = vector.load %arg5[%c2_55, %c2_56, %c0_57] : memref<10x10x16xf32, #tpu.memory_space<vmem>>, vector<8x8x16xf32>
    %87 = vector.broadcast %85 : vector<1x1x16xf32> to vector<8x8x16xf32>
    %88 = arith.mulf %86, %87 : vector<8x8x16xf32>
    %89 = arith.addf %83, %88 : vector<8x8x16xf32>
    %90 = vector.shape_cast %89 : vector<8x8x16xf32> to vector<64x16xf32>
    %c32_58 = arith.constant 32 : index
    %c0_59 = arith.constant 0 : index
    %91 = vector.load %arg3[%c32_58, %c0_59] : memref<297x144xf32, #tpu.memory_space<vmem>>, vector<1x16xf32>
    %92 = vector.broadcast %91 : vector<1x16xf32> to vector<64x16xf32>
    %93 = arith.addf %90, %92 : vector<64x16xf32>
    %cst_60 = arith.constant 0.000000e+00 : f32
    %94 = vector.broadcast %cst_60 : f32 to vector<64x16xf32>
    %95 = arith.cmpf oge, %93, %94 : vector<64x16xf32>
    %cst_61 = arith.constant 2.500000e-01 : f32
    %96 = vector.broadcast %cst_61 : f32 to vector<64x16xf32>
    %97 = arith.mulf %96, %93 : vector<64x16xf32>
    %98 = arith.select %95, %93, %97 : vector<64x16xi1>, vector<64x16xf32>
    %99 = arith.truncf %98 : vector<64x16xf32> to vector<64x16xbf16>
    %c40 = arith.constant 40 : index
    %c0_62 = arith.constant 0 : index
    %100 = vector.load %arg2[%c40, %c0_62] : memref<720x144xbf16, #tpu.memory_space<vmem>>, vector<16x8xbf16>
    %cst_63 = arith.constant dense<0.000000e+00> : vector<64x8xf32>
    %101 = tpu.matmul %99, %100, %cst_63 {dimension_numbers = #tpu.dot_dimension_numbers<[1], [0], [0], [1], [0, 0, 1, 1], [], []>} : vector<64x16xbf16>, vector<16x8xbf16>, vector<64x8xf32> -> vector<64x8xf32>
    %c40_64 = arith.constant 40 : index
    %c0_65 = arith.constant 0 : index
    %102 = vector.load %arg3[%c40_64, %c0_65] : memref<297x144xf32, #tpu.memory_space<vmem>>, vector<1x8xf32>
    %103 = vector.broadcast %102 : vector<1x8xf32> to vector<64x8xf32>
    %104 = arith.addf %101, %103 : vector<64x8xf32>
    %105 = arith.addf %104, %12 : vector<64x8xf32>
    %106 = arith.truncf %105 : vector<64x8xf32> to vector<64x8xbf16>
    %c56 = arith.constant 56 : index
    %c0_66 = arith.constant 0 : index
    %107 = vector.load %arg2[%c56, %c0_66] : memref<720x144xbf16, #tpu.memory_space<vmem>>, vector<8x24xbf16>
    %cst_67 = arith.constant dense<0.000000e+00> : vector<64x24xf32>
    %108 = tpu.matmul %106, %107, %cst_67 {dimension_numbers = #tpu.dot_dimension_numbers<[1], [0], [0], [1], [0, 0, 1, 1], [], []>} : vector<64x8xbf16>, vector<8x24xbf16>, vector<64x24xf32> -> vector<64x24xf32>
    %c48 = arith.constant 48 : index
    %c0_68 = arith.constant 0 : index
    %109 = vector.load %arg3[%c48, %c0_68] : memref<297x144xf32, #tpu.memory_space<vmem>>, vector<1x24xf32>
    %110 = vector.broadcast %109 : vector<1x24xf32> to vector<64x24xf32>
    %111 = arith.addf %108, %110 : vector<64x24xf32>
    %cst_69 = arith.constant 0.000000e+00 : f32
    %112 = vector.broadcast %cst_69 : f32 to vector<64x24xf32>
    %113 = arith.cmpf oge, %111, %112 : vector<64x24xf32>
    %cst_70 = arith.constant 2.500000e-01 : f32
    %114 = vector.broadcast %cst_70 : f32 to vector<64x24xf32>
    %115 = arith.mulf %114, %111 : vector<64x24xf32>
    %116 = arith.select %113, %111, %115 : vector<64x24xi1>, vector<64x24xf32>
    %cst_71 = arith.constant 0.000000e+00 : f32
    %117 = vector.broadcast %cst_71 : f32 to vector<1x10x24xf32>
    %c0_72 = arith.constant 0 : index
    %c0_73 = arith.constant 0 : index
    %c0_74 = arith.constant 0 : index
    %118 = vector.load %arg6[%c0_72, %c0_73, %c0_74] : memref<10x10x24xf32, #tpu.memory_space<vmem>>, vector<1x10x24xf32>
    tpu.vector_store %arg6[%c0_72, %c0_73, %c0_74], %117 {strides = array<i32>} : memref<10x10x24xf32, #tpu.memory_space<vmem>>, vector<1x10x24xf32>,
    %cst_75 = arith.constant 0.000000e+00 : f32
    %119 = vector.broadcast %cst_75 : f32 to vector<1x10x24xf32>
    %c9_76 = arith.constant 9 : index
    %c0_77 = arith.constant 0 : index
    %c0_78 = arith.constant 0 : index
    %120 = vector.load %arg6[%c9_76, %c0_77, %c0_78] : memref<10x10x24xf32, #tpu.memory_space<vmem>>, vector<1x10x24xf32>
    tpu.vector_store %arg6[%c9_76, %c0_77, %c0_78], %119 {strides = array<i32>} : memref<10x10x24xf32, #tpu.memory_space<vmem>>, vector<1x10x24xf32>,
    %cst_79 = arith.constant 0.000000e+00 : f32
    %121 = vector.broadcast %cst_79 : f32 to vector<8x1x24xf32>
    %c1_80 = arith.constant 1 : index
    %c0_81 = arith.constant 0 : index
    %c0_82 = arith.constant 0 : index
    %122 = vector.load %arg6[%c1_80, %c0_81, %c0_82] : memref<10x10x24xf32, #tpu.memory_space<vmem>>, vector<8x1x24xf32>
    tpu.vector_store %arg6[%c1_80, %c0_81, %c0_82], %121 {strides = array<i32>} : memref<10x10x24xf32, #tpu.memory_space<vmem>>, vector<8x1x24xf32>,
    %cst_83 = arith.constant 0.000000e+00 : f32
    %123 = vector.broadcast %cst_83 : f32 to vector<8x1x24xf32>
    %c1_84 = arith.constant 1 : index
    %c9_85 = arith.constant 9 : index
    %c0_86 = arith.constant 0 : index
    %124 = vector.load %arg6[%c1_84, %c9_85, %c0_86] : memref<10x10x24xf32, #tpu.memory_space<vmem>>, vector<8x1x24xf32>
    tpu.vector_store %arg6[%c1_84, %c9_85, %c0_86], %123 {strides = array<i32>} : memref<10x10x24xf32, #tpu.memory_space<vmem>>, vector<8x1x24xf32>,
    %125 = vector.shape_cast %116 : vector<64x24xf32> to vector<8x8x24xf32>
    %c1_87 = arith.constant 1 : index
    %c1_88 = arith.constant 1 : index
    %c0_89 = arith.constant 0 : index
    %126 = vector.load %arg6[%c1_87, %c1_88, %c0_89] : memref<10x10x24xf32, #tpu.memory_space<vmem>>, vector<8x8x24xf32>
    tpu.vector_store %arg6[%c1_87, %c1_88, %c0_89], %125 {strides = array<i32>} : memref<10x10x24xf32, #tpu.memory_space<vmem>>, vector<8x8x24xf32>,
    %c56_90 = arith.constant 56 : index
    %c0_91 = arith.constant 0 : index
    %127 = vector.load %arg3[%c56_90, %c0_91] : memref<297x144xf32, #tpu.memory_space<vmem>>, vector<9x24xf32>
    %cst_92 = arith.constant 0.000000e+00 : f32
    %128 = vector.broadcast %cst_92 : f32 to vector<4x4x24xf32>
    %129 = vector.extract_strided_slice %127 {offsets = [0, 0], sizes = [1, 24], strides = [1, 1]} : vector<9x24xf32> to vector<1x24xf32>
    %130 = vector.shape_cast %129 : vector<1x24xf32> to vector<1x1x24xf32>
    %c0_93 = arith.constant 0 : index
    %c0_94 = arith.constant 0 : index
    %c0_95 = arith.constant 0 : index
    %131 = tpu.strided_load %arg6[%c0_93, %c0_94, %c0_95] {strides = array<i32: 2, 2, 1>} : memref<10x10x24xf32, #tpu.memory_space<vmem>>, vector<4x4x24xf32>
    %132 = vector.broadcast %130 : vector<1x1x24xf32> to vector<4x4x24xf32>
    %133 = arith.mulf %131, %132 : vector<4x4x24xf32>
    %134 = arith.addf %128, %133 : vector<4x4x24xf32>
    %135 = vector.extract_strided_slice %127 {offsets = [1, 0], sizes = [1, 24], strides = [1, 1]} : vector<9x24xf32> to vector<1x24xf32>
    %136 = vector.shape_cast %135 : vector<1x24xf32> to vector<1x1x24xf32>
    %c0_96 = arith.constant 0 : index
    %c1_97 = arith.constant 1 : index
    %c0_98 = arith.constant 0 : index
    %137 = tpu.strided_load %arg6[%c0_96, %c1_97, %c0_98] {strides = array<i32: 2, 2, 1>} : memref<10x10x24xf32, #tpu.memory_space<vmem>>, vector<4x4x24xf32>
    %138 = vector.broadcast %136 : vector<1x1x24xf32> to vector<4x4x24xf32>
    %139 = arith.mulf %137, %138 : vector<4x4x24xf32>
    %140 = arith.addf %134, %139 : vector<4x4x24xf32>
    %141 = vector.extract_strided_slice %127 {offsets = [2, 0], sizes = [1, 24], strides = [1, 1]} : vector<9x24xf32> to vector<1x24xf32>
    %142 = vector.shape_cast %141 : vector<1x24xf32> to vector<1x1x24xf32>
    %c0_99 = arith.constant 0 : index
    %c2_100 = arith.constant 2 : index
    %c0_101 = arith.constant 0 : index
    %143 = tpu.strided_load %arg6[%c0_99, %c2_100, %c0_101] {strides = array<i32: 2, 2, 1>} : memref<10x10x24xf32, #tpu.memory_space<vmem>>, vector<4x4x24xf32>
    %144 = vector.broadcast %142 : vector<1x1x24xf32> to vector<4x4x24xf32>
    %145 = arith.mulf %143, %144 : vector<4x4x24xf32>
    %146 = arith.addf %140, %145 : vector<4x4x24xf32>
    %147 = vector.extract_strided_slice %127 {offsets = [3, 0], sizes = [1, 24], strides = [1, 1]} : vector<9x24xf32> to vector<1x24xf32>
    %148 = vector.shape_cast %147 : vector<1x24xf32> to vector<1x1x24xf32>
    %c1_102 = arith.constant 1 : index
    %c0_103 = arith.constant 0 : index
    %c0_104 = arith.constant 0 : index
    %149 = tpu.strided_load %arg6[%c1_102, %c0_103, %c0_104] {strides = array<i32: 2, 2, 1>} : memref<10x10x24xf32, #tpu.memory_space<vmem>>, vector<4x4x24xf32>
    %150 = vector.broadcast %148 : vector<1x1x24xf32> to vector<4x4x24xf32>
    %151 = arith.mulf %149, %150 : vector<4x4x24xf32>
    %152 = arith.addf %146, %151 : vector<4x4x24xf32>
    %153 = vector.extract_strided_slice %127 {offsets = [4, 0], sizes = [1, 24], strides = [1, 1]} : vector<9x24xf32> to vector<1x24xf32>
    %154 = vector.shape_cast %153 : vector<1x24xf32> to vector<1x1x24xf32>
    %c1_105 = arith.constant 1 : index
    %c1_106 = arith.constant 1 : index
    %c0_107 = arith.constant 0 : index
    %155 = tpu.strided_load %arg6[%c1_105, %c1_106, %c0_107] {strides = array<i32: 2, 2, 1>} : memref<10x10x24xf32, #tpu.memory_space<vmem>>, vector<4x4x24xf32>
    %156 = vector.broadcast %154 : vector<1x1x24xf32> to vector<4x4x24xf32>
    %157 = arith.mulf %155, %156 : vector<4x4x24xf32>
    %158 = arith.addf %152, %157 : vector<4x4x24xf32>
    %159 = vector.extract_strided_slice %127 {offsets = [5, 0], sizes = [1, 24], strides = [1, 1]} : vector<9x24xf32> to vector<1x24xf32>
    %160 = vector.shape_cast %159 : vector<1x24xf32> to vector<1x1x24xf32>
    %c1_108 = arith.constant 1 : index
    %c2_109 = arith.constant 2 : index
    %c0_110 = arith.constant 0 : index
    %161 = tpu.strided_load %arg6[%c1_108, %c2_109, %c0_110] {strides = array<i32: 2, 2, 1>} : memref<10x10x24xf32, #tpu.memory_space<vmem>>, vector<4x4x24xf32>
    %162 = vector.broadcast %160 : vector<1x1x24xf32> to vector<4x4x24xf32>
    %163 = arith.mulf %161, %162 : vector<4x4x24xf32>
    %164 = arith.addf %158, %163 : vector<4x4x24xf32>
    %165 = vector.extract_strided_slice %127 {offsets = [6, 0], sizes = [1, 24], strides = [1, 1]} : vector<9x24xf32> to vector<1x24xf32>
    %166 = vector.shape_cast %165 : vector<1x24xf32> to vector<1x1x24xf32>
    %c2_111 = arith.constant 2 : index
    %c0_112 = arith.constant 0 : index
    %c0_113 = arith.constant 0 : index
    %167 = tpu.strided_load %arg6[%c2_111, %c0_112, %c0_113] {strides = array<i32: 2, 2, 1>} : memref<10x10x24xf32, #tpu.memory_space<vmem>>, vector<4x4x24xf32>
    %168 = vector.broadcast %166 : vector<1x1x24xf32> to vector<4x4x24xf32>
    %169 = arith.mulf %167, %168 : vector<4x4x24xf32>
    %170 = arith.addf %164, %169 : vector<4x4x24xf32>
    %171 = vector.extract_strided_slice %127 {offsets = [7, 0], sizes = [1, 24], strides = [1, 1]} : vector<9x24xf32> to vector<1x24xf32>
    %172 = vector.shape_cast %171 : vector<1x24xf32> to vector<1x1x24xf32>
    %c2_114 = arith.constant 2 : index
    %c1_115 = arith.constant 1 : index
    %c0_116 = arith.constant 0 : index
    %173 = tpu.strided_load %arg6[%c2_114, %c1_115, %c0_116] {strides = array<i32: 2, 2, 1>} : memref<10x10x24xf32, #tpu.memory_space<vmem>>, vector<4x4x24xf32>
    %174 = vector.broadcast %172 : vector<1x1x24xf32> to vector<4x4x24xf32>
    %175 = arith.mulf %173, %174 : vector<4x4x24xf32>
    %176 = arith.addf %170, %175 : vector<4x4x24xf32>
    %177 = vector.extract_strided_slice %127 {offsets = [8, 0], sizes = [1, 24], strides = [1, 1]} : vector<9x24xf32> to vector<1x24xf32>
    %178 = vector.shape_cast %177 : vector<1x24xf32> to vector<1x1x24xf32>
    %c2_117 = arith.constant 2 : index
    %c2_118 = arith.constant 2 : index
    %c0_119 = arith.constant 0 : index
    %179 = tpu.strided_load %arg6[%c2_117, %c2_118, %c0_119] {strides = array<i32: 2, 2, 1>} : memref<10x10x24xf32, #tpu.memory_space<vmem>>, vector<4x4x24xf32>
    %180 = vector.broadcast %178 : vector<1x1x24xf32> to vector<4x4x24xf32>
    %181 = arith.mulf %179, %180 : vector<4x4x24xf32>
    %182 = arith.addf %176, %181 : vector<4x4x24xf32>
    %183 = vector.shape_cast %182 : vector<4x4x24xf32> to vector<16x24xf32>
    %c72 = arith.constant 72 : index
    %c0_120 = arith.constant 0 : index
    %184 = vector.load %arg3[%c72, %c0_120] : memref<297x144xf32, #tpu.memory_space<vmem>>, vector<1x24xf32>
    %185 = vector.broadcast %184 : vector<1x24xf32> to vector<16x24xf32>
    %186 = arith.addf %183, %185 : vector<16x24xf32>
    %cst_121 = arith.constant 0.000000e+00 : f32
    %187 = vector.broadcast %cst_121 : f32 to vector<16x24xf32>
    %188 = arith.cmpf oge, %186, %187 : vector<16x24xf32>
    %cst_122 = arith.constant 2.500000e-01 : f32
    %189 = vector.broadcast %cst_122 : f32 to vector<16x24xf32>
    %190 = arith.mulf %189, %186 : vector<16x24xf32>
    %191 = arith.select %188, %186, %190 : vector<16x24xi1>, vector<16x24xf32>
    %192 = arith.truncf %191 : vector<16x24xf32> to vector<16x24xbf16>
    %c64 = arith.constant 64 : index
    %c0_123 = arith.constant 0 : index
    %193 = vector.load %arg2[%c64, %c0_123] : memref<720x144xbf16, #tpu.memory_space<vmem>>, vector<24x16xbf16>
    %cst_124 = arith.constant dense<0.000000e+00> : vector<16x16xf32>
    %194 = tpu.matmul %192, %193, %cst_124 {dimension_numbers = #tpu.dot_dimension_numbers<[1], [0], [0], [1], [0, 0, 1, 1], [], []>} : vector<16x24xbf16>, vector<24x16xbf16>, vector<16x16xf32> -> vector<16x16xf32>
    %c80 = arith.constant 80 : index
    %c0_125 = arith.constant 0 : index
    %195 = vector.load %arg3[%c80, %c0_125] : memref<297x144xf32, #tpu.memory_space<vmem>>, vector<1x16xf32>
    %196 = vector.broadcast %195 : vector<1x16xf32> to vector<16x16xf32>
    %197 = arith.addf %194, %196 : vector<16x16xf32>
    %198 = arith.truncf %197 : vector<16x16xf32> to vector<16x16xbf16>
    %c88 = arith.constant 88 : index
    %c0_126 = arith.constant 0 : index
    %199 = vector.load %arg2[%c88, %c0_126] : memref<720x144xbf16, #tpu.memory_space<vmem>>, vector<16x32xbf16>
    %cst_127 = arith.constant dense<0.000000e+00> : vector<16x32xf32>
    %200 = tpu.matmul %198, %199, %cst_127 {dimension_numbers = #tpu.dot_dimension_numbers<[1], [0], [0], [1], [0, 0, 1, 1], [], []>} : vector<16x16xbf16>, vector<16x32xbf16>, vector<16x32xf32> -> vector<16x32xf32>
    %c88_128 = arith.constant 88 : index
    %c0_129 = arith.constant 0 : index
    %201 = vector.load %arg3[%c88_128, %c0_129] : memref<297x144xf32, #tpu.memory_space<vmem>>, vector<1x32xf32>
    %202 = vector.broadcast %201 : vector<1x32xf32> to vector<16x32xf32>
    %203 = arith.addf %200, %202 : vector<16x32xf32>
    %cst_130 = arith.constant 0.000000e+00 : f32
    %204 = vector.broadcast %cst_130 : f32 to vector<16x32xf32>
    %205 = arith.cmpf oge, %203, %204 : vector<16x32xf32>
    %cst_131 = arith.constant 2.500000e-01 : f32
    %206 = vector.broadcast %cst_131 : f32 to vector<16x32xf32>
    %207 = arith.mulf %206, %203 : vector<16x32xf32>
    %208 = arith.select %205, %203, %207 : vector<16x32xi1>, vector<16x32xf32>
    %cst_132 = arith.constant 0.000000e+00 : f32
    %209 = vector.broadcast %cst_132 : f32 to vector<1x6x32xf32>
    %c0_133 = arith.constant 0 : index
    %c0_134 = arith.constant 0 : index
    %c0_135 = arith.constant 0 : index
    %210 = vector.load %arg7[%c0_133, %c0_134, %c0_135] : memref<6x6x32xf32, #tpu.memory_space<vmem>>, vector<1x6x32xf32>
    tpu.vector_store %arg7[%c0_133, %c0_134, %c0_135], %209 {strides = array<i32>} : memref<6x6x32xf32, #tpu.memory_space<vmem>>, vector<1x6x32xf32>,
    %cst_136 = arith.constant 0.000000e+00 : f32
    %211 = vector.broadcast %cst_136 : f32 to vector<1x6x32xf32>
    %c5 = arith.constant 5 : index
    %c0_137 = arith.constant 0 : index
    %c0_138 = arith.constant 0 : index
    %212 = vector.load %arg7[%c5, %c0_137, %c0_138] : memref<6x6x32xf32, #tpu.memory_space<vmem>>, vector<1x6x32xf32>
    tpu.vector_store %arg7[%c5, %c0_137, %c0_138], %211 {strides = array<i32>} : memref<6x6x32xf32, #tpu.memory_space<vmem>>, vector<1x6x32xf32>,
    %cst_139 = arith.constant 0.000000e+00 : f32
    %213 = vector.broadcast %cst_139 : f32 to vector<4x1x32xf32>
    %c1_140 = arith.constant 1 : index
    %c0_141 = arith.constant 0 : index
    %c0_142 = arith.constant 0 : index
    %214 = vector.load %arg7[%c1_140, %c0_141, %c0_142] : memref<6x6x32xf32, #tpu.memory_space<vmem>>, vector<4x1x32xf32>
    tpu.vector_store %arg7[%c1_140, %c0_141, %c0_142], %213 {strides = array<i32>} : memref<6x6x32xf32, #tpu.memory_space<vmem>>, vector<4x1x32xf32>,
    %cst_143 = arith.constant 0.000000e+00 : f32
    %215 = vector.broadcast %cst_143 : f32 to vector<4x1x32xf32>
    %c1_144 = arith.constant 1 : index
    %c5_145 = arith.constant 5 : index
    %c0_146 = arith.constant 0 : index
    %216 = vector.load %arg7[%c1_144, %c5_145, %c0_146] : memref<6x6x32xf32, #tpu.memory_space<vmem>>, vector<4x1x32xf32>
    tpu.vector_store %arg7[%c1_144, %c5_145, %c0_146], %215 {strides = array<i32>} : memref<6x6x32xf32, #tpu.memory_space<vmem>>, vector<4x1x32xf32>,
    %217 = vector.extract_strided_slice %208 {offsets = [0, 0], sizes = [4, 32], strides = [1, 1]} : vector<16x32xf32> to vector<4x32xf32>
    %c1_147 = arith.constant 1 : index
    %c1_148 = arith.constant 1 : index
    %c0_149 = arith.constant 0 : index
    %218 = vector.load %arg7[%c1_147, %c1_148, %c0_149] : memref<6x6x32xf32, #tpu.memory_space<vmem>>, vector<1x4x32xf32>
    %219 = vector.shape_cast %218 : vector<1x4x32xf32> to vector<4x32xf32>
    %220 = vector.shape_cast %217 : vector<4x32xf32> to vector<1x4x32xf32>
    tpu.vector_store %arg7[%c1_147, %c1_148, %c0_149], %220 {strides = array<i32>} : memref<6x6x32xf32, #tpu.memory_space<vmem>>, vector<1x4x32xf32>,
    %221 = vector.extract_strided_slice %208 {offsets = [4, 0], sizes = [4, 32], strides = [1, 1]} : vector<16x32xf32> to vector<4x32xf32>
    %c2_150 = arith.constant 2 : index
    %c1_151 = arith.constant 1 : index
    %c0_152 = arith.constant 0 : index
    %222 = vector.load %arg7[%c2_150, %c1_151, %c0_152] : memref<6x6x32xf32, #tpu.memory_space<vmem>>, vector<1x4x32xf32>
    %223 = vector.shape_cast %222 : vector<1x4x32xf32> to vector<4x32xf32>
    %224 = vector.shape_cast %221 : vector<4x32xf32> to vector<1x4x32xf32>
    tpu.vector_store %arg7[%c2_150, %c1_151, %c0_152], %224 {strides = array<i32>} : memref<6x6x32xf32, #tpu.memory_space<vmem>>, vector<1x4x32xf32>,
    %225 = vector.extract_strided_slice %208 {offsets = [8, 0], sizes = [4, 32], strides = [1, 1]} : vector<16x32xf32> to vector<4x32xf32>
    %c3 = arith.constant 3 : index
    %c1_153 = arith.constant 1 : index
    %c0_154 = arith.constant 0 : index
    %226 = vector.load %arg7[%c3, %c1_153, %c0_154] : memref<6x6x32xf32, #tpu.memory_space<vmem>>, vector<1x4x32xf32>
    %227 = vector.shape_cast %226 : vector<1x4x32xf32> to vector<4x32xf32>
    %228 = vector.shape_cast %225 : vector<4x32xf32> to vector<1x4x32xf32>
    tpu.vector_store %arg7[%c3, %c1_153, %c0_154], %228 {strides = array<i32>} : memref<6x6x32xf32, #tpu.memory_space<vmem>>, vector<1x4x32xf32>,
    %229 = vector.extract_strided_slice %208 {offsets = [12, 0], sizes = [4, 32], strides = [1, 1]} : vector<16x32xf32> to vector<4x32xf32>
    %c4 = arith.constant 4 : index
    %c1_155 = arith.constant 1 : index
    %c0_156 = arith.constant 0 : index
    %230 = vector.load %arg7[%c4, %c1_155, %c0_156] : memref<6x6x32xf32, #tpu.memory_space<vmem>>, vector<1x4x32xf32>
    %231 = vector.shape_cast %230 : vector<1x4x32xf32> to vector<4x32xf32>
    %232 = vector.shape_cast %229 : vector<4x32xf32> to vector<1x4x32xf32>
    tpu.vector_store %arg7[%c4, %c1_155, %c0_156], %232 {strides = array<i32>} : memref<6x6x32xf32, #tpu.memory_space<vmem>>, vector<1x4x32xf32>,
    %c96 = arith.constant 96 : index
    %c0_157 = arith.constant 0 : index
    %233 = vector.load %arg3[%c96, %c0_157] : memref<297x144xf32, #tpu.memory_space<vmem>>, vector<9x32xf32>
    %cst_158 = arith.constant 0.000000e+00 : f32
    %234 = vector.broadcast %cst_158 : f32 to vector<4x4x32xf32>
    %235 = vector.extract_strided_slice %233 {offsets = [0, 0], sizes = [1, 32], strides = [1, 1]} : vector<9x32xf32> to vector<1x32xf32>
    %236 = vector.shape_cast %235 : vector<1x32xf32> to vector<1x1x32xf32>
    %c0_159 = arith.constant 0 : index
    %c0_160 = arith.constant 0 : index
    %c0_161 = arith.constant 0 : index
    %237 = vector.load %arg7[%c0_159, %c0_160, %c0_161] : memref<6x6x32xf32, #tpu.memory_space<vmem>>, vector<4x4x32xf32>
    %238 = vector.broadcast %236 : vector<1x1x32xf32> to vector<4x4x32xf32>
    %239 = arith.mulf %237, %238 : vector<4x4x32xf32>
    %240 = arith.addf %234, %239 : vector<4x4x32xf32>
    %241 = vector.extract_strided_slice %233 {offsets = [1, 0], sizes = [1, 32], strides = [1, 1]} : vector<9x32xf32> to vector<1x32xf32>
    %242 = vector.shape_cast %241 : vector<1x32xf32> to vector<1x1x32xf32>
    %c0_162 = arith.constant 0 : index
    %c1_163 = arith.constant 1 : index
    %c0_164 = arith.constant 0 : index
    %243 = vector.load %arg7[%c0_162, %c1_163, %c0_164] : memref<6x6x32xf32, #tpu.memory_space<vmem>>, vector<4x4x32xf32>
    %244 = vector.broadcast %242 : vector<1x1x32xf32> to vector<4x4x32xf32>
    %245 = arith.mulf %243, %244 : vector<4x4x32xf32>
    %246 = arith.addf %240, %245 : vector<4x4x32xf32>
    %247 = vector.extract_strided_slice %233 {offsets = [2, 0], sizes = [1, 32], strides = [1, 1]} : vector<9x32xf32> to vector<1x32xf32>
    %248 = vector.shape_cast %247 : vector<1x32xf32> to vector<1x1x32xf32>
    %c0_165 = arith.constant 0 : index
    %c2_166 = arith.constant 2 : index
    %c0_167 = arith.constant 0 : index
    %249 = vector.load %arg7[%c0_165, %c2_166, %c0_167] : memref<6x6x32xf32, #tpu.memory_space<vmem>>, vector<4x4x32xf32>
    %250 = vector.broadcast %248 : vector<1x1x32xf32> to vector<4x4x32xf32>
    %251 = arith.mulf %249, %250 : vector<4x4x32xf32>
    %252 = arith.addf %246, %251 : vector<4x4x32xf32>
    %253 = vector.extract_strided_slice %233 {offsets = [3, 0], sizes = [1, 32], strides = [1, 1]} : vector<9x32xf32> to vector<1x32xf32>
    %254 = vector.shape_cast %253 : vector<1x32xf32> to vector<1x1x32xf32>
    %c1_168 = arith.constant 1 : index
    %c0_169 = arith.constant 0 : index
    %c0_170 = arith.constant 0 : index
    %255 = vector.load %arg7[%c1_168, %c0_169, %c0_170] : memref<6x6x32xf32, #tpu.memory_space<vmem>>, vector<4x4x32xf32>
    %256 = vector.broadcast %254 : vector<1x1x32xf32> to vector<4x4x32xf32>
    %257 = arith.mulf %255, %256 : vector<4x4x32xf32>
    %258 = arith.addf %252, %257 : vector<4x4x32xf32>
    %259 = vector.extract_strided_slice %233 {offsets = [4, 0], sizes = [1, 32], strides = [1, 1]} : vector<9x32xf32> to vector<1x32xf32>
    %260 = vector.shape_cast %259 : vector<1x32xf32> to vector<1x1x32xf32>
    %c1_171 = arith.constant 1 : index
    %c1_172 = arith.constant 1 : index
    %c0_173 = arith.constant 0 : index
    %261 = vector.load %arg7[%c1_171, %c1_172, %c0_173] : memref<6x6x32xf32, #tpu.memory_space<vmem>>, vector<4x4x32xf32>
    %262 = vector.broadcast %260 : vector<1x1x32xf32> to vector<4x4x32xf32>
    %263 = arith.mulf %261, %262 : vector<4x4x32xf32>
    %264 = arith.addf %258, %263 : vector<4x4x32xf32>
    %265 = vector.extract_strided_slice %233 {offsets = [5, 0], sizes = [1, 32], strides = [1, 1]} : vector<9x32xf32> to vector<1x32xf32>
    %266 = vector.shape_cast %265 : vector<1x32xf32> to vector<1x1x32xf32>
    %c1_174 = arith.constant 1 : index
    %c2_175 = arith.constant 2 : index
    %c0_176 = arith.constant 0 : index
    %267 = vector.load %arg7[%c1_174, %c2_175, %c0_176] : memref<6x6x32xf32, #tpu.memory_space<vmem>>, vector<4x4x32xf32>
    %268 = vector.broadcast %266 : vector<1x1x32xf32> to vector<4x4x32xf32>
    %269 = arith.mulf %267, %268 : vector<4x4x32xf32>
    %270 = arith.addf %264, %269 : vector<4x4x32xf32>
    %271 = vector.extract_strided_slice %233 {offsets = [6, 0], sizes = [1, 32], strides = [1, 1]} : vector<9x32xf32> to vector<1x32xf32>
    %272 = vector.shape_cast %271 : vector<1x32xf32> to vector<1x1x32xf32>
    %c2_177 = arith.constant 2 : index
    %c0_178 = arith.constant 0 : index
    %c0_179 = arith.constant 0 : index
    %273 = vector.load %arg7[%c2_177, %c0_178, %c0_179] : memref<6x6x32xf32, #tpu.memory_space<vmem>>, vector<4x4x32xf32>
    %274 = vector.broadcast %272 : vector<1x1x32xf32> to vector<4x4x32xf32>
    %275 = arith.mulf %273, %274 : vector<4x4x32xf32>
    %276 = arith.addf %270, %275 : vector<4x4x32xf32>
    %277 = vector.extract_strided_slice %233 {offsets = [7, 0], sizes = [1, 32], strides = [1, 1]} : vector<9x32xf32> to vector<1x32xf32>
    %278 = vector.shape_cast %277 : vector<1x32xf32> to vector<1x1x32xf32>
    %c2_180 = arith.constant 2 : index
    %c1_181 = arith.constant 1 : index
    %c0_182 = arith.constant 0 : index
    %279 = vector.load %arg7[%c2_180, %c1_181, %c0_182] : memref<6x6x32xf32, #tpu.memory_space<vmem>>, vector<4x4x32xf32>
    %280 = vector.broadcast %278 : vector<1x1x32xf32> to vector<4x4x32xf32>
    %281 = arith.mulf %279, %280 : vector<4x4x32xf32>
    %282 = arith.addf %276, %281 : vector<4x4x32xf32>
    %283 = vector.extract_strided_slice %233 {offsets = [8, 0], sizes = [1, 32], strides = [1, 1]} : vector<9x32xf32> to vector<1x32xf32>
    %284 = vector.shape_cast %283 : vector<1x32xf32> to vector<1x1x32xf32>
    %c2_183 = arith.constant 2 : index
    %c2_184 = arith.constant 2 : index
    %c0_185 = arith.constant 0 : index
    %285 = vector.load %arg7[%c2_183, %c2_184, %c0_185] : memref<6x6x32xf32, #tpu.memory_space<vmem>>, vector<4x4x32xf32>
    %286 = vector.broadcast %284 : vector<1x1x32xf32> to vector<4x4x32xf32>
    %287 = arith.mulf %285, %286 : vector<4x4x32xf32>
    %288 = arith.addf %282, %287 : vector<4x4x32xf32>
    %289 = vector.shape_cast %288 : vector<4x4x32xf32> to vector<16x32xf32>
    %c112 = arith.constant 112 : index
    %c0_186 = arith.constant 0 : index
    %290 = vector.load %arg3[%c112, %c0_186] : memref<297x144xf32, #tpu.memory_space<vmem>>, vector<1x32xf32>
    %291 = vector.broadcast %290 : vector<1x32xf32> to vector<16x32xf32>
    %292 = arith.addf %289, %291 : vector<16x32xf32>
    %cst_187 = arith.constant 0.000000e+00 : f32
    %293 = vector.broadcast %cst_187 : f32 to vector<16x32xf32>
    %294 = arith.cmpf oge, %292, %293 : vector<16x32xf32>
    %cst_188 = arith.constant 2.500000e-01 : f32
    %295 = vector.broadcast %cst_188 : f32 to vector<16x32xf32>
    %296 = arith.mulf %295, %292 : vector<16x32xf32>
    %297 = arith.select %294, %292, %296 : vector<16x32xi1>, vector<16x32xf32>
    %cst_189 = arith.constant dense<0.000000e+00> : vector<32xf32>
    %298 = vector.multi_reduction <add>, %297, %cst_189 [0] : vector<16x32xf32> to vector<32xf32>
    %299 = vector.shape_cast %298 : vector<32xf32> to vector<1x32xf32>
    %cst_190 = arith.constant 1.600000e+01 : f32
    %300 = vector.broadcast %cst_190 : f32 to vector<1x32xf32>
    %301 = arith.divf %299, %300 : vector<1x32xf32>
    %302 = arith.truncf %301 : vector<1x32xf32> to vector<1x32xbf16>
    %c104 = arith.constant 104 : index
    %c0_191 = arith.constant 0 : index
    %303 = vector.load %arg2[%c104, %c0_191] : memref<720x144xbf16, #tpu.memory_space<vmem>>, vector<32x8xbf16>
    %cst_192 = arith.constant dense<0.000000e+00> : vector<1x8xf32>
    %304 = tpu.matmul %302, %303, %cst_192 {dimension_numbers = #tpu.dot_dimension_numbers<[1], [0], [0], [1], [0, 0, 1, 1], [], []>} : vector<1x32xbf16>, vector<32x8xbf16>, vector<1x8xf32> -> vector<1x8xf32>
    %c120 = arith.constant 120 : index
    %c0_193 = arith.constant 0 : index
    %305 = vector.load %arg3[%c120, %c0_193] : memref<297x144xf32, #tpu.memory_space<vmem>>, vector<1x8xf32>
    %306 = arith.addf %304, %305 : vector<1x8xf32>
    %cst_194 = arith.constant 0.000000e+00 : f32
    %307 = vector.broadcast %cst_194 : f32 to vector<1x8xf32>
    %308 = arith.maximumf %306, %307 : vector<1x8xf32>
    %309 = arith.truncf %308 : vector<1x8xf32> to vector<1x8xbf16>
    %c136 = arith.constant 136 : index
    %c0_195 = arith.constant 0 : index
    %310 = vector.load %arg2[%c136, %c0_195] : memref<720x144xbf16, #tpu.memory_space<vmem>>, vector<8x32xbf16>
    %cst_196 = arith.constant dense<0.000000e+00> : vector<1x32xf32>
    %311 = tpu.matmul %309, %310, %cst_196 {dimension_numbers = #tpu.dot_dimension_numbers<[1], [0], [0], [1], [0, 0, 1, 1], [], []>} : vector<1x8xbf16>, vector<8x32xbf16>, vector<1x32xf32> -> vector<1x32xf32>
    %c128 = arith.constant 128 : index
    %c0_197 = arith.constant 0 : index
    %312 = vector.load %arg3[%c128, %c0_197] : memref<297x144xf32, #tpu.memory_space<vmem>>, vector<1x32xf32>
    %313 = arith.addf %311, %312 : vector<1x32xf32>
    %cst_198 = arith.constant 6.000000e+00 : f32
    %314 = vector.broadcast %cst_198 : f32 to vector<1x32xf32>
    %315 = arith.divf %313, %314 : vector<1x32xf32>
    %cst_199 = arith.constant 5.000000e-01 : f32
    %316 = vector.broadcast %cst_199 : f32 to vector<1x32xf32>
    %317 = arith.addf %315, %316 : vector<1x32xf32>
    %cst_200 = arith.constant 0.000000e+00 : f32
    %cst_201 = arith.constant 1.000000e+00 : f32
    %318 = vector.broadcast %cst_200 : f32 to vector<1x32xf32>
    %319 = arith.maximumf %318, %317 : vector<1x32xf32>
    %320 = vector.broadcast %cst_201 : f32 to vector<1x32xf32>
    %321 = arith.minimumf %320, %319 : vector<1x32xf32>
    %322 = vector.broadcast %321 : vector<1x32xf32> to vector<16x32xf32>
    %323 = arith.mulf %297, %322 : vector<16x32xf32>
    %324 = arith.truncf %323 : vector<16x32xf32> to vector<16x32xbf16>
    %c144 = arith.constant 144 : index
    %c0_202 = arith.constant 0 : index
    %325 = vector.load %arg2[%c144, %c0_202] : memref<720x144xbf16, #tpu.memory_space<vmem>>, vector<32x16xbf16>
    %cst_203 = arith.constant dense<0.000000e+00> : vector<16x16xf32>
    %326 = tpu.matmul %324, %325, %cst_203 {dimension_numbers = #tpu.dot_dimension_numbers<[1], [0], [0], [1], [0, 0, 1, 1], [], []>} : vector<16x32xbf16>, vector<32x16xbf16>, vector<16x16xf32> -> vector<16x16xf32>
    %c136_204 = arith.constant 136 : index
    %c0_205 = arith.constant 0 : index
    %327 = vector.load %arg3[%c136_204, %c0_205] : memref<297x144xf32, #tpu.memory_space<vmem>>, vector<1x16xf32>
    %328 = vector.broadcast %327 : vector<1x16xf32> to vector<16x16xf32>
    %329 = arith.addf %326, %328 : vector<16x16xf32>
    %330 = arith.addf %329, %197 : vector<16x16xf32>
    %331 = arith.truncf %330 : vector<16x16xf32> to vector<16x16xbf16>
    %c176 = arith.constant 176 : index
    %c0_206 = arith.constant 0 : index
    %332 = vector.load %arg2[%c176, %c0_206] : memref<720x144xbf16, #tpu.memory_space<vmem>>, vector<16x48xbf16>
    %cst_207 = arith.constant dense<0.000000e+00> : vector<16x48xf32>
    %333 = tpu.matmul %331, %332, %cst_207 {dimension_numbers = #tpu.dot_dimension_numbers<[1], [0], [0], [1], [0, 0, 1, 1], [], []>} : vector<16x16xbf16>, vector<16x48xbf16>, vector<16x48xf32> -> vector<16x48xf32>
    %c144_208 = arith.constant 144 : index
    %c0_209 = arith.constant 0 : index
    %334 = vector.load %arg3[%c144_208, %c0_209] : memref<297x144xf32, #tpu.memory_space<vmem>>, vector<1x48xf32>
    %335 = vector.broadcast %334 : vector<1x48xf32> to vector<16x48xf32>
    %336 = arith.addf %333, %335 : vector<16x48xf32>
    %cst_210 = arith.constant 0.000000e+00 : f32
    %337 = vector.broadcast %cst_210 : f32 to vector<16x48xf32>
    %338 = arith.cmpf oge, %336, %337 : vector<16x48xf32>
    %cst_211 = arith.constant 2.500000e-01 : f32
    %339 = vector.broadcast %cst_211 : f32 to vector<16x48xf32>
    %340 = arith.mulf %339, %336 : vector<16x48xf32>
    %341 = arith.select %338, %336, %340 : vector<16x48xi1>, vector<16x48xf32>
    %cst_212 = arith.constant 0.000000e+00 : f32
    %342 = vector.broadcast %cst_212 : f32 to vector<2x8x48xf32>
    %c0_213 = arith.constant 0 : index
    %c0_214 = arith.constant 0 : index
    %c0_215 = arith.constant 0 : index
    %343 = vector.load %arg8[%c0_213, %c0_214, %c0_215] : memref<8x8x48xf32, #tpu.memory_space<vmem>>, vector<2x8x48xf32>
    tpu.vector_store %arg8[%c0_213, %c0_214, %c0_215], %342 {strides = array<i32>} : memref<8x8x48xf32, #tpu.memory_space<vmem>>, vector<2x8x48xf32>,
    %cst_216 = arith.constant 0.000000e+00 : f32
    %344 = vector.broadcast %cst_216 : f32 to vector<2x8x48xf32>
    %c6 = arith.constant 6 : index
    %c0_217 = arith.constant 0 : index
    %c0_218 = arith.constant 0 : index
    %345 = vector.load %arg8[%c6, %c0_217, %c0_218] : memref<8x8x48xf32, #tpu.memory_space<vmem>>, vector<2x8x48xf32>
    tpu.vector_store %arg8[%c6, %c0_217, %c0_218], %344 {strides = array<i32>} : memref<8x8x48xf32, #tpu.memory_space<vmem>>, vector<2x8x48xf32>,
    %cst_219 = arith.constant 0.000000e+00 : f32
    %346 = vector.broadcast %cst_219 : f32 to vector<4x2x48xf32>
    %c2_220 = arith.constant 2 : index
    %c0_221 = arith.constant 0 : index
    %c0_222 = arith.constant 0 : index
    %347 = vector.load %arg8[%c2_220, %c0_221, %c0_222] : memref<8x8x48xf32, #tpu.memory_space<vmem>>, vector<4x2x48xf32>
    tpu.vector_store %arg8[%c2_220, %c0_221, %c0_222], %346 {strides = array<i32>} : memref<8x8x48xf32, #tpu.memory_space<vmem>>, vector<4x2x48xf32>,
    %cst_223 = arith.constant 0.000000e+00 : f32
    %348 = vector.broadcast %cst_223 : f32 to vector<4x2x48xf32>
    %c2_224 = arith.constant 2 : index
    %c6_225 = arith.constant 6 : index
    %c0_226 = arith.constant 0 : index
    %349 = vector.load %arg8[%c2_224, %c6_225, %c0_226] : memref<8x8x48xf32, #tpu.memory_space<vmem>>, vector<4x2x48xf32>
    tpu.vector_store %arg8[%c2_224, %c6_225, %c0_226], %348 {strides = array<i32>} : memref<8x8x48xf32, #tpu.memory_space<vmem>>, vector<4x2x48xf32>,
    %350 = vector.extract_strided_slice %341 {offsets = [0, 0], sizes = [4, 48], strides = [1, 1]} : vector<16x48xf32> to vector<4x48xf32>
    %c2_227 = arith.constant 2 : index
    %c2_228 = arith.constant 2 : index
    %c0_229 = arith.constant 0 : index
    %351 = vector.load %arg8[%c2_227, %c2_228, %c0_229] : memref<8x8x48xf32, #tpu.memory_space<vmem>>, vector<1x4x48xf32>
    %352 = vector.shape_cast %351 : vector<1x4x48xf32> to vector<4x48xf32>
    %353 = vector.shape_cast %350 : vector<4x48xf32> to vector<1x4x48xf32>
    tpu.vector_store %arg8[%c2_227, %c2_228, %c0_229], %353 {strides = array<i32>} : memref<8x8x48xf32, #tpu.memory_space<vmem>>, vector<1x4x48xf32>,
    %354 = vector.extract_strided_slice %341 {offsets = [4, 0], sizes = [4, 48], strides = [1, 1]} : vector<16x48xf32> to vector<4x48xf32>
    %c3_230 = arith.constant 3 : index
    %c2_231 = arith.constant 2 : index
    %c0_232 = arith.constant 0 : index
    %355 = vector.load %arg8[%c3_230, %c2_231, %c0_232] : memref<8x8x48xf32, #tpu.memory_space<vmem>>, vector<1x4x48xf32>
    %356 = vector.shape_cast %355 : vector<1x4x48xf32> to vector<4x48xf32>
    %357 = vector.shape_cast %354 : vector<4x48xf32> to vector<1x4x48xf32>
    tpu.vector_store %arg8[%c3_230, %c2_231, %c0_232], %357 {strides = array<i32>} : memref<8x8x48xf32, #tpu.memory_space<vmem>>, vector<1x4x48xf32>,
    %358 = vector.extract_strided_slice %341 {offsets = [8, 0], sizes = [4, 48], strides = [1, 1]} : vector<16x48xf32> to vector<4x48xf32>
    %c4_233 = arith.constant 4 : index
    %c2_234 = arith.constant 2 : index
    %c0_235 = arith.constant 0 : index
    %359 = vector.load %arg8[%c4_233, %c2_234, %c0_235] : memref<8x8x48xf32, #tpu.memory_space<vmem>>, vector<1x4x48xf32>
    %360 = vector.shape_cast %359 : vector<1x4x48xf32> to vector<4x48xf32>
    %361 = vector.shape_cast %358 : vector<4x48xf32> to vector<1x4x48xf32>
    tpu.vector_store %arg8[%c4_233, %c2_234, %c0_235], %361 {strides = array<i32>} : memref<8x8x48xf32, #tpu.memory_space<vmem>>, vector<1x4x48xf32>,
    %362 = vector.extract_strided_slice %341 {offsets = [12, 0], sizes = [4, 48], strides = [1, 1]} : vector<16x48xf32> to vector<4x48xf32>
    %c5_236 = arith.constant 5 : index
    %c2_237 = arith.constant 2 : index
    %c0_238 = arith.constant 0 : index
    %363 = vector.load %arg8[%c5_236, %c2_237, %c0_238] : memref<8x8x48xf32, #tpu.memory_space<vmem>>, vector<1x4x48xf32>
    %364 = vector.shape_cast %363 : vector<1x4x48xf32> to vector<4x48xf32>
    %365 = vector.shape_cast %362 : vector<4x48xf32> to vector<1x4x48xf32>
    tpu.vector_store %arg8[%c5_236, %c2_237, %c0_238], %365 {strides = array<i32>} : memref<8x8x48xf32, #tpu.memory_space<vmem>>, vector<1x4x48xf32>,
    %c152 = arith.constant 152 : index
    %c0_239 = arith.constant 0 : index
    %366 = vector.load %arg3[%c152, %c0_239] : memref<297x144xf32, #tpu.memory_space<vmem>>, vector<25x48xf32>
    %cst_240 = arith.constant 0.000000e+00 : f32
    %367 = vector.broadcast %cst_240 : f32 to vector<2x2x48xf32>
    %368 = vector.extract_strided_slice %366 {offsets = [0, 0], sizes = [1, 48], strides = [1, 1]} : vector<25x48xf32> to vector<1x48xf32>
    %369 = vector.shape_cast %368 : vector<1x48xf32> to vector<1x1x48xf32>
    %c0_241 = arith.constant 0 : index
    %c0_242 = arith.constant 0 : index
    %c0_243 = arith.constant 0 : index
    %370 = tpu.strided_load %arg8[%c0_241, %c0_242, %c0_243] {strides = array<i32: 2, 2, 1>} : memref<8x8x48xf32, #tpu.memory_space<vmem>>, vector<2x2x48xf32>
    %371 = vector.broadcast %369 : vector<1x1x48xf32> to vector<2x2x48xf32>
    %372 = arith.mulf %370, %371 : vector<2x2x48xf32>
    %373 = arith.addf %367, %372 : vector<2x2x48xf32>
    %374 = vector.extract_strided_slice %366 {offsets = [1, 0], sizes = [1, 48], strides = [1, 1]} : vector<25x48xf32> to vector<1x48xf32>
    %375 = vector.shape_cast %374 : vector<1x48xf32> to vector<1x1x48xf32>
    %c0_244 = arith.constant 0 : index
    %c1_245 = arith.constant 1 : index
    %c0_246 = arith.constant 0 : index
    %376 = tpu.strided_load %arg8[%c0_244, %c1_245, %c0_246] {strides = array<i32: 2, 2, 1>} : memref<8x8x48xf32, #tpu.memory_space<vmem>>, vector<2x2x48xf32>
    %377 = vector.broadcast %375 : vector<1x1x48xf32> to vector<2x2x48xf32>
    %378 = arith.mulf %376, %377 : vector<2x2x48xf32>
    %379 = arith.addf %373, %378 : vector<2x2x48xf32>
    %380 = vector.extract_strided_slice %366 {offsets = [2, 0], sizes = [1, 48], strides = [1, 1]} : vector<25x48xf32> to vector<1x48xf32>
    %381 = vector.shape_cast %380 : vector<1x48xf32> to vector<1x1x48xf32>
    %c0_247 = arith.constant 0 : index
    %c2_248 = arith.constant 2 : index
    %c0_249 = arith.constant 0 : index
    %382 = tpu.strided_load %arg8[%c0_247, %c2_248, %c0_249] {strides = array<i32: 2, 2, 1>} : memref<8x8x48xf32, #tpu.memory_space<vmem>>, vector<2x2x48xf32>
    %383 = vector.broadcast %381 : vector<1x1x48xf32> to vector<2x2x48xf32>
    %384 = arith.mulf %382, %383 : vector<2x2x48xf32>
    %385 = arith.addf %379, %384 : vector<2x2x48xf32>
    %386 = vector.extract_strided_slice %366 {offsets = [3, 0], sizes = [1, 48], strides = [1, 1]} : vector<25x48xf32> to vector<1x48xf32>
    %387 = vector.shape_cast %386 : vector<1x48xf32> to vector<1x1x48xf32>
    %c0_250 = arith.constant 0 : index
    %c3_251 = arith.constant 3 : index
    %c0_252 = arith.constant 0 : index
    %388 = tpu.strided_load %arg8[%c0_250, %c3_251, %c0_252] {strides = array<i32: 2, 2, 1>} : memref<8x8x48xf32, #tpu.memory_space<vmem>>, vector<2x2x48xf32>
    %389 = vector.broadcast %387 : vector<1x1x48xf32> to vector<2x2x48xf32>
    %390 = arith.mulf %388, %389 : vector<2x2x48xf32>
    %391 = arith.addf %385, %390 : vector<2x2x48xf32>
    %392 = vector.extract_strided_slice %366 {offsets = [4, 0], sizes = [1, 48], strides = [1, 1]} : vector<25x48xf32> to vector<1x48xf32>
    %393 = vector.shape_cast %392 : vector<1x48xf32> to vector<1x1x48xf32>
    %c0_253 = arith.constant 0 : index
    %c4_254 = arith.constant 4 : index
    %c0_255 = arith.constant 0 : index
    %394 = tpu.strided_load %arg8[%c0_253, %c4_254, %c0_255] {strides = array<i32: 2, 2, 1>} : memref<8x8x48xf32, #tpu.memory_space<vmem>>, vector<2x2x48xf32>
    %395 = vector.broadcast %393 : vector<1x1x48xf32> to vector<2x2x48xf32>
    %396 = arith.mulf %394, %395 : vector<2x2x48xf32>
    %397 = arith.addf %391, %396 : vector<2x2x48xf32>
    %398 = vector.extract_strided_slice %366 {offsets = [5, 0], sizes = [1, 48], strides = [1, 1]} : vector<25x48xf32> to vector<1x48xf32>
    %399 = vector.shape_cast %398 : vector<1x48xf32> to vector<1x1x48xf32>
    %c1_256 = arith.constant 1 : index
    %c0_257 = arith.constant 0 : index
    %c0_258 = arith.constant 0 : index
    %400 = tpu.strided_load %arg8[%c1_256, %c0_257, %c0_258] {strides = array<i32: 2, 2, 1>} : memref<8x8x48xf32, #tpu.memory_space<vmem>>, vector<2x2x48xf32>
    %401 = vector.broadcast %399 : vector<1x1x48xf32> to vector<2x2x48xf32>
    %402 = arith.mulf %400, %401 : vector<2x2x48xf32>
    %403 = arith.addf %397, %402 : vector<2x2x48xf32>
    %404 = vector.extract_strided_slice %366 {offsets = [6, 0], sizes = [1, 48], strides = [1, 1]} : vector<25x48xf32> to vector<1x48xf32>
    %405 = vector.shape_cast %404 : vector<1x48xf32> to vector<1x1x48xf32>
    %c1_259 = arith.constant 1 : index
    %c1_260 = arith.constant 1 : index
    %c0_261 = arith.constant 0 : index
    %406 = tpu.strided_load %arg8[%c1_259, %c1_260, %c0_261] {strides = array<i32: 2, 2, 1>} : memref<8x8x48xf32, #tpu.memory_space<vmem>>, vector<2x2x48xf32>
    %407 = vector.broadcast %405 : vector<1x1x48xf32> to vector<2x2x48xf32>
    %408 = arith.mulf %406, %407 : vector<2x2x48xf32>
    %409 = arith.addf %403, %408 : vector<2x2x48xf32>
    %410 = vector.extract_strided_slice %366 {offsets = [7, 0], sizes = [1, 48], strides = [1, 1]} : vector<25x48xf32> to vector<1x48xf32>
    %411 = vector.shape_cast %410 : vector<1x48xf32> to vector<1x1x48xf32>
    %c1_262 = arith.constant 1 : index
    %c2_263 = arith.constant 2 : index
    %c0_264 = arith.constant 0 : index
    %412 = tpu.strided_load %arg8[%c1_262, %c2_263, %c0_264] {strides = array<i32: 2, 2, 1>} : memref<8x8x48xf32, #tpu.memory_space<vmem>>, vector<2x2x48xf32>
    %413 = vector.broadcast %411 : vector<1x1x48xf32> to vector<2x2x48xf32>
    %414 = arith.mulf %412, %413 : vector<2x2x48xf32>
    %415 = arith.addf %409, %414 : vector<2x2x48xf32>
    %416 = vector.extract_strided_slice %366 {offsets = [8, 0], sizes = [1, 48], strides = [1, 1]} : vector<25x48xf32> to vector<1x48xf32>
    %417 = vector.shape_cast %416 : vector<1x48xf32> to vector<1x1x48xf32>
    %c1_265 = arith.constant 1 : index
    %c3_266 = arith.constant 3 : index
    %c0_267 = arith.constant 0 : index
    %418 = tpu.strided_load %arg8[%c1_265, %c3_266, %c0_267] {strides = array<i32: 2, 2, 1>} : memref<8x8x48xf32, #tpu.memory_space<vmem>>, vector<2x2x48xf32>
    %419 = vector.broadcast %417 : vector<1x1x48xf32> to vector<2x2x48xf32>
    %420 = arith.mulf %418, %419 : vector<2x2x48xf32>
    %421 = arith.addf %415, %420 : vector<2x2x48xf32>
    %422 = vector.extract_strided_slice %366 {offsets = [9, 0], sizes = [1, 48], strides = [1, 1]} : vector<25x48xf32> to vector<1x48xf32>
    %423 = vector.shape_cast %422 : vector<1x48xf32> to vector<1x1x48xf32>
    %c1_268 = arith.constant 1 : index
    %c4_269 = arith.constant 4 : index
    %c0_270 = arith.constant 0 : index
    %424 = tpu.strided_load %arg8[%c1_268, %c4_269, %c0_270] {strides = array<i32: 2, 2, 1>} : memref<8x8x48xf32, #tpu.memory_space<vmem>>, vector<2x2x48xf32>
    %425 = vector.broadcast %423 : vector<1x1x48xf32> to vector<2x2x48xf32>
    %426 = arith.mulf %424, %425 : vector<2x2x48xf32>
    %427 = arith.addf %421, %426 : vector<2x2x48xf32>
    %428 = vector.extract_strided_slice %366 {offsets = [10, 0], sizes = [1, 48], strides = [1, 1]} : vector<25x48xf32> to vector<1x48xf32>
    %429 = vector.shape_cast %428 : vector<1x48xf32> to vector<1x1x48xf32>
    %c2_271 = arith.constant 2 : index
    %c0_272 = arith.constant 0 : index
    %c0_273 = arith.constant 0 : index
    %430 = tpu.strided_load %arg8[%c2_271, %c0_272, %c0_273] {strides = array<i32: 2, 2, 1>} : memref<8x8x48xf32, #tpu.memory_space<vmem>>, vector<2x2x48xf32>
    %431 = vector.broadcast %429 : vector<1x1x48xf32> to vector<2x2x48xf32>
    %432 = arith.mulf %430, %431 : vector<2x2x48xf32>
    %433 = arith.addf %427, %432 : vector<2x2x48xf32>
    %434 = vector.extract_strided_slice %366 {offsets = [11, 0], sizes = [1, 48], strides = [1, 1]} : vector<25x48xf32> to vector<1x48xf32>
    %435 = vector.shape_cast %434 : vector<1x48xf32> to vector<1x1x48xf32>
    %c2_274 = arith.constant 2 : index
    %c1_275 = arith.constant 1 : index
    %c0_276 = arith.constant 0 : index
    %436 = tpu.strided_load %arg8[%c2_274, %c1_275, %c0_276] {strides = array<i32: 2, 2, 1>} : memref<8x8x48xf32, #tpu.memory_space<vmem>>, vector<2x2x48xf32>
    %437 = vector.broadcast %435 : vector<1x1x48xf32> to vector<2x2x48xf32>
    %438 = arith.mulf %436, %437 : vector<2x2x48xf32>
    %439 = arith.addf %433, %438 : vector<2x2x48xf32>
    %440 = vector.extract_strided_slice %366 {offsets = [12, 0], sizes = [1, 48], strides = [1, 1]} : vector<25x48xf32> to vector<1x48xf32>
    %441 = vector.shape_cast %440 : vector<1x48xf32> to vector<1x1x48xf32>
    %c2_277 = arith.constant 2 : index
    %c2_278 = arith.constant 2 : index
    %c0_279 = arith.constant 0 : index
    %442 = tpu.strided_load %arg8[%c2_277, %c2_278, %c0_279] {strides = array<i32: 2, 2, 1>} : memref<8x8x48xf32, #tpu.memory_space<vmem>>, vector<2x2x48xf32>
    %443 = vector.broadcast %441 : vector<1x1x48xf32> to vector<2x2x48xf32>
    %444 = arith.mulf %442, %443 : vector<2x2x48xf32>
    %445 = arith.addf %439, %444 : vector<2x2x48xf32>
    %446 = vector.extract_strided_slice %366 {offsets = [13, 0], sizes = [1, 48], strides = [1, 1]} : vector<25x48xf32> to vector<1x48xf32>
    %447 = vector.shape_cast %446 : vector<1x48xf32> to vector<1x1x48xf32>
    %c2_280 = arith.constant 2 : index
    %c3_281 = arith.constant 3 : index
    %c0_282 = arith.constant 0 : index
    %448 = tpu.strided_load %arg8[%c2_280, %c3_281, %c0_282] {strides = array<i32: 2, 2, 1>} : memref<8x8x48xf32, #tpu.memory_space<vmem>>, vector<2x2x48xf32>
    %449 = vector.broadcast %447 : vector<1x1x48xf32> to vector<2x2x48xf32>
    %450 = arith.mulf %448, %449 : vector<2x2x48xf32>
    %451 = arith.addf %445, %450 : vector<2x2x48xf32>
    %452 = vector.extract_strided_slice %366 {offsets = [14, 0], sizes = [1, 48], strides = [1, 1]} : vector<25x48xf32> to vector<1x48xf32>
    %453 = vector.shape_cast %452 : vector<1x48xf32> to vector<1x1x48xf32>
    %c2_283 = arith.constant 2 : index
    %c4_284 = arith.constant 4 : index
    %c0_285 = arith.constant 0 : index
    %454 = tpu.strided_load %arg8[%c2_283, %c4_284, %c0_285] {strides = array<i32: 2, 2, 1>} : memref<8x8x48xf32, #tpu.memory_space<vmem>>, vector<2x2x48xf32>
    %455 = vector.broadcast %453 : vector<1x1x48xf32> to vector<2x2x48xf32>
    %456 = arith.mulf %454, %455 : vector<2x2x48xf32>
    %457 = arith.addf %451, %456 : vector<2x2x48xf32>
    %458 = vector.extract_strided_slice %366 {offsets = [15, 0], sizes = [1, 48], strides = [1, 1]} : vector<25x48xf32> to vector<1x48xf32>
    %459 = vector.shape_cast %458 : vector<1x48xf32> to vector<1x1x48xf32>
    %c3_286 = arith.constant 3 : index
    %c0_287 = arith.constant 0 : index
    %c0_288 = arith.constant 0 : index
    %460 = tpu.strided_load %arg8[%c3_286, %c0_287, %c0_288] {strides = array<i32: 2, 2, 1>} : memref<8x8x48xf32, #tpu.memory_space<vmem>>, vector<2x2x48xf32>
    %461 = vector.broadcast %459 : vector<1x1x48xf32> to vector<2x2x48xf32>
    %462 = arith.mulf %460, %461 : vector<2x2x48xf32>
    %463 = arith.addf %457, %462 : vector<2x2x48xf32>
    %464 = vector.extract_strided_slice %366 {offsets = [16, 0], sizes = [1, 48], strides = [1, 1]} : vector<25x48xf32> to vector<1x48xf32>
    %465 = vector.shape_cast %464 : vector<1x48xf32> to vector<1x1x48xf32>
    %c3_289 = arith.constant 3 : index
    %c1_290 = arith.constant 1 : index
    %c0_291 = arith.constant 0 : index
    %466 = tpu.strided_load %arg8[%c3_289, %c1_290, %c0_291] {strides = array<i32: 2, 2, 1>} : memref<8x8x48xf32, #tpu.memory_space<vmem>>, vector<2x2x48xf32>
    %467 = vector.broadcast %465 : vector<1x1x48xf32> to vector<2x2x48xf32>
    %468 = arith.mulf %466, %467 : vector<2x2x48xf32>
    %469 = arith.addf %463, %468 : vector<2x2x48xf32>
    %470 = vector.extract_strided_slice %366 {offsets = [17, 0], sizes = [1, 48], strides = [1, 1]} : vector<25x48xf32> to vector<1x48xf32>
    %471 = vector.shape_cast %470 : vector<1x48xf32> to vector<1x1x48xf32>
    %c3_292 = arith.constant 3 : index
    %c2_293 = arith.constant 2 : index
    %c0_294 = arith.constant 0 : index
    %472 = tpu.strided_load %arg8[%c3_292, %c2_293, %c0_294] {strides = array<i32: 2, 2, 1>} : memref<8x8x48xf32, #tpu.memory_space<vmem>>, vector<2x2x48xf32>
    %473 = vector.broadcast %471 : vector<1x1x48xf32> to vector<2x2x48xf32>
    %474 = arith.mulf %472, %473 : vector<2x2x48xf32>
    %475 = arith.addf %469, %474 : vector<2x2x48xf32>
    %476 = vector.extract_strided_slice %366 {offsets = [18, 0], sizes = [1, 48], strides = [1, 1]} : vector<25x48xf32> to vector<1x48xf32>
    %477 = vector.shape_cast %476 : vector<1x48xf32> to vector<1x1x48xf32>
    %c3_295 = arith.constant 3 : index
    %c3_296 = arith.constant 3 : index
    %c0_297 = arith.constant 0 : index
    %478 = tpu.strided_load %arg8[%c3_295, %c3_296, %c0_297] {strides = array<i32: 2, 2, 1>} : memref<8x8x48xf32, #tpu.memory_space<vmem>>, vector<2x2x48xf32>
    %479 = vector.broadcast %477 : vector<1x1x48xf32> to vector<2x2x48xf32>
    %480 = arith.mulf %478, %479 : vector<2x2x48xf32>
    %481 = arith.addf %475, %480 : vector<2x2x48xf32>
    %482 = vector.extract_strided_slice %366 {offsets = [19, 0], sizes = [1, 48], strides = [1, 1]} : vector<25x48xf32> to vector<1x48xf32>
    %483 = vector.shape_cast %482 : vector<1x48xf32> to vector<1x1x48xf32>
    %c3_298 = arith.constant 3 : index
    %c4_299 = arith.constant 4 : index
    %c0_300 = arith.constant 0 : index
    %484 = tpu.strided_load %arg8[%c3_298, %c4_299, %c0_300] {strides = array<i32: 2, 2, 1>} : memref<8x8x48xf32, #tpu.memory_space<vmem>>, vector<2x2x48xf32>
    %485 = vector.broadcast %483 : vector<1x1x48xf32> to vector<2x2x48xf32>
    %486 = arith.mulf %484, %485 : vector<2x2x48xf32>
    %487 = arith.addf %481, %486 : vector<2x2x48xf32>
    %488 = vector.extract_strided_slice %366 {offsets = [20, 0], sizes = [1, 48], strides = [1, 1]} : vector<25x48xf32> to vector<1x48xf32>
    %489 = vector.shape_cast %488 : vector<1x48xf32> to vector<1x1x48xf32>
    %c4_301 = arith.constant 4 : index
    %c0_302 = arith.constant 0 : index
    %c0_303 = arith.constant 0 : index
    %490 = tpu.strided_load %arg8[%c4_301, %c0_302, %c0_303] {strides = array<i32: 2, 2, 1>} : memref<8x8x48xf32, #tpu.memory_space<vmem>>, vector<2x2x48xf32>
    %491 = vector.broadcast %489 : vector<1x1x48xf32> to vector<2x2x48xf32>
    %492 = arith.mulf %490, %491 : vector<2x2x48xf32>
    %493 = arith.addf %487, %492 : vector<2x2x48xf32>
    %494 = vector.extract_strided_slice %366 {offsets = [21, 0], sizes = [1, 48], strides = [1, 1]} : vector<25x48xf32> to vector<1x48xf32>
    %495 = vector.shape_cast %494 : vector<1x48xf32> to vector<1x1x48xf32>
    %c4_304 = arith.constant 4 : index
    %c1_305 = arith.constant 1 : index
    %c0_306 = arith.constant 0 : index
    %496 = tpu.strided_load %arg8[%c4_304, %c1_305, %c0_306] {strides = array<i32: 2, 2, 1>} : memref<8x8x48xf32, #tpu.memory_space<vmem>>, vector<2x2x48xf32>
    %497 = vector.broadcast %495 : vector<1x1x48xf32> to vector<2x2x48xf32>
    %498 = arith.mulf %496, %497 : vector<2x2x48xf32>
    %499 = arith.addf %493, %498 : vector<2x2x48xf32>
    %500 = vector.extract_strided_slice %366 {offsets = [22, 0], sizes = [1, 48], strides = [1, 1]} : vector<25x48xf32> to vector<1x48xf32>
    %501 = vector.shape_cast %500 : vector<1x48xf32> to vector<1x1x48xf32>
    %c4_307 = arith.constant 4 : index
    %c2_308 = arith.constant 2 : index
    %c0_309 = arith.constant 0 : index
    %502 = tpu.strided_load %arg8[%c4_307, %c2_308, %c0_309] {strides = array<i32: 2, 2, 1>} : memref<8x8x48xf32, #tpu.memory_space<vmem>>, vector<2x2x48xf32>
    %503 = vector.broadcast %501 : vector<1x1x48xf32> to vector<2x2x48xf32>
    %504 = arith.mulf %502, %503 : vector<2x2x48xf32>
    %505 = arith.addf %499, %504 : vector<2x2x48xf32>
    %506 = vector.extract_strided_slice %366 {offsets = [23, 0], sizes = [1, 48], strides = [1, 1]} : vector<25x48xf32> to vector<1x48xf32>
    %507 = vector.shape_cast %506 : vector<1x48xf32> to vector<1x1x48xf32>
    %c4_310 = arith.constant 4 : index
    %c3_311 = arith.constant 3 : index
    %c0_312 = arith.constant 0 : index
    %508 = tpu.strided_load %arg8[%c4_310, %c3_311, %c0_312] {strides = array<i32: 2, 2, 1>} : memref<8x8x48xf32, #tpu.memory_space<vmem>>, vector<2x2x48xf32>
    %509 = vector.broadcast %507 : vector<1x1x48xf32> to vector<2x2x48xf32>
    %510 = arith.mulf %508, %509 : vector<2x2x48xf32>
    %511 = arith.addf %505, %510 : vector<2x2x48xf32>
    %512 = vector.extract_strided_slice %366 {offsets = [24, 0], sizes = [1, 48], strides = [1, 1]} : vector<25x48xf32> to vector<1x48xf32>
    %513 = vector.shape_cast %512 : vector<1x48xf32> to vector<1x1x48xf32>
    %c4_313 = arith.constant 4 : index
    %c4_314 = arith.constant 4 : index
    %c0_315 = arith.constant 0 : index
    %514 = tpu.strided_load %arg8[%c4_313, %c4_314, %c0_315] {strides = array<i32: 2, 2, 1>} : memref<8x8x48xf32, #tpu.memory_space<vmem>>, vector<2x2x48xf32>
    %515 = vector.broadcast %513 : vector<1x1x48xf32> to vector<2x2x48xf32>
    %516 = arith.mulf %514, %515 : vector<2x2x48xf32>
    %517 = arith.addf %511, %516 : vector<2x2x48xf32>
    %518 = vector.shape_cast %517 : vector<2x2x48xf32> to vector<4x48xf32>
    %c184 = arith.constant 184 : index
    %c0_316 = arith.constant 0 : index
    %519 = vector.load %arg3[%c184, %c0_316] : memref<297x144xf32, #tpu.memory_space<vmem>>, vector<1x48xf32>
    %520 = vector.broadcast %519 : vector<1x48xf32> to vector<4x48xf32>
    %521 = arith.addf %518, %520 : vector<4x48xf32>
    %cst_317 = arith.constant 0.000000e+00 : f32
    %522 = vector.broadcast %cst_317 : f32 to vector<4x48xf32>
    %523 = arith.cmpf oge, %521, %522 : vector<4x48xf32>
    %cst_318 = arith.constant 2.500000e-01 : f32
    %524 = vector.broadcast %cst_318 : f32 to vector<4x48xf32>
    %525 = arith.mulf %524, %521 : vector<4x48xf32>
    %526 = arith.select %523, %521, %525 : vector<4x48xi1>, vector<4x48xf32>
    %cst_319 = arith.constant dense<0.000000e+00> : vector<48xf32>
    %527 = vector.multi_reduction <add>, %526, %cst_319 [0] : vector<4x48xf32> to vector<48xf32>
    %528 = vector.shape_cast %527 : vector<48xf32> to vector<1x48xf32>
    %cst_320 = arith.constant 4.000000e+00 : f32
    %529 = vector.broadcast %cst_320 : f32 to vector<1x48xf32>
    %530 = arith.divf %528, %529 : vector<1x48xf32>
    %531 = arith.truncf %530 : vector<1x48xf32> to vector<1x48xbf16>
    %c192 = arith.constant 192 : index
    %c0_321 = arith.constant 0 : index
    %532 = vector.load %arg2[%c192, %c0_321] : memref<720x144xbf16, #tpu.memory_space<vmem>>, vector<48x16xbf16>
    %cst_322 = arith.constant dense<0.000000e+00> : vector<1x16xf32>
    %533 = tpu.matmul %531, %532, %cst_322 {dimension_numbers = #tpu.dot_dimension_numbers<[1], [0], [0], [1], [0, 0, 1, 1], [], []>} : vector<1x48xbf16>, vector<48x16xbf16>, vector<1x16xf32> -> vector<1x16xf32>
    %c192_323 = arith.constant 192 : index
    %c0_324 = arith.constant 0 : index
    %534 = vector.load %arg3[%c192_323, %c0_324] : memref<297x144xf32, #tpu.memory_space<vmem>>, vector<1x16xf32>
    %535 = arith.addf %533, %534 : vector<1x16xf32>
    %cst_325 = arith.constant 0.000000e+00 : f32
    %536 = vector.broadcast %cst_325 : f32 to vector<1x16xf32>
    %537 = arith.maximumf %535, %536 : vector<1x16xf32>
    %538 = arith.truncf %537 : vector<1x16xf32> to vector<1x16xbf16>
    %c240 = arith.constant 240 : index
    %c0_326 = arith.constant 0 : index
    %539 = vector.load %arg2[%c240, %c0_326] : memref<720x144xbf16, #tpu.memory_space<vmem>>, vector<16x48xbf16>
    %cst_327 = arith.constant dense<0.000000e+00> : vector<1x48xf32>
    %540 = tpu.matmul %538, %539, %cst_327 {dimension_numbers = #tpu.dot_dimension_numbers<[1], [0], [0], [1], [0, 0, 1, 1], [], []>} : vector<1x16xbf16>, vector<16x48xbf16>, vector<1x48xf32> -> vector<1x48xf32>
    %c200 = arith.constant 200 : index
    %c0_328 = arith.constant 0 : index
    %541 = vector.load %arg3[%c200, %c0_328] : memref<297x144xf32, #tpu.memory_space<vmem>>, vector<1x48xf32>
    %542 = arith.addf %540, %541 : vector<1x48xf32>
    %cst_329 = arith.constant 6.000000e+00 : f32
    %543 = vector.broadcast %cst_329 : f32 to vector<1x48xf32>
    %544 = arith.divf %542, %543 : vector<1x48xf32>
    %cst_330 = arith.constant 5.000000e-01 : f32
    %545 = vector.broadcast %cst_330 : f32 to vector<1x48xf32>
    %546 = arith.addf %544, %545 : vector<1x48xf32>
    %cst_331 = arith.constant 0.000000e+00 : f32
    %cst_332 = arith.constant 1.000000e+00 : f32
    %547 = vector.broadcast %cst_331 : f32 to vector<1x48xf32>
    %548 = arith.maximumf %547, %546 : vector<1x48xf32>
    %549 = vector.broadcast %cst_332 : f32 to vector<1x48xf32>
    %550 = arith.minimumf %549, %548 : vector<1x48xf32>
    %551 = vector.broadcast %550 : vector<1x48xf32> to vector<4x48xf32>
    %552 = arith.mulf %526, %551 : vector<4x48xf32>
    %553 = arith.truncf %552 : vector<4x48xf32> to vector<4x48xbf16>
    %c256 = arith.constant 256 : index
    %c0_333 = arith.constant 0 : index
    %554 = vector.load %arg2[%c256, %c0_333] : memref<720x144xbf16, #tpu.memory_space<vmem>>, vector<48x24xbf16>
    %cst_334 = arith.constant dense<0.000000e+00> : vector<4x24xf32>
    %555 = tpu.matmul %553, %554, %cst_334 {dimension_numbers = #tpu.dot_dimension_numbers<[1], [0], [0], [1], [0, 0, 1, 1], [], []>} : vector<4x48xbf16>, vector<48x24xbf16>, vector<4x24xf32> -> vector<4x24xf32>
    %c208 = arith.constant 208 : index
    %c0_335 = arith.constant 0 : index
    %556 = vector.load %arg3[%c208, %c0_335] : memref<297x144xf32, #tpu.memory_space<vmem>>, vector<1x24xf32>
    %557 = vector.broadcast %556 : vector<1x24xf32> to vector<4x24xf32>
    %558 = arith.addf %555, %557 : vector<4x24xf32>
    %559 = arith.truncf %558 : vector<4x24xf32> to vector<4x24xbf16>
    %c304 = arith.constant 304 : index
    %c0_336 = arith.constant 0 : index
    %560 = vector.load %arg2[%c304, %c0_336] : memref<720x144xbf16, #tpu.memory_space<vmem>>, vector<24x48xbf16>
    %cst_337 = arith.constant dense<0.000000e+00> : vector<4x48xf32>
    %561 = tpu.matmul %559, %560, %cst_337 {dimension_numbers = #tpu.dot_dimension_numbers<[1], [0], [0], [1], [0, 0, 1, 1], [], []>} : vector<4x24xbf16>, vector<24x48xbf16>, vector<4x48xf32> -> vector<4x48xf32>
    %c216 = arith.constant 216 : index
    %c0_338 = arith.constant 0 : index
    %562 = vector.load %arg3[%c216, %c0_338] : memref<297x144xf32, #tpu.memory_space<vmem>>, vector<1x48xf32>
    %563 = vector.broadcast %562 : vector<1x48xf32> to vector<4x48xf32>
    %564 = arith.addf %561, %563 : vector<4x48xf32>
    %cst_339 = arith.constant 0.000000e+00 : f32
    %565 = vector.broadcast %cst_339 : f32 to vector<4x48xf32>
    %566 = arith.cmpf oge, %564, %565 : vector<4x48xf32>
    %cst_340 = arith.constant 2.500000e-01 : f32
    %567 = vector.broadcast %cst_340 : f32 to vector<4x48xf32>
    %568 = arith.mulf %567, %564 : vector<4x48xf32>
    %569 = arith.select %566, %564, %568 : vector<4x48xi1>, vector<4x48xf32>
    %cst_341 = arith.constant 0.000000e+00 : f32
    %570 = vector.broadcast %cst_341 : f32 to vector<1x4x48xf32>
    %c0_342 = arith.constant 0 : index
    %c0_343 = arith.constant 0 : index
    %c0_344 = arith.constant 0 : index
    %571 = vector.load %arg9[%c0_342, %c0_343, %c0_344] : memref<4x4x48xf32, #tpu.memory_space<vmem>>, vector<1x4x48xf32>
    tpu.vector_store %arg9[%c0_342, %c0_343, %c0_344], %570 {strides = array<i32>} : memref<4x4x48xf32, #tpu.memory_space<vmem>>, vector<1x4x48xf32>,
    %cst_345 = arith.constant 0.000000e+00 : f32
    %572 = vector.broadcast %cst_345 : f32 to vector<1x4x48xf32>
    %c3_346 = arith.constant 3 : index
    %c0_347 = arith.constant 0 : index
    %c0_348 = arith.constant 0 : index
    %573 = vector.load %arg9[%c3_346, %c0_347, %c0_348] : memref<4x4x48xf32, #tpu.memory_space<vmem>>, vector<1x4x48xf32>
    tpu.vector_store %arg9[%c3_346, %c0_347, %c0_348], %572 {strides = array<i32>} : memref<4x4x48xf32, #tpu.memory_space<vmem>>, vector<1x4x48xf32>,
    %cst_349 = arith.constant 0.000000e+00 : f32
    %574 = vector.broadcast %cst_349 : f32 to vector<2x1x48xf32>
    %c1_350 = arith.constant 1 : index
    %c0_351 = arith.constant 0 : index
    %c0_352 = arith.constant 0 : index
    %575 = vector.load %arg9[%c1_350, %c0_351, %c0_352] : memref<4x4x48xf32, #tpu.memory_space<vmem>>, vector<2x1x48xf32>
    tpu.vector_store %arg9[%c1_350, %c0_351, %c0_352], %574 {strides = array<i32>} : memref<4x4x48xf32, #tpu.memory_space<vmem>>, vector<2x1x48xf32>,
    %cst_353 = arith.constant 0.000000e+00 : f32
    %576 = vector.broadcast %cst_353 : f32 to vector<2x1x48xf32>
    %c1_354 = arith.constant 1 : index
    %c3_355 = arith.constant 3 : index
    %c0_356 = arith.constant 0 : index
    %577 = vector.load %arg9[%c1_354, %c3_355, %c0_356] : memref<4x4x48xf32, #tpu.memory_space<vmem>>, vector<2x1x48xf32>
    tpu.vector_store %arg9[%c1_354, %c3_355, %c0_356], %576 {strides = array<i32>} : memref<4x4x48xf32, #tpu.memory_space<vmem>>, vector<2x1x48xf32>,
    %578 = vector.extract_strided_slice %569 {offsets = [0, 0], sizes = [2, 48], strides = [1, 1]} : vector<4x48xf32> to vector<2x48xf32>
    %c1_357 = arith.constant 1 : index
    %c1_358 = arith.constant 1 : index
    %c0_359 = arith.constant 0 : index
    %579 = vector.load %arg9[%c1_357, %c1_358, %c0_359] : memref<4x4x48xf32, #tpu.memory_space<vmem>>, vector<1x2x48xf32>
    %580 = vector.shape_cast %579 : vector<1x2x48xf32> to vector<2x48xf32>
    %581 = vector.shape_cast %578 : vector<2x48xf32> to vector<1x2x48xf32>
    tpu.vector_store %arg9[%c1_357, %c1_358, %c0_359], %581 {strides = array<i32>} : memref<4x4x48xf32, #tpu.memory_space<vmem>>, vector<1x2x48xf32>,
    %582 = vector.extract_strided_slice %569 {offsets = [2, 0], sizes = [2, 48], strides = [1, 1]} : vector<4x48xf32> to vector<2x48xf32>
    %c2_360 = arith.constant 2 : index
    %c1_361 = arith.constant 1 : index
    %c0_362 = arith.constant 0 : index
    %583 = vector.load %arg9[%c2_360, %c1_361, %c0_362] : memref<4x4x48xf32, #tpu.memory_space<vmem>>, vector<1x2x48xf32>
    %584 = vector.shape_cast %583 : vector<1x2x48xf32> to vector<2x48xf32>
    %585 = vector.shape_cast %582 : vector<2x48xf32> to vector<1x2x48xf32>
    tpu.vector_store %arg9[%c2_360, %c1_361, %c0_362], %585 {strides = array<i32>} : memref<4x4x48xf32, #tpu.memory_space<vmem>>, vector<1x2x48xf32>,
    %c224 = arith.constant 224 : index
    %c0_363 = arith.constant 0 : index
    %586 = vector.load %arg3[%c224, %c0_363] : memref<297x144xf32, #tpu.memory_space<vmem>>, vector<9x48xf32>
    %cst_364 = arith.constant 0.000000e+00 : f32
    %587 = vector.broadcast %cst_364 : f32 to vector<2x2x48xf32>
    %588 = vector.extract_strided_slice %586 {offsets = [0, 0], sizes = [1, 48], strides = [1, 1]} : vector<9x48xf32> to vector<1x48xf32>
    %589 = vector.shape_cast %588 : vector<1x48xf32> to vector<1x1x48xf32>
    %c0_365 = arith.constant 0 : index
    %c0_366 = arith.constant 0 : index
    %c0_367 = arith.constant 0 : index
    %590 = vector.load %arg9[%c0_365, %c0_366, %c0_367] : memref<4x4x48xf32, #tpu.memory_space<vmem>>, vector<2x2x48xf32>
    %591 = vector.broadcast %589 : vector<1x1x48xf32> to vector<2x2x48xf32>
    %592 = arith.mulf %590, %591 : vector<2x2x48xf32>
    %593 = arith.addf %587, %592 : vector<2x2x48xf32>
    %594 = vector.extract_strided_slice %586 {offsets = [1, 0], sizes = [1, 48], strides = [1, 1]} : vector<9x48xf32> to vector<1x48xf32>
    %595 = vector.shape_cast %594 : vector<1x48xf32> to vector<1x1x48xf32>
    %c0_368 = arith.constant 0 : index
    %c1_369 = arith.constant 1 : index
    %c0_370 = arith.constant 0 : index
    %596 = vector.load %arg9[%c0_368, %c1_369, %c0_370] : memref<4x4x48xf32, #tpu.memory_space<vmem>>, vector<2x2x48xf32>
    %597 = vector.broadcast %595 : vector<1x1x48xf32> to vector<2x2x48xf32>
    %598 = arith.mulf %596, %597 : vector<2x2x48xf32>
    %599 = arith.addf %593, %598 : vector<2x2x48xf32>
    %600 = vector.extract_strided_slice %586 {offsets = [2, 0], sizes = [1, 48], strides = [1, 1]} : vector<9x48xf32> to vector<1x48xf32>
    %601 = vector.shape_cast %600 : vector<1x48xf32> to vector<1x1x48xf32>
    %c0_371 = arith.constant 0 : index
    %c2_372 = arith.constant 2 : index
    %c0_373 = arith.constant 0 : index
    %602 = vector.load %arg9[%c0_371, %c2_372, %c0_373] : memref<4x4x48xf32, #tpu.memory_space<vmem>>, vector<2x2x48xf32>
    %603 = vector.broadcast %601 : vector<1x1x48xf32> to vector<2x2x48xf32>
    %604 = arith.mulf %602, %603 : vector<2x2x48xf32>
    %605 = arith.addf %599, %604 : vector<2x2x48xf32>
    %606 = vector.extract_strided_slice %586 {offsets = [3, 0], sizes = [1, 48], strides = [1, 1]} : vector<9x48xf32> to vector<1x48xf32>
    %607 = vector.shape_cast %606 : vector<1x48xf32> to vector<1x1x48xf32>
    %c1_374 = arith.constant 1 : index
    %c0_375 = arith.constant 0 : index
    %c0_376 = arith.constant 0 : index
    %608 = vector.load %arg9[%c1_374, %c0_375, %c0_376] : memref<4x4x48xf32, #tpu.memory_space<vmem>>, vector<2x2x48xf32>
    %609 = vector.broadcast %607 : vector<1x1x48xf32> to vector<2x2x48xf32>
    %610 = arith.mulf %608, %609 : vector<2x2x48xf32>
    %611 = arith.addf %605, %610 : vector<2x2x48xf32>
    %612 = vector.extract_strided_slice %586 {offsets = [4, 0], sizes = [1, 48], strides = [1, 1]} : vector<9x48xf32> to vector<1x48xf32>
    %613 = vector.shape_cast %612 : vector<1x48xf32> to vector<1x1x48xf32>
    %c1_377 = arith.constant 1 : index
    %c1_378 = arith.constant 1 : index
    %c0_379 = arith.constant 0 : index
    %614 = vector.load %arg9[%c1_377, %c1_378, %c0_379] : memref<4x4x48xf32, #tpu.memory_space<vmem>>, vector<2x2x48xf32>
    %615 = vector.broadcast %613 : vector<1x1x48xf32> to vector<2x2x48xf32>
    %616 = arith.mulf %614, %615 : vector<2x2x48xf32>
    %617 = arith.addf %611, %616 : vector<2x2x48xf32>
    %618 = vector.extract_strided_slice %586 {offsets = [5, 0], sizes = [1, 48], strides = [1, 1]} : vector<9x48xf32> to vector<1x48xf32>
    %619 = vector.shape_cast %618 : vector<1x48xf32> to vector<1x1x48xf32>
    %c1_380 = arith.constant 1 : index
    %c2_381 = arith.constant 2 : index
    %c0_382 = arith.constant 0 : index
    %620 = vector.load %arg9[%c1_380, %c2_381, %c0_382] : memref<4x4x48xf32, #tpu.memory_space<vmem>>, vector<2x2x48xf32>
    %621 = vector.broadcast %619 : vector<1x1x48xf32> to vector<2x2x48xf32>
    %622 = arith.mulf %620, %621 : vector<2x2x48xf32>
    %623 = arith.addf %617, %622 : vector<2x2x48xf32>
    %624 = vector.extract_strided_slice %586 {offsets = [6, 0], sizes = [1, 48], strides = [1, 1]} : vector<9x48xf32> to vector<1x48xf32>
    %625 = vector.shape_cast %624 : vector<1x48xf32> to vector<1x1x48xf32>
    %c2_383 = arith.constant 2 : index
    %c0_384 = arith.constant 0 : index
    %c0_385 = arith.constant 0 : index
    %626 = vector.load %arg9[%c2_383, %c0_384, %c0_385] : memref<4x4x48xf32, #tpu.memory_space<vmem>>, vector<2x2x48xf32>
    %627 = vector.broadcast %625 : vector<1x1x48xf32> to vector<2x2x48xf32>
    %628 = arith.mulf %626, %627 : vector<2x2x48xf32>
    %629 = arith.addf %623, %628 : vector<2x2x48xf32>
    %630 = vector.extract_strided_slice %586 {offsets = [7, 0], sizes = [1, 48], strides = [1, 1]} : vector<9x48xf32> to vector<1x48xf32>
    %631 = vector.shape_cast %630 : vector<1x48xf32> to vector<1x1x48xf32>
    %c2_386 = arith.constant 2 : index
    %c1_387 = arith.constant 1 : index
    %c0_388 = arith.constant 0 : index
    %632 = vector.load %arg9[%c2_386, %c1_387, %c0_388] : memref<4x4x48xf32, #tpu.memory_space<vmem>>, vector<2x2x48xf32>
    %633 = vector.broadcast %631 : vector<1x1x48xf32> to vector<2x2x48xf32>
    %634 = arith.mulf %632, %633 : vector<2x2x48xf32>
    %635 = arith.addf %629, %634 : vector<2x2x48xf32>
    %636 = vector.extract_strided_slice %586 {offsets = [8, 0], sizes = [1, 48], strides = [1, 1]} : vector<9x48xf32> to vector<1x48xf32>
    %637 = vector.shape_cast %636 : vector<1x48xf32> to vector<1x1x48xf32>
    %c2_389 = arith.constant 2 : index
    %c2_390 = arith.constant 2 : index
    %c0_391 = arith.constant 0 : index
    %638 = vector.load %arg9[%c2_389, %c2_390, %c0_391] : memref<4x4x48xf32, #tpu.memory_space<vmem>>, vector<2x2x48xf32>
    %639 = vector.broadcast %637 : vector<1x1x48xf32> to vector<2x2x48xf32>
    %640 = arith.mulf %638, %639 : vector<2x2x48xf32>
    %641 = arith.addf %635, %640 : vector<2x2x48xf32>
    %642 = vector.shape_cast %641 : vector<2x2x48xf32> to vector<4x48xf32>
    %c240_392 = arith.constant 240 : index
    %c0_393 = arith.constant 0 : index
    %643 = vector.load %arg3[%c240_392, %c0_393] : memref<297x144xf32, #tpu.memory_space<vmem>>, vector<1x48xf32>
    %644 = vector.broadcast %643 : vector<1x48xf32> to vector<4x48xf32>
    %645 = arith.addf %642, %644 : vector<4x48xf32>
    %cst_394 = arith.constant 0.000000e+00 : f32
    %646 = vector.broadcast %cst_394 : f32 to vector<4x48xf32>
    %647 = arith.cmpf oge, %645, %646 : vector<4x48xf32>
    %cst_395 = arith.constant 2.500000e-01 : f32
    %648 = vector.broadcast %cst_395 : f32 to vector<4x48xf32>
    %649 = arith.mulf %648, %645 : vector<4x48xf32>
    %650 = arith.select %647, %645, %649 : vector<4x48xi1>, vector<4x48xf32>
    %cst_396 = arith.constant dense<0.000000e+00> : vector<48xf32>
    %651 = vector.multi_reduction <add>, %650, %cst_396 [0] : vector<4x48xf32> to vector<48xf32>
    %652 = vector.shape_cast %651 : vector<48xf32> to vector<1x48xf32>
    %cst_397 = arith.constant 4.000000e+00 : f32
    %653 = vector.broadcast %cst_397 : f32 to vector<1x48xf32>
    %654 = arith.divf %652, %653 : vector<1x48xf32>
    %655 = arith.truncf %654 : vector<1x48xf32> to vector<1x48xbf16>
    %c328 = arith.constant 328 : index
    %c0_398 = arith.constant 0 : index
    %656 = vector.load %arg2[%c328, %c0_398] : memref<720x144xbf16, #tpu.memory_space<vmem>>, vector<48x16xbf16>
    %cst_399 = arith.constant dense<0.000000e+00> : vector<1x16xf32>
    %657 = tpu.matmul %655, %656, %cst_399 {dimension_numbers = #tpu.dot_dimension_numbers<[1], [0], [0], [1], [0, 0, 1, 1], [], []>} : vector<1x48xbf16>, vector<48x16xbf16>, vector<1x16xf32> -> vector<1x16xf32>
    %c248 = arith.constant 248 : index
    %c0_400 = arith.constant 0 : index
    %658 = vector.load %arg3[%c248, %c0_400] : memref<297x144xf32, #tpu.memory_space<vmem>>, vector<1x16xf32>
    %659 = arith.addf %657, %658 : vector<1x16xf32>
    %cst_401 = arith.constant 0.000000e+00 : f32
    %660 = vector.broadcast %cst_401 : f32 to vector<1x16xf32>
    %661 = arith.maximumf %659, %660 : vector<1x16xf32>
    %662 = arith.truncf %661 : vector<1x16xf32> to vector<1x16xbf16>
    %c376 = arith.constant 376 : index
    %c0_402 = arith.constant 0 : index
    %663 = vector.load %arg2[%c376, %c0_402] : memref<720x144xbf16, #tpu.memory_space<vmem>>, vector<16x48xbf16>
    %cst_403 = arith.constant dense<0.000000e+00> : vector<1x48xf32>
    %664 = tpu.matmul %662, %663, %cst_403 {dimension_numbers = #tpu.dot_dimension_numbers<[1], [0], [0], [1], [0, 0, 1, 1], [], []>} : vector<1x16xbf16>, vector<16x48xbf16>, vector<1x48xf32> -> vector<1x48xf32>
    %c256_404 = arith.constant 256 : index
    %c0_405 = arith.constant 0 : index
    %665 = vector.load %arg3[%c256_404, %c0_405] : memref<297x144xf32, #tpu.memory_space<vmem>>, vector<1x48xf32>
    %666 = arith.addf %664, %665 : vector<1x48xf32>
    %cst_406 = arith.constant 6.000000e+00 : f32
    %667 = vector.broadcast %cst_406 : f32 to vector<1x48xf32>
    %668 = arith.divf %666, %667 : vector<1x48xf32>
    %cst_407 = arith.constant 5.000000e-01 : f32
    %669 = vector.broadcast %cst_407 : f32 to vector<1x48xf32>
    %670 = arith.addf %668, %669 : vector<1x48xf32>
    %cst_408 = arith.constant 0.000000e+00 : f32
    %cst_409 = arith.constant 1.000000e+00 : f32
    %671 = vector.broadcast %cst_408 : f32 to vector<1x48xf32>
    %672 = arith.maximumf %671, %670 : vector<1x48xf32>
    %673 = vector.broadcast %cst_409 : f32 to vector<1x48xf32>
    %674 = arith.minimumf %673, %672 : vector<1x48xf32>
    %675 = vector.broadcast %674 : vector<1x48xf32> to vector<4x48xf32>
    %676 = arith.mulf %650, %675 : vector<4x48xf32>
    %677 = arith.truncf %676 : vector<4x48xf32> to vector<4x48xbf16>
    %c392 = arith.constant 392 : index
    %c0_410 = arith.constant 0 : index
    %678 = vector.load %arg2[%c392, %c0_410] : memref<720x144xbf16, #tpu.memory_space<vmem>>, vector<48x24xbf16>
    %cst_411 = arith.constant dense<0.000000e+00> : vector<4x24xf32>
    %679 = tpu.matmul %677, %678, %cst_411 {dimension_numbers = #tpu.dot_dimension_numbers<[1], [0], [0], [1], [0, 0, 1, 1], [], []>} : vector<4x48xbf16>, vector<48x24xbf16>, vector<4x24xf32> -> vector<4x24xf32>
    %c264 = arith.constant 264 : index
    %c0_412 = arith.constant 0 : index
    %680 = vector.load %arg3[%c264, %c0_412] : memref<297x144xf32, #tpu.memory_space<vmem>>, vector<1x24xf32>
    %681 = vector.broadcast %680 : vector<1x24xf32> to vector<4x24xf32>
    %682 = arith.addf %679, %681 : vector<4x24xf32>
    %683 = arith.addf %682, %558 : vector<4x24xf32>
    %684 = arith.truncf %683 : vector<4x24xf32> to vector<4x24xbf16>
    %c440 = arith.constant 440 : index
    %c0_413 = arith.constant 0 : index
    %685 = vector.load %arg2[%c440, %c0_413] : memref<720x144xbf16, #tpu.memory_space<vmem>>, vector<24x24xbf16>
    %cst_414 = arith.constant dense<0.000000e+00> : vector<4x24xf32>
    %686 = tpu.matmul %684, %685, %cst_414 {dimension_numbers = #tpu.dot_dimension_numbers<[1], [0], [0], [1], [0, 0, 1, 1], [], []>} : vector<4x24xbf16>, vector<24x24xbf16>, vector<4x24xf32> -> vector<4x24xf32>
    %687 = arith.truncf %558 : vector<4x24xf32> to vector<4x24xbf16>
    %c464 = arith.constant 464 : index
    %c0_415 = arith.constant 0 : index
    %688 = vector.load %arg2[%c464, %c0_415] : memref<720x144xbf16, #tpu.memory_space<vmem>>, vector<24x24xbf16>
    %cst_416 = arith.constant dense<0.000000e+00> : vector<4x24xf32>
    %689 = tpu.matmul %687, %688, %cst_416 {dimension_numbers = #tpu.dot_dimension_numbers<[1], [0], [0], [1], [0, 0, 1, 1], [], []>} : vector<4x24xbf16>, vector<24x24xbf16>, vector<4x24xf32> -> vector<4x24xf32>
    %690 = arith.addf %686, %689 : vector<4x24xf32>
    %c272 = arith.constant 272 : index
    %c0_417 = arith.constant 0 : index
    %691 = vector.load %arg3[%c272, %c0_417] : memref<297x144xf32, #tpu.memory_space<vmem>>, vector<1x24xf32>
    %692 = vector.broadcast %691 : vector<1x24xf32> to vector<4x24xf32>
    %693 = arith.addf %690, %692 : vector<4x24xf32>
    %cst_418 = arith.constant 0.000000e+00 : f32
    %694 = vector.broadcast %cst_418 : f32 to vector<4x24xf32>
    %695 = arith.cmpf oge, %693, %694 : vector<4x24xf32>
    %cst_419 = arith.constant 2.500000e-01 : f32
    %696 = vector.broadcast %cst_419 : f32 to vector<4x24xf32>
    %697 = arith.mulf %696, %693 : vector<4x24xf32>
    %698 = arith.select %695, %693, %697 : vector<4x24xi1>, vector<4x24xf32>
    %699 = arith.truncf %698 : vector<4x24xf32> to vector<4x24xbf16>
    %c488 = arith.constant 488 : index
    %c0_420 = arith.constant 0 : index
    %700 = vector.load %arg2[%c488, %c0_420] : memref<720x144xbf16, #tpu.memory_space<vmem>>, vector<24x144xbf16>
    %cst_421 = arith.constant dense<0.000000e+00> : vector<4x144xf32>
    %701 = tpu.matmul %699, %700, %cst_421 {dimension_numbers = #tpu.dot_dimension_numbers<[1], [0], [0], [1], [0, 0, 1, 1], [], []>} : vector<4x24xbf16>, vector<24x144xbf16>, vector<4x144xf32> -> vector<4x144xf32>
    %c280 = arith.constant 280 : index
    %c0_422 = arith.constant 0 : index
    %702 = vector.load %arg3[%c280, %c0_422] : memref<297x144xf32, #tpu.memory_space<vmem>>, vector<1x144xf32>
    %703 = vector.broadcast %702 : vector<1x144xf32> to vector<4x144xf32>
    %704 = arith.addf %701, %703 : vector<4x144xf32>
    %cst_423 = arith.constant 0.000000e+00 : f32
    %705 = vector.broadcast %cst_423 : f32 to vector<4x144xf32>
    %706 = arith.cmpf oge, %704, %705 : vector<4x144xf32>
    %cst_424 = arith.constant 2.500000e-01 : f32
    %707 = vector.broadcast %cst_424 : f32 to vector<4x144xf32>
    %708 = arith.mulf %707, %704 : vector<4x144xf32>
    %709 = arith.select %706, %704, %708 : vector<4x144xi1>, vector<4x144xf32>
    %cst_425 = arith.constant dense<0.000000e+00> : vector<144xf32>
    %710 = vector.multi_reduction <add>, %709, %cst_425 [0] : vector<4x144xf32> to vector<144xf32>
    %711 = vector.shape_cast %710 : vector<144xf32> to vector<1x144xf32>
    %cst_426 = arith.constant 4.000000e+00 : f32
    %712 = vector.broadcast %cst_426 : f32 to vector<1x144xf32>
    %713 = arith.divf %711, %712 : vector<1x144xf32>
    %714 = arith.truncf %713 : vector<1x144xf32> to vector<1x144xbf16>
    %c512 = arith.constant 512 : index
    %c0_427 = arith.constant 0 : index
    %715 = vector.load %arg2[%c512, %c0_427] : memref<720x144xbf16, #tpu.memory_space<vmem>>, vector<144x64xbf16>
    %cst_428 = arith.constant dense<0.000000e+00> : vector<1x64xf32>
    %716 = tpu.matmul %714, %715, %cst_428 {dimension_numbers = #tpu.dot_dimension_numbers<[1], [0], [0], [1], [0, 0, 1, 1], [], []>} : vector<1x144xbf16>, vector<144x64xbf16>, vector<1x64xf32> -> vector<1x64xf32>
    %c288 = arith.constant 288 : index
    %c0_429 = arith.constant 0 : index
    %717 = vector.load %arg3[%c288, %c0_429] : memref<297x144xf32, #tpu.memory_space<vmem>>, vector<1x64xf32>
    %718 = arith.addf %716, %717 : vector<1x64xf32>
    %cst_430 = arith.constant 0.000000e+00 : f32
    %719 = vector.broadcast %cst_430 : f32 to vector<1x64xf32>
    %720 = arith.cmpf oge, %718, %719 : vector<1x64xf32>
    %cst_431 = arith.constant 2.500000e-01 : f32
    %721 = vector.broadcast %cst_431 : f32 to vector<1x64xf32>
    %722 = arith.mulf %721, %718 : vector<1x64xf32>
    %723 = arith.select %720, %718, %722 : vector<1x64xi1>, vector<1x64xf32>
    %724 = arith.truncf %723 : vector<1x64xf32> to vector<1x64xbf16>
    %c656 = arith.constant 656 : index
    %c0_432 = arith.constant 0 : index
    %725 = vector.load %arg2[%c656, %c0_432] : memref<720x144xbf16, #tpu.memory_space<vmem>>, vector<64x10xbf16>
    %cst_433 = arith.constant dense<0.000000e+00> : vector<1x10xf32>
    %726 = tpu.matmul %724, %725, %cst_433 {dimension_numbers = #tpu.dot_dimension_numbers<[1], [0], [0], [1], [0, 0, 1, 1], [], []>} : vector<1x64xbf16>, vector<64x10xbf16>, vector<1x10xf32> -> vector<1x10xf32>
    %c296 = arith.constant 296 : index
    %c0_434 = arith.constant 0 : index
    %727 = vector.load %arg3[%c296, %c0_434] : memref<297x144xf32, #tpu.memory_space<vmem>>, vector<1x10xf32>
    %728 = arith.addf %726, %727 : vector<1x10xf32>
    %c0_435 = arith.constant 0 : index
    %c0_436 = arith.constant 0 : index
    %c0_437 = arith.constant 0 : index
    %729 = vector.load %arg4[%c0_435, %c0_436, %c0_437] : memref<1x1x10xf32, #tpu.memory_space<vmem>>, vector<1x1x10xf32>
    %730 = vector.shape_cast %729 : vector<1x1x10xf32> to vector<1x10xf32>
    %731 = vector.shape_cast %728 : vector<1x10xf32> to vector<1x1x10xf32>
    tpu.vector_store %arg4[%c0_435, %c0_436, %c0_437], %731 {strides = array<i32>} : memref<1x1x10xf32, #tpu.memory_space<vmem>>, vector<1x1x10xf32>,
    return
  }
  func.func @transform_0(%arg0: i32) -> (i32, i32, i32) {
    %c0_i32 = arith.constant 0 : i32
    %c0_i32_0 = arith.constant 0 : i32
    %c0_i32_1 = arith.constant 0 : i32
    return %arg0, %c0_i32, %c0_i32_0 : i32, i32, i32
  }
  func.func @transform_1(%arg0: i32) -> (i32, i32) {
    %c0_i32 = arith.constant 0 : i32
    %c0_i32_0 = arith.constant 0 : i32
    %c0_i32_1 = arith.constant 0 : i32
    return %c0_i32, %c0_i32_0 : i32, i32
  }
  func.func @transform_2(%arg0: i32) -> (i32, i32) {
    %c0_i32 = arith.constant 0 : i32
    %c0_i32_0 = arith.constant 0 : i32
    %c0_i32_1 = arith.constant 0 : i32
    return %c0_i32, %c0_i32_0 : i32, i32
  }
  func.func @transform_3(%arg0: i32) -> (i32, i32, i32) {
    %c0_i32 = arith.constant 0 : i32
    %c0_i32_0 = arith.constant 0 : i32
    %c0_i32_1 = arith.constant 0 : i32
    return %arg0, %c0_i32, %c0_i32_0 : i32, i32, i32
  }
}

</mosaic_0001>

<bundles_post_ra>
// kernel: mobilenetv3_forward.1
= control target key start
LH: loop header
LB: loop body
LE: loop exit
PB: predicated region body
PF: predicated region fallthrough
CT: control target
= control target key end

     0   :  { %8 = vsyncpa [#allocation8], 0  ;;  %s4863_s0 = inlined_call_operand.vmem [shape: f32[2,64,27], index: 0, kind: input, shape index: {}]   ;;  %s4864_s1 = inlined_call_operand.vmem [shape: bf16[720,144], index: 1, kind: input, shape index: {}]   ;;  %s4865_s2 = inlined_call_operand.vmem [shape: f32[297,144], index: 2, kind: input, shape index: {}]   ;;  %s4866_s3 = inlined_call_operand.hbm [shape: f32[2,1,10], index: 3, kind: output, shape index: {}]  }
   0x1   :  { %10 = vsyncpa [#allocation8 + $0x1], 0  ;;  %s3876_s12 = smov 0   ;;  %s3878_s13 = smov 0  }
   0x2   :  { %s3880_s14 = smov 0   ;;  %s3882_s15 = smov 0  }
   0x3 LB: > { %s3897_s16 = sadd.s32 4294967295, %s3848_s15   ;;  %s3349_s17 = sadd.s32 4294967294, %s3848_s15   ;;  %s3848_s15 = sphi %s3882_s15, %s4878_s15   ;;  %s3844_s14 = sphi %s3880_s14, %s4877_s14   ;;  %s3840_s13 = sphi %s3878_s13, %s4876_s13   ;;  %s3836_s12 = sphi %s3876_s12, %s4875_s12  }
   0x4   : > { %s3901_s18 = sadd.s32 1, %s3848_s15   ;;  %s91_s19 = sadd.s32 1, %s3844_s14 }
   0x5   : > { %s88_s20 = ssub.s32 %s3848_s15, %s3901_s18  ;;  %p101_p0 = scmp.ne.s32.totalorder %s3844_s14, %s3840_s13 }
   0x6   : > { %p89_p1 = scmp.eq.s32.totalorder %s88_s20, 0  ;;  %p102_p2 = scmp.eq.s32.totalorder %s3897_s16, 1 }
   0x7   : > { %p107_p3 = scmp.ne.s32.totalorder %s3840_s13, %s3836_s12  ;;  %p108_p4 = scmp.eq.s32.totalorder %s3349_s17, 1 }
   0x8   : > { %s3912_s21 = scalar_select %p89_p1, %s3844_s14, %s91_s19  }
   0x9   : > { %p3914_p5 = por %p102_p2, %p101_p0  ;;  %p3918_p6 = por %p108_p4, %p107_p3 }
   0xa   : > { %p3352_p7 = scmp.ge.s32.totalorder %s3848_s15, 1  ;;  %p140_p8 = scmp.lt.s32.totalorder %s3848_s15, 3 }
   0xc   : > { %p141_p9 = pnand %p3352_p7, %p140_p8 }
   0xe   : > { %144 = sbr.rel (%p141_p9) target bundleno = 4607 (0x11ff), region = 32 }
  0x13   : > { %vm210_vm0 = vcmask 1044480   ;;  %vm211_vm1 = vcmask 1045504   ;;  %v3739_v0 = vld [vmem:[%s4864_s1 + $0x10] ss:$8 sps:$4 sm:$0x3f]   ;;  %v3850_v1 = vmov 65535   ;;  %v461_v59 = vlaneseq }
  0x14   : > { %v212_v2 = vsel %vm210_vm0, 4294967295, %v3850_v1  ;;  %v3740_v3 = vld [vmem:[%s4864_s1] ss:$8 sps:$4 sm:$0xff]   ;;  %p163_p10 = scmp.lt.s32.totalorder %s3897_s16, 1  ;;  %vm325_vm2 = vcmask 1043456   ;;  %vm197_vm3 = vcmask 220160  }
  0x15   : > { %v213_v4 = vsel %vm211_vm1, %v212_v2, 0  ;;  %v310_v5 = vld [vmem:[%s4864_s1 + $0x20] sm:$0xf]  ;;  %vm312_vm8 = vcmask 64512   ;;  %vm418_vm13 = vcmask 130048   ;;  %vm420_vm14 = vcmask 123904  }
  0x16   : > { %v215_v6 = vand.u32 %v3739_v0, %v213_v4  ;;  %s164_s30 = scalar_select %p163_p10, %s3897_s16, 1  ;;  %v327_v7 = vsel %vm325_vm2, %v310_v5, 0  ;;  %3693 = vmatprep.subr.msk.bf16.mxu1 %vm325_vm2, %v310_v5  ;;  %v185_v21 = vld [vmem:[%s4865_s2] ss:$0 sm:$0xff]  ;;  %v4867_v57 = vmov 0.0   ;;  %vm426_vm15 = vcmask 122880  }
  0x17   : > { %3691 = vmatpush3.bf16.msra.mxu1 %v327_v7  ;;  %419 = vst.msk [vmem:[#allocation2] sm:$0xff] %vm418_vm13, %v4867_v57  ;;  %423 = vst.msk [vmem:[#allocation2 + $0x90] sm:$0xff] %vm418_vm13, %v4867_v57  ;;  %v3741_v58 = vld [vmem:[%s4864_s1 + $0x28] ss:$8 sps:$4 sm:$0xff]   ;;  %v4018_v60 = vshrl.u32 %v461_v59, 7  ;;  %v451_v63 = vld [vmem:[%s4865_s2 + $0x20] sm:$0xff] }
  0x18   : > { %3518 = vmatprep.subr.bf16.mxu0 %v215_v6  ;;  %s3447_s4 = sshll.u32 %s164_s30, 6  ;;  %421 = vst.msk [vmem:[#allocation2 + $0x8] sm:$0x3] %vm420_vm14, %v4867_v57  ;;  %424 = vst.msk [vmem:[#allocation2 + $0x98] sm:$0x3] %vm420_vm14, %v4867_v57  ;;  %3540 = vmatprep.subr.bf16.mxu1 %v3741_v58  ;;  %s161_s20 = sand.u32 1, %s3840_s13  }
  0x19   : > { %3519 = vmatpush3.bf16.msra.mxu0 %v215_v6  ;;  %s167_s7 = scalar_lea.vmem %s4863_s0, %s3447_s4  ;;  %427 = vst.msk [vmem:[#allocation2 + $0x10] sm:$0x1] %vm426_vm15, %v4867_v57  ;;  %428 = vst.msk [vmem:[#allocation2 + $0x20] sm:$0x1] %vm426_vm15, %v4867_v57  ;;  %v4021_v61 = vsub.s32 0, %v4018_v60  ;;  %v4024_v62 = vsub.s32 1, %v4018_v60 }
  0x1a   : > { %3520 = vmatprep.subr.bf16.mxu0 %v3740_v3  ;;  %v169_v8 = vld [vmem:[%s167_s7] sm:$0xff]  ;;  %v170_v9 = vld [vmem:[%s167_s7 + $0x8] sm:$0xff]  ;;  %v171_v10 = vld [vmem:[%s167_s7 + $0x10] sm:$0xff]  ;;  %429 = vst.msk [vmem:[#allocation2 + $0x30] sm:$0x1] %vm426_vm15, %v4867_v57  ;;  %v4041_v4 = vsub.s32 2, %v4018_v60 }
  0x1b   : > { %v177_v11 = vpack.c.bf16 %v170_v9, %v169_v8  ;;  %v172_v12 = vld [vmem:[%s167_s7 + $0x18] sm:$0xff]  ;;  %v173_v13 = vld [vmem:[%s167_s7 + $0x20] sm:$0xff]  ;;  %v174_v14 = vld [vmem:[%s167_s7 + $0x28] sm:$0xff]  ;;  %435 = vst.msk [vmem:[#allocation2 + $0x19] sm:$0x1] %vm426_vm15, %v4867_v57  ;;  %v4035_v2 = vrot.slane %v451_v63, %v4021_v61  ;;  %s3444_s26 = sshll.u32 %s3897_s16, 4 }
  0x1c   : > { %v178_v15 = vpack.c.bf16 %v172_v12, %v171_v10  ;;  %v179_v16 = vpack.c.bf16 %v174_v14, %v173_v13  ;;  %v175_v17 = vld [vmem:[%s167_s7 + $0x30] sm:$0xff]  ;;  %v176_v18 = vld [vmem:[%s167_s7 + $0x38] sm:$0xff]  ;;  %436 = vst.msk [vmem:[#allocation2 + $0x29] sm:$0x1] %vm426_vm15, %v4867_v57  ;;  %437 = vst.msk [vmem:[#allocation2 + $0x39] sm:$0x1] %vm426_vm15, %v4867_v57  ;;  %v4048_v14 = vrot.slane %v451_v63, %v4041_v4  ;;  %s4822_s4 = scalar_lea.hbm %s4866_s3, %s3444_s26 }
  0x1d   : > { %3521 = vmatpush3.bf16.msra.mxu0 %v3740_v3  ;;  %3522 = vmatprep.mubr.msk.bf16.mxu0 %vm197_vm3, %v177_v11  ;;  %v180_v19 = vpack.c.bf16 %v176_v18, %v175_v17  ;;  %430 = vst.msk [vmem:[#allocation2 + $0x40] sm:$0x1] %vm426_vm15, %v4867_v57  ;;  %431 = vst.msk [vmem:[#allocation2 + $0x50] sm:$0x1] %vm426_vm15, %v4867_v57  ;;  %v4032_v0 = vld [vmem:[%s4865_s2 + $0x10] ss:$0 sm:$0xff]  ;;  %v4038_v3 = vrot.slane %v451_v63, %v4024_v62 }
  0x1e   : > { %3692 = vmatprep.subr.msk.bf16.mxu0 %vm325_vm2, %v310_v5  ;;  %432 = vst.msk [vmem:[#allocation2 + $0x60] sm:$0x1] %vm426_vm15, %v4867_v57  ;;  %433 = vst.msk [vmem:[#allocation2 + $0x70] sm:$0x1] %vm426_vm15, %v4867_v57  ;;  %v453_v6 = vld [vmem:[#allocation2] sm:$0xff]  ;;  %s162_s27 = scalar_lea.vmem [#allocation7], %s161_s20 }
  0x1f   : > { %434 = vst.msk [vmem:[#allocation2 + $0x80] sm:$0x1] %vm426_vm15, %v4867_v57  ;;  %438 = vst.msk [vmem:[#allocation2 + $0x49] sm:$0x1] %vm426_vm15, %v4867_v57  ;;  %v465_v12 = vmul.f32 %v4035_v2, %v453_v6  ;;  %v509_v18 = vld [vmem:[#allocation2 + $0x2] sm:$0xff]  ;;  %s3236_s28 = sshll.u32 %s162_s27, 4  ;;  %s4824_s28 = int_to_ptr.vmem [resolvable:$true] %s3236_s28 }
  0x20   : > { %3523 = vmatmul.mubr.msk.bf16.vlgmr.msra.gmra.mxu0 %vm197_vm3, %v178_v15  ;;  %439 = vst.msk [vmem:[#allocation2 + $0x59] sm:$0x1] %vm426_vm15, %v4867_v57  ;;  %440 = vst.msk [vmem:[#allocation2 + $0x69] sm:$0x1] %vm426_vm15, %v4867_v57  ;;  %s3224_s5 = scalar_lea.sflag [#allocation8], %s161_s20  ;;  %s3788_s16 = scalar_lea.vmem %s4824_s28, 16 }
  0x21   : > { %3526 = vmatprep.mubr.msk.bf16.mxu0 %vm197_vm3, %v179_v16  ;;  %3531 = vmatpush3.bf16.msra.mxu0 %v327_v7  ;;  %441 = vst.msk [vmem:[#allocation2 + $0x79] sm:$0x1] %vm426_vm15, %v4867_v57  ;;  %442 = vst.msk [vmem:[#allocation2 + $0x89] sm:$0x1] %vm426_vm15, %v4867_v57  ;;  %v481_v7 = vld [vmem:[#allocation2 + $0x1] sm:$0xff]  ;;  %p3789_p11 = scmp.ne.s32.totalorder %s4824_s28, %s3788_s16  ;;  %s3855_s6 = smov [#allocation7]  }
  0x22   : > { %4872 = vst [vmem:[#allocation10_spill] sm:$0xff] %v4018_v60  ;;  %v493_v13 = vmul.f32 %v4038_v3, %v481_v7  ;;  %s3792_s7 = sshll.u32 %s3855_s6, 4  ;;  %s3793_s7 = int_to_ptr.vmem [resolvable:$false] %s3792_s7 }
  0x23   : > { %p3790_p12 = pnand %p3789_p11, %p3914_p5  ;;  %s3794_s8 = scalar_lea.vmem %s3793_s7, 32 }
  0x24   : > { %p3795_p0 = scmp.lt.s32.totalorder %s4824_s28, %s3793_s7  ;;  %p3796_p1 = scmp.lt.s32.totalorder %s3794_s8, %s3788_s16 }
  0x25   : > { %p3791_p13 = pneg %p3790_p12 }
  0x26   : > { %p3797_p2 = por %p3796_p1, %p3795_p0 }
  0x28   : > { %3527 = vmatmul.mubr.msk.bf16.gmra.mxu0 %vm197_vm3, %v180_v19  ;;  %p3798_p3 = pnand %p3797_p2, %p3791_p13 }
  0xe0   : > { %v3524_v20 = vpop.f32.mrf.mxu0 }
  0xe1   : > { %v260_v24 = vadd.f32 %v3524_v20, %v185_v21  ;;  %v4053_v20 = vsub.s32 3, %v4018_v60 }
  0xe2   : > { %v251_v22 = vpop.f32.mrf.mxu0 }
  0xe3   : > { %v252_v23 = vadd.f32 %v251_v22, %v185_v21  ;;  %v292_v31 = vmul.f32 0.25, %v260_v24  ;;  %vm284_vm6 = vcmp.ge.f32.partialorder %v260_v24, 0.0  ;;  %v4059_v22 = vsub.s32 7, %v4018_v60 }
  0xe4   : > { %v3525_v25 = vpop.f32.mrf.mxu0 }
  0xe5   : > { %v263_v26 = vadd.f32 %v3525_v25, %v185_v21  ;;  %v290_v28 = vmul.f32 0.25, %v252_v23  ;;  %vm282_vm5 = vcmp.ge.f32.partialorder %v252_v23, 0.0  ;;  %v3954_v39 = vsel %vm284_vm6, %v260_v24, %v292_v31 }
  0xe6   : > { %v254_v27 = vpop.f32.mrf.mxu0 }
  0xe7   : > { %vm285_vm4 = vcmp.ge.f32.partialorder %v263_v26, 0.0  ;;  %v293_v29 = vmul.f32 0.25, %v263_v26  ;;  %v255_v30 = vadd.f32 %v254_v27, %v185_v21  ;;  %v3950_v36 = vsel %vm282_vm5, %v252_v23, %v290_v28 }
  0xe8   : > { %v3528_v32 = vpop.f32.mrf.mxu0  ;;  %v501_v27 = vadd.f32 %v493_v13, %v465_v12  ;;  %v521_v28 = vmul.f32 %v4048_v14, %v509_v18 }
  0xe9   : > { %vm283_vm7 = vcmp.ge.f32.partialorder %v255_v30, 0.0  ;;  %v291_v33 = vmul.f32 0.25, %v255_v30  ;;  %v3948_v34 = vsel %vm285_vm4, %v263_v26, %v293_v29  ;;  %v276_v41 = vadd.f32 %v3528_v32, %v185_v21 }
  0xea   : > { %v267_v35 = vpop.f32.mrf.mxu0  ;;  %v307_v43 = vpack.c.bf16 %v3948_v34, %v3954_v39  ;;  %v4065_v29 = vsub.s32 4, %v4018_v60 }
  0xeb   : > { %v3952_v37 = vsel %vm283_vm7, %v255_v30, %v291_v33  ;;  %v268_v38 = vadd.f32 %v267_v35, %v185_v21  ;;  %v296_v49 = vmul.f32 0.25, %v276_v41  ;;  %vm288_vm11 = vcmp.ge.f32.partialorder %v276_v41, 0.0 }
  0xec   : > { %v306_v40 = vpack.c.bf16 %v3952_v37, %v3950_v36  ;;  %v3529_v42 = vpop.f32.mrf.mxu0  ;;  %v4068_v30 = vsub.s32 5, %v4018_v60 }
  0xed   : > { %v279_v44 = vadd.f32 %v3529_v42, %v185_v21  ;;  %v294_v46 = vmul.f32 0.25, %v268_v38  ;;  %vm286_vm10 = vcmp.ge.f32.partialorder %v268_v38, 0.0  ;;  %v3968_v54 = vsel %vm288_vm11, %v276_v41, %v296_v49 }
  0xee   : > { %v270_v45 = vpop.f32.mrf.mxu0  ;;  %3532 = vmatprep.mubr.msk.bf16.mxu0 %vm312_vm8, %v306_v40  ;;  %v4076_v40 = vrot.slane %v451_v63, %v4059_v22  ;;  %v4092_v49 = vrot.slane %v451_v63, %v4068_v30 }
  0xef   : > { %vm289_vm9 = vcmp.ge.f32.partialorder %v279_v44, 0.0  ;;  %v297_v47 = vmul.f32 0.25, %v279_v44  ;;  %v271_v48 = vadd.f32 %v270_v45, %v185_v21  ;;  %3533 = vmatmul.mubr.msk.bf16.vlgmr.msra.gmra.mxu0 %vm312_vm8, %v307_v43  ;;  %v3964_v52 = vsel %vm286_vm10, %v268_v38, %v294_v46 }
  0xf0   : > { %v4056_v21 = vsub.s32 6, %v4018_v60  ;;  %v529_v46 = vadd.f32 %v521_v28, %v501_v27 }
  0xf1   : > { %v295_v50 = vmul.f32 0.25, %v271_v48  ;;  %vm287_vm12 = vcmp.ge.f32.partialorder %v271_v48, 0.0  ;;  %v3962_v51 = vsel %vm289_vm9, %v279_v44, %v297_v47  ;;  %v4082_v44 = vld [vmem:[%s4865_s2 + $0x30] ss:$0 sm:$0xff]  ;;  %v4086_v47 = vrot.slane %v451_v63, %v4053_v20 }
  0xf2   : > { %v309_v56 = vpack.c.bf16 %v3962_v51, %v3968_v54  ;;  %v4073_v38 = vrot.slane %v451_v63, %v4056_v21 }
  0xf3   : > { %v3966_v53 = vsel %vm287_vm12, %v271_v48, %v295_v50  ;;  %v4089_v48 = vrot.slane %v451_v63, %v4065_v29 }
  0xf4   : > { %v308_v55 = vpack.c.bf16 %v3966_v53, %v3964_v52 }
  0xf6   : > { %3536 = vmatprep.mubr.msk.bf16.mxu1 %vm312_vm8, %v308_v55 }
  0xf7   : > { %3537 = vmatmul.mubr.msk.bf16.vlgmr.msra.gmra.mxu1 %vm312_vm8, %v309_v56 }
  0xf8   : > { %3541 = vmatpush3.bf16.msra.mxu1 %v3741_v58 }
  0xf9   : > { %3560 = vmatprep.subr.bf16.mxu1 %v4867_v57 }
 0x1af   : > { %v3534_v1 = vpop.f32.mrf.mxu0 }
 0x1b0   : > { %v372_v5 = vadd.f32 %v3534_v1, %v4032_v0 }
 0x1b1   : > { %v363_v8 = vpop.f32.mrf.mxu0 }
 0x1b2   : > { %vm396_vm0 = vcmp.ge.f32.partialorder %v372_v5, 0.0  ;;  %v404_v9 = vmul.f32 0.25, %v372_v5  ;;  %v364_v10 = vadd.f32 %v363_v8, %v4032_v0 }
 0x1b3   : > { %v3535_v11 = vpop.f32.mrf.mxu0 }
 0x1b4   : > { %v412_v15 = vsel %vm396_vm0, %v372_v5, %v404_v9  ;;  %vm394_vm1 = vcmp.ge.f32.partialorder %v364_v10, 0.0  ;;  %v402_v16 = vmul.f32 0.25, %v364_v10  ;;  %v375_v17 = vadd.f32 %v3535_v11, %v4032_v0 }
 0x1b5   : > { %445 = vst.msk [vmem:[#allocation2 + $0x31] sm:$0xff] %vm418_vm13, %v412_v15  ;;  %v366_v19 = vpop.f32.mrf.mxu0 }
 0x1b6   : > { %v410_v23 = vsel %vm394_vm1, %v364_v10, %v402_v16  ;;  %vm397_vm3 = vcmp.ge.f32.partialorder %v375_v17, 0.0  ;;  %v405_v24 = vmul.f32 0.25, %v375_v17  ;;  %v367_v25 = vadd.f32 %v366_v19, %v4032_v0 }
 0x1b7   : > { %443 = vst.msk [vmem:[#allocation2 + $0x11] sm:$0xff] %vm418_vm13, %v410_v23  ;;  %v3538_v26 = vpop.f32.mrf.mxu1 }
 0x1b8   : > { %v413_v31 = vsel %vm397_vm3, %v375_v17, %v405_v24  ;;  %vm395_vm4 = vcmp.ge.f32.partialorder %v367_v25, 0.0  ;;  %v403_v32 = vmul.f32 0.25, %v367_v25  ;;  %v388_v33 = vadd.f32 %v3538_v26, %v4032_v0 }
 0x1b9   : > { %446 = vst.msk [vmem:[#allocation2 + $0x41] sm:$0xff] %vm418_vm13, %v413_v31  ;;  %v379_v35 = vpop.f32.mrf.mxu1 }
 0x1ba   : > { %v411_v41 = vsel %vm395_vm4, %v367_v25, %v403_v32  ;;  %vm400_vm5 = vcmp.ge.f32.partialorder %v388_v33, 0.0  ;;  %v408_v42 = vmul.f32 0.25, %v388_v33  ;;  %v380_v43 = vadd.f32 %v379_v35, %v4032_v0 }
 0x1bb   : > { %444 = vst.msk [vmem:[#allocation2 + $0x21] sm:$0xff] %vm418_vm13, %v411_v41  ;;  %v3539_v45 = vpop.f32.mrf.mxu1  ;;  %vm947_vm4 = vcmask 195584  }
 0x1bc   : > { %v416_v50 = vsel %vm400_vm5, %v388_v33, %v408_v42  ;;  %vm398_vm6 = vcmp.ge.f32.partialorder %v380_v43, 0.0  ;;  %v406_v55 = vmul.f32 0.25, %v380_v43  ;;  %v391_v56 = vadd.f32 %v3539_v45, %v4032_v0  ;;  %v623_v58 = vld [vmem:[#allocation2 + $0x30] sm:$0xff] }
 0x1bd   : > { %v651_v59 = vld [vmem:[#allocation2 + $0x31] sm:$0xff]  ;;  %449 = vst.msk [vmem:[#allocation2 + $0x71] sm:$0xff] %vm418_vm13, %v416_v50  ;;  %v382_v5 = vpop.f32.mrf.mxu1  ;;  %v4097_v6 = vmul.f32 %v4073_v38, %v623_v58  ;;  %v468_v8 = vmul.f32 %v623_v58, %v4035_v2  ;;  %vm955_vm5 = vcmask 188416  }
 0x1be   : > { %v679_v1 = vld [vmem:[#allocation2 + $0x32] sm:$0xff]  ;;  %v4100_v7 = vmul.f32 %v4076_v40, %v651_v59  ;;  %v414_v9 = vsel %vm398_vm6, %v380_v43, %v406_v55  ;;  %vm401_vm7 = vcmp.ge.f32.partialorder %v391_v56, 0.0  ;;  %v409_v10 = vmul.f32 0.25, %v391_v56 }
 0x1bf   : > { %v4103_v63 = vmul.f32 %v4082_v44, %v679_v1  ;;  %v383_v11 = vadd.f32 %v382_v5, %v4032_v0  ;;  %v454_v12 = vld [vmem:[#allocation2 + $0x10] sm:$0xff]  ;;  %447 = vst.msk [vmem:[#allocation2 + $0x51] sm:$0xff] %vm418_vm13, %v414_v9  ;;  %v496_v31 = vmul.f32 %v651_v59, %v4038_v3  ;;  %v524_v42 = vmul.f32 %v679_v1, %v4048_v14 }
 0x1c0   : > { %v482_v13 = vld [vmem:[#allocation2 + $0x11] sm:$0xff]  ;;  %v466_v16 = vmul.f32 %v4035_v2, %v454_v12  ;;  %v549_v19 = vmul.f32 %v4086_v47, %v454_v12  ;;  %v417_v23 = vsel %vm401_vm7, %v391_v56, %v409_v10  ;;  %v540_v26 = vld [vmem:[#allocation2 + $0x40] sm:$0xff]  ;;  %v551_v43 = vmul.f32 %v623_v58, %v4086_v47 }
 0x1c1   : > { %v510_v15 = vld [vmem:[#allocation2 + $0x12] sm:$0xff]  ;;  %v494_v17 = vmul.f32 %v4038_v3, %v482_v13  ;;  %vm399_vm9 = vcmp.ge.f32.partialorder %v383_v11, 0.0  ;;  %v407_v24 = vmul.f32 0.25, %v383_v11  ;;  %v577_v25 = vmul.f32 %v4089_v48, %v482_v13  ;;  %450 = vst.msk [vmem:[#allocation2 + $0x81] sm:$0xff] %vm418_vm13, %v417_v23  ;;  %v568_v5 = vld [vmem:[#allocation2 + $0x41] sm:$0xff] }
 0x1c2   : > { %v522_v18 = vmul.f32 %v4048_v14, %v510_v15  ;;  %v557_v27 = vadd.f32 %v549_v19, %v529_v46  ;;  %v605_v28 = vmul.f32 %v4092_v49, %v510_v15  ;;  %v538_v33 = vld [vmem:[#allocation2 + $0x20] sm:$0xff]  ;;  %v552_v45 = vmul.f32 %v4086_v47, %v540_v26 }
 0x1c3   : > { %v502_v0 = vadd.f32 %v494_v17, %v466_v16  ;;  %v415_v32 = vsel %vm399_vm9, %v383_v11, %v407_v24  ;;  %v566_v35 = vld [vmem:[#allocation2 + $0x21] sm:$0xff]  ;;  %v550_v55 = vmul.f32 %v4086_v47, %v538_v33  ;;  %v634_v10 = vmul.f32 %v4073_v38, %v538_v33 }
 0x1c4   : > { %v594_v41 = vld [vmem:[#allocation2 + $0x22] sm:$0xff]  ;;  %448 = vst.msk [vmem:[#allocation2 + $0x61] sm:$0xff] %vm418_vm13, %v415_v32  ;;  %v578_v46 = vmul.f32 %v4089_v48, %v566_v35  ;;  %v585_v56 = vadd.f32 %v577_v25, %v557_v27  ;;  %v662_v11 = vmul.f32 %v4076_v40, %v566_v35  ;;  %v467_v15 = vmul.f32 %v538_v33, %v4035_v2 }
 0x1c5   : > { %v530_v50 = vadd.f32 %v522_v18, %v502_v0  ;;  %v606_v9 = vmul.f32 %v4092_v49, %v594_v41  ;;  %v690_v12 = vmul.f32 %v4082_v44, %v594_v41  ;;  %v495_v16 = vmul.f32 %v566_v35, %v4038_v3  ;;  %v596_v17 = vld [vmem:[#allocation2 + $0x42] sm:$0xff] }
 0x1c6   : > { %v613_v13 = vadd.f32 %v605_v28, %v585_v56  ;;  %v504_v18 = vadd.f32 %v496_v31, %v468_v8  ;;  %v523_v19 = vmul.f32 %v594_v41, %v4048_v14  ;;  %v579_v23 = vmul.f32 %v651_v59, %v4089_v48  ;;  %v625_v25 = vld [vmem:[#allocation2 + $0x50] sm:$0xff] }
 0x1c7   : > { %v558_v58 = vadd.f32 %v550_v55, %v530_v50  ;;  %v580_v24 = vmul.f32 %v4089_v48, %v568_v5  ;;  %v503_v32 = vadd.f32 %v495_v16, %v467_v15  ;;  %v607_v57 = vmul.f32 %v679_v1, %v4092_v49  ;;  %v653_v50 = vld [vmem:[#allocation2 + $0x51] sm:$0xff] }
 0x1c8   : > { %v642_v27 = vadd.f32 %v634_v10, %v613_v13  ;;  %v681_v28 = vld [vmem:[#allocation2 + $0x52] sm:$0xff]  ;;  %v532_v55 = vadd.f32 %v524_v42, %v504_v18  ;;  %v608_v33 = vmul.f32 %v4092_v49, %v596_v17  ;;  %v636_v35 = vmul.f32 %v4073_v38, %v540_v26 }
 0x1c9   : > { %v586_v0 = vadd.f32 %v578_v46, %v558_v58  ;;  %v637_v8 = vmul.f32 %v4073_v38, %v625_v25  ;;  %v531_v59 = vadd.f32 %v523_v19, %v503_v32  ;;  %v664_v56 = vmul.f32 %v4076_v40, %v568_v5  ;;  %v4139_v46 = vld [vmem:[%s4865_s2 + $0x40] ss:$0 sm:$0xff] }
 0x1ca   : > { %v670_v41 = vadd.f32 %v662_v11, %v642_v27  ;;  %v560_v1 = vadd.f32 %v552_v45, %v532_v55  ;;  %v665_v10 = vmul.f32 %v4076_v40, %v653_v50  ;;  %v692_v42 = vmul.f32 %v4082_v44, %v596_v17 }
 0x1cb   : > { %v614_v31 = vadd.f32 %v606_v9, %v586_v0  ;;  %v693_v58 = vmul.f32 %v4082_v44, %v681_v28  ;;  %v559_v9 = vadd.f32 %v551_v43, %v531_v59  ;;  %v469_v11 = vmul.f32 %v540_v26, %v4035_v2  ;;  %v542_v26 = vld [vmem:[#allocation2 + $0x60] sm:$0xff] }
 0x1cc   : > { %v698_v15 = vadd.f32 %v690_v12, %v670_v41  ;;  %v588_v16 = vadd.f32 %v580_v24, %v560_v1  ;;  %v470_v18 = vmul.f32 %v625_v25, %v4035_v2  ;;  %v497_v19 = vmul.f32 %v568_v5, %v4038_v3  ;;  %v570_v41 = vld [vmem:[#allocation2 + $0x61] sm:$0xff] }
 0x1cd   : > { %v643_v13 = vadd.f32 %v4097_v6, %v614_v31  ;;  %v498_v0 = vmul.f32 %v653_v50, %v4038_v3  ;;  %v587_v32 = vadd.f32 %v579_v23, %v559_v9  ;;  %v525_v55 = vmul.f32 %v596_v17, %v4048_v14  ;;  %v598_v9 = vld [vmem:[#allocation2 + $0x62] sm:$0xff] }
 0x1ce   : > { %v707_v27 = vadd.f32 %v4139_v46, %v698_v15  ;;  %v616_v60 = vadd.f32 %v608_v33, %v588_v16  ;;  %v505_v6 = vadd.f32 %v497_v19, %v469_v11  ;;  %v526_v43 = vmul.f32 %v681_v28, %v4048_v14  ;;  %v627_v19 = vld [vmem:[#allocation2 + $0x70] sm:$0xff] }
 0x1cf   : > { %v671_v45 = vadd.f32 %v4100_v7, %v643_v13  ;;  %v506_v12 = vadd.f32 %v498_v0, %v470_v18  ;;  %v615_v5 = vadd.f32 %v607_v57, %v587_v32  ;;  %v553_v13 = vmul.f32 %v625_v25, %v4086_v47 }
 0x1d0   : > { %vm715_vm10 = vcmp.ge.f32.partialorder %v707_v27, 0.0  ;;  %v723_v31 = vmul.f32 0.25, %v707_v27  ;;  %v645_v59 = vadd.f32 %v637_v8, %v616_v60  ;;  %v533_v1 = vadd.f32 %v525_v55, %v505_v6 }
 0x1d1   : > { %v699_v24 = vadd.f32 %v4103_v63, %v671_v45  ;;  %v534_v7 = vadd.f32 %v526_v43, %v506_v12  ;;  %v644_v33 = vadd.f32 %v636_v35, %v615_v5  ;;  %v554_v15 = vmul.f32 %v4086_v47, %v542_v26 }
 0x1d2   : > { %v731_v17 = vsel %vm715_vm10, %v707_v27, %v723_v31  ;;  %v673_v11 = vadd.f32 %v665_v10, %v645_v59  ;;  %v561_v16 = vadd.f32 %v553_v13, %v533_v1  ;;  %v581_v63 = vmul.f32 %v653_v50, %v4089_v48  ;;  %v655_v27 = vld [vmem:[#allocation2 + $0x71] sm:$0xff] }
 0x1d3   : > { %v708_v23 = vadd.f32 %v4139_v46, %v699_v24  ;;  %v582_v18 = vmul.f32 %v4089_v48, %v570_v41  ;;  %v672_v60 = vadd.f32 %v664_v56, %v644_v33  ;;  %v562_v8 = vadd.f32 %v554_v15, %v534_v7  ;;  %v683_v24 = vld [vmem:[#allocation2 + $0x72] sm:$0xff] }
 0x1d4   : > { %v701_v0 = vadd.f32 %v693_v58, %v673_v11  ;;  %v589_v25 = vadd.f32 %v581_v63, %v561_v16  ;;  %v609_v45 = vmul.f32 %v681_v28, %v4092_v49  ;;  %v610_v35 = vmul.f32 %v4092_v49, %v598_v9 }
 0x1d5   : > { %vm716_vm11 = vcmp.ge.f32.partialorder %v708_v23, 0.0  ;;  %v724_v57 = vmul.f32 0.25, %v708_v23  ;;  %v700_v55 = vadd.f32 %v692_v42, %v672_v60  ;;  %v590_v10 = vadd.f32 %v582_v18, %v562_v8  ;;  %v544_v60 = vld [vmem:[#allocation2 + $0x80] sm:$0xff] }
 0x1d6   : > { %v638_v6 = vmul.f32 %v4073_v38, %v542_v26  ;;  %v710_v12 = vadd.f32 %v4139_v46, %v701_v0  ;;  %v617_v43 = vadd.f32 %v609_v45, %v589_v25  ;;  %v639_v56 = vmul.f32 %v4073_v38, %v627_v19 }
 0x1d7   : > { %v732_v32 = vsel %vm716_vm11, %v708_v23, %v724_v57  ;;  %v709_v58 = vadd.f32 %v4139_v46, %v700_v55  ;;  %v618_v31 = vadd.f32 %v610_v35, %v590_v10  ;;  %v666_v28 = vmul.f32 %v4076_v40, %v570_v41  ;;  %v572_v10 = vld [vmem:[#allocation2 + $0x81] sm:$0xff] }
 0x1d8   : > { %v739_v50 = vpack.c.bf16 %v732_v32, %v731_v17  ;;  %v667_v5 = vmul.f32 %v4076_v40, %v655_v27  ;;  %vm718_vm12 = vcmp.ge.f32.partialorder %v710_v12, 0.0  ;;  %v726_v42 = vmul.f32 0.25, %v710_v12 }
 0x1d9   : > { %v646_v59 = vadd.f32 %v638_v6, %v617_v43  ;;  %v694_v1 = vmul.f32 %v4082_v44, %v598_v9  ;;  %vm717_vm14 = vcmp.ge.f32.partialorder %v709_v58, 0.0  ;;  %v725_v7 = vmul.f32 0.25, %v709_v58 }
 0x1da   : > { %3542 = vmatprep.mubr.msk.bf16.mxu1 %vm418_vm13, %v739_v50  ;;  %v647_v13 = vadd.f32 %v639_v56, %v618_v31  ;;  %v695_v23 = vmul.f32 %v4082_v44, %v683_v24  ;;  %v734_v17 = vsel %vm718_vm12, %v710_v12, %v726_v42  ;;  %v471_v15 = vmul.f32 %v542_v26, %v4035_v2  ;;  %v600_v12 = vld [vmem:[#allocation2 + $0x82] sm:$0xff] }
 0x1db   : > { %v674_v33 = vadd.f32 %v666_v28, %v646_v59  ;;  %v472_v11 = vmul.f32 %v627_v19, %v4035_v2  ;;  %v733_v16 = vsel %vm717_vm14, %v709_v58, %v725_v7  ;;  %v499_v18 = vmul.f32 %v570_v41, %v4038_v3 }
 0x1dc   : > { %v675_v63 = vadd.f32 %v667_v5, %v647_v13  ;;  %v500_v57 = vmul.f32 %v655_v27, %v4038_v3  ;;  %v740_v8 = vpack.c.bf16 %v734_v17, %v733_v16  ;;  %v527_v25 = vmul.f32 %v598_v9, %v4048_v14  ;;  %v629_v9 = vld [vmem:[#allocation2 + $0x90] sm:$0xff] }
 0x1dd   : > { %v702_v0 = vadd.f32 %v694_v1, %v674_v33  ;;  %v507_v35 = vadd.f32 %v499_v18, %v471_v15  ;;  %v528_v55 = vmul.f32 %v683_v24, %v4048_v14  ;;  %v556_v26 = vmul.f32 %v4086_v47, %v544_v60  ;;  %v657_v1 = vld [vmem:[#allocation2 + $0x91] sm:$0xff] }
 0x1de   : > { %v703_v45 = vadd.f32 %v695_v23, %v675_v63  ;;  %v508_v32 = vadd.f32 %v500_v57, %v472_v11  ;;  %3543 = vmatmul.mubr.msk.bf16.vlgmr.msra.gmra.mxu1 %vm418_vm13, %v740_v8  ;;  %v555_v50 = vmul.f32 %v627_v19, %v4086_v47  ;;  %v583_v56 = vmul.f32 %v655_v27, %v4089_v48  ;;  %v685_v17 = vld [vmem:[#allocation2 + $0x92] sm:$0xff] }
 0x1df   : > { %v711_v2 = vadd.f32 %v4139_v46, %v702_v0  ;;  %v535_v3 = vadd.f32 %v527_v25, %v507_v35  ;;  %v584_v14 = vmul.f32 %v4089_v48, %v572_v10  ;;  %v611_v5 = vmul.f32 %v683_v24, %v4092_v49 }
 0x1e0   : > { %v712_v41 = vadd.f32 %v4139_v46, %v703_v45  ;;  %v536_v6 = vadd.f32 %v528_v55, %v508_v32  ;;  %v612_v42 = vmul.f32 %v4092_v49, %v600_v12  ;;  %v641_v59 = vmul.f32 %v4073_v38, %v629_v9 }
 0x1e1   : > { %vm719_vm15 = vcmp.ge.f32.partialorder %v711_v2, 0.0  ;;  %v727_v43 = vmul.f32 0.25, %v711_v2  ;;  %v563_v31 = vadd.f32 %v555_v50, %v535_v3  ;;  %v640_v48 = vmul.f32 %v4073_v38, %v544_v60 }
 0x1e2   : > { %vm720_vm0 = vcmp.ge.f32.partialorder %v712_v41, 0.0  ;;  %v728_v58 = vmul.f32 0.25, %v712_v41  ;;  %v564_v28 = vadd.f32 %v556_v26, %v536_v6  ;;  %v669_v15 = vmul.f32 %v4076_v40, %v657_v1  ;;  %v745_v26 = vld [vmem:[%s4865_s2 + $0x50] ss:$0 sm:$0xff] }
 0x1e3   : > { %v735_v47 = vsel %vm719_vm15, %v711_v2, %v727_v43  ;;  %v591_v7 = vadd.f32 %v583_v56, %v563_v31  ;;  %v668_v49 = vmul.f32 %v4076_v40, %v572_v10  ;;  %v697_v16 = vmul.f32 %v4082_v44, %v685_v17  ;;  %v841_v40 = vld [vmem:[%s4864_s1 + $0x38] sm:$0xf] }
 0x1e4   : > { %v736_v19 = vsel %vm720_vm0, %v712_v41, %v728_v58  ;;  %v592_v13 = vadd.f32 %v584_v14, %v564_v28  ;;  %v696_v57 = vmul.f32 %v4082_v44, %v600_v12  ;;  %3694 = vmatprep.subr.msk.bf16.mxu0 %vm325_vm2, %v841_v40  ;;  %v856_v44 = vsel %vm325_vm2, %v841_v40, 0 }
 0x1e5   : > { %v741_v23 = vpack.c.bf16 %v736_v19, %v735_v47  ;;  %v619_v27 = vadd.f32 %v611_v5, %v591_v7  ;;  %3551 = vmatpush3.bf16.msra.mxu0 %v856_v44  ;;  %v4873_v10 = vmov 0.0   ;;  %vm949_vm6 = vcmask 189440  }
 0x1e6   : > { %v620_v33 = vadd.f32 %v612_v42, %v592_v13  ;;  %3568 = vmatprep.subr.bf16.mxu0 %v4873_v10  ;;  %958 = vst.msk [vmem:[#allocation3 + $0x30] sm:$0x1] %vm955_vm5, %v4873_v10  ;;  %956 = vst.msk [vmem:[#allocation3 + $0x10] sm:$0x1] %vm955_vm5, %v4873_v10  ;;  %vm3852_vm7 = vmmov 0  }
 0x1e7   : > { %3546 = vmatprep.mubr.msk.bf16.mxu1 %vm418_vm13, %v741_v23  ;;  %v648_v24 = vadd.f32 %v640_v48, %v619_v27  ;;  %948 = vst.msk [vmem:[#allocation3] sm:$0xff] %vm947_vm4, %v4873_v10  ;;  %v4247_v27 = vld [vmem:[%s4865_s2 + $0x60] ss:$0 sm:$0xff] }
 0x1e8   : > { %v649_v11 = vadd.f32 %v641_v59, %v620_v33  ;;  %957 = vst.msk [vmem:[#allocation3 + $0x20] sm:$0x1] %vm955_vm5, %v4873_v10  ;;  %959 = vst.msk [vmem:[#allocation3 + $0x40] sm:$0x1] %vm955_vm5, %v4873_v10 }
 0x1e9   : > { %v676_v63 = vadd.f32 %v668_v49, %v648_v24  ;;  %960 = vst.msk [vmem:[#allocation3 + $0x50] sm:$0x1] %vm955_vm5, %v4873_v10  ;;  %961 = vst.msk [vmem:[#allocation3 + $0x60] sm:$0x1] %vm955_vm5, %v4873_v10 }
 0x1ea   : > { %v677_v18 = vadd.f32 %v669_v15, %v649_v11  ;;  %962 = vst.msk [vmem:[#allocation3 + $0x70] sm:$0x1] %vm955_vm5, %v4873_v10  ;;  %963 = vst.msk [vmem:[#allocation3 + $0x80] sm:$0x1] %vm955_vm5, %v4873_v10 }
 0x1eb   : > { %v704_v8 = vadd.f32 %v696_v57, %v676_v63  ;;  %950 = vst.msk [vmem:[#allocation3 + $0x8] sm:$0x3] %vm949_vm6, %v4873_v10 }
 0x1ec   : > { %v705_v0 = vadd.f32 %v697_v16, %v677_v18 }
 0x1ed   : > { %v713_v25 = vadd.f32 %v4139_v46, %v704_v8 }
 0x1ee   : > { %v714_v38 = vadd.f32 %v4139_v46, %v705_v0  ;;  %v982_v40 = vld [vmem:[#allocation3] ss:$2 sm:$0xf]  ;;  %v1002_v44 = vld [vmem:[#allocation3 + $0x1] ss:$2 sm:$0xf] }
 0x1ef   : > { %vm721_vm1 = vcmp.ge.f32.partialorder %v713_v25, 0.0  ;;  %v729_v60 = vmul.f32 0.25, %v713_v25 }
 0x1f0   : > { %vm722_vm3 = vcmp.ge.f32.partialorder %v714_v38, 0.0  ;;  %v730_v45 = vmul.f32 0.25, %v714_v38 }
 0x1f1   : > { %v737_v35 = vsel %vm721_vm1, %v713_v25, %v729_v60 }
 0x1f2   : > { %v738_v32 = vsel %vm722_vm3, %v714_v38, %v730_v45  ;;  %v4259_v45 = vld [vmem:[%s4865_s2 + $0x70] sm:$0xff] }
 0x1f3   : > { %v742_v55 = vpack.c.bf16 %v738_v32, %v737_v35  ;;  %v4264_v32 = vrot.slane %v4259_v45, %v4021_v61 }
 0x1f5   : > { %3547 = vmatmul.mubr.msk.bf16.gmra.mxu1 %vm418_vm13, %v742_v55  ;;  %v4268_v55 = vrot.slane %v4259_v45, %v4024_v62 }
 0x1f6   : > { %3564 = vmatprep.mubr.msk.bf16.mxu1 %vm3852_vm7, %v4873_v10 }
 0x29e   : > { %v3544_v46 = vpop.f32.mrf.mxu1 }
 0x29f   : > { %v807_v50 = vadd.f32 %v3544_v46, %v745_v26  ;;  %v4272_v46 = vrot.slane %v4259_v45, %v4041_v4 }
 0x2a0   : > { %v798_v2 = vpop.f32.mrf.mxu1 }
 0x2a1   : > { %v799_v3 = vadd.f32 %v798_v2, %v745_v26  ;;  %v831_v58 = vadd.f32 %v807_v50, %v3954_v39  ;;  %v993_v2 = vmul.f32 %v4264_v32, %v982_v40 }
 0x2a2   : > { %v3545_v41 = vpop.f32.mrf.mxu1 }
 0x2a3   : > { %v810_v6 = vadd.f32 %v3545_v41, %v745_v26  ;;  %v829_v56 = vadd.f32 %v799_v3, %v3950_v36  ;;  %v1022_v41 = vld [vmem:[#allocation3 + $0x2] ss:$2 sm:$0xf] }
 0x2a4   : > { %v801_v12 = vpop.f32.mrf.mxu1 }
 0x2a5   : > { %v802_v9 = vadd.f32 %v801_v12, %v745_v26  ;;  %v832_v43 = vadd.f32 %v810_v6, %v3948_v34 }
 0x2a7   : > { %v830_v14 = vadd.f32 %v802_v9, %v3952_v37  ;;  %v838_v28 = vpack.c.bf16 %v832_v43, %v831_v58  ;;  %v4280_v43 = vrot.slane %v4259_v45, %v4053_v20 }
 0x2a9   : > { %v837_v31 = vpack.c.bf16 %v830_v14, %v829_v56 }
 0x2ab   : > { %3552 = vmatprep.mubr.msk.bf16.mxu0 %vm312_vm8, %v837_v31 }
 0x2ac   : > { %3553 = vmatmul.mubr.msk.bf16.vlgmr.msra.gmra.mxu0 %vm312_vm8, %v838_v28  ;;  %v1033_v28 = vmul.f32 %v4272_v46, %v1022_v41 }
 0x2b5   : > { %v3548_v5 = vpop.f32.mrf.mxu1 }
 0x2b6   : > { %v823_v19 = vadd.f32 %v3548_v5, %v745_v26 }
 0x2b7   : > { %v814_v42 = vpop.f32.mrf.mxu1 }
 0x2b8   : > { %v815_v1 = vadd.f32 %v814_v42, %v745_v26  ;;  %v835_v13 = vadd.f32 %v823_v19, %v3968_v54  ;;  %v3744_v54 = vld [vmem:[%s4864_s1 + $0x58] ss:$8 sps:$4 sm:$0xff]  }
 0x2b9   : > { %v3549_v59 = vpop.f32.mrf.mxu1  ;;  %3569 = vmatpush3.bf16.msra.mxu0 %v3744_v54 }
 0x2ba   : > { %v826_v47 = vadd.f32 %v3549_v59, %v745_v26  ;;  %v833_v37 = vadd.f32 %v815_v1, %v3964_v52  ;;  %3582 = vmatprep.subr.bf16.mxu0 %v4873_v10 }
 0x2bb   : > { %v817_v7 = vpop.f32.mrf.mxu1 }
 0x2bc   : > { %v818_v34 = vadd.f32 %v817_v7, %v745_v26  ;;  %v836_v36 = vadd.f32 %v826_v47, %v3962_v51  ;;  %v3742_v51 = vld [vmem:[%s4864_s1 + $0x50] ss:$0 sps:$4 sm:$0xff]   ;;  %v1013_v26 = vmul.f32 %v4268_v55, %v1002_v44 }
 0x2bd   : > { %v1206_v52 = vsel %vm325_vm2, %v3742_v51, 0 }
 0x2be   : > { %v834_v39 = vadd.f32 %v818_v34, %v3966_v53  ;;  %v840_v17 = vpack.c.bf16 %v836_v36, %v835_v13  ;;  %3561 = vmatpush3.bf16.msra.mxu1 %v1206_v52  ;;  %v3743_v53 = vld [vmem:[%s4864_s1 + $0x40] ss:$8 sps:$4 sm:$0xff]   ;;  %v1017_v58 = vadd.f32 %v1013_v26, %v993_v2 }
 0x2bf   : > { %3562 = vmatprep.subr.bf16.mxu1 %v4873_v10 }
 0x2c0   : > { %v839_v23 = vpack.c.bf16 %v834_v39, %v833_v37  ;;  %v1037_v37 = vadd.f32 %v1033_v28, %v1017_v58 }
 0x2c2   : > { %3556 = vmatprep.mubr.msk.bf16.mxu0 %vm312_vm8, %v839_v23  ;;  %3563 = vmatpush3.bf16.msra.mxu1 %v3743_v53 }
 0x2c3   : > { %3557 = vmatmul.mubr.msk.bf16.gmra.mxu0 %vm312_vm8, %v840_v17  ;;  %3574 = vmatprep.subr.bf16.mxu1 %v4873_v10  ;;  %v4290_v17 = vrot.slane %v4259_v45, %v4065_v29 }
 0x2c4   : > { %3570 = vmatprep.mubr.msk.bf16.mxu0 %vm3852_vm7, %v4873_v10 }
 0x36c   : > { %v3554_v33 = vpop.f32.mrf.mxu0 }
 0x36d   : > { %v901_v48 = vadd.f32 %v3554_v33, %v4247_v27 }
 0x36e   : > { %v892_v15 = vpop.f32.mrf.mxu0 }
 0x36f   : > { %vm925_vm9 = vcmp.ge.f32.partialorder %v901_v48, 0.0  ;;  %v933_v24 = vmul.f32 0.25, %v901_v48  ;;  %v893_v11 = vadd.f32 %v892_v15, %v4247_v27 }
 0x370   : > { %v3555_v49 = vpop.f32.mrf.mxu0 }
 0x371   : > { %v941_v16 = vsel %vm925_vm9, %v901_v48, %v933_v24  ;;  %vm923_vm10 = vcmp.ge.f32.partialorder %v893_v11, 0.0  ;;  %v931_v63 = vmul.f32 0.25, %v893_v11  ;;  %v904_v18 = vadd.f32 %v3555_v49, %v4247_v27 }
 0x372   : > { %974 = vst.msk [vmem:[#allocation3 + $0x31] sm:$0xff] %vm947_vm4, %v941_v16  ;;  %v895_v57 = vpop.f32.mrf.mxu0 }
 0x373   : > { %v939_v8 = vsel %vm923_vm10, %v893_v11, %v931_v63  ;;  %vm926_vm11 = vcmp.ge.f32.partialorder %v904_v18, 0.0  ;;  %v934_v0 = vmul.f32 0.25, %v904_v18  ;;  %v896_v25 = vadd.f32 %v895_v57, %v4247_v27 }
 0x374   : > { %972 = vst.msk [vmem:[#allocation3 + $0x11] sm:$0xff] %vm947_vm4, %v939_v8  ;;  %v4301_v57 = vrot.slane %v4259_v45, %v4068_v30  ;;  %vm1309_vm10 = vcmask 259072  }
 0x375   : > { %v942_v38 = vsel %vm926_vm11, %v904_v18, %v934_v0  ;;  %vm924_vm12 = vcmp.ge.f32.partialorder %v896_v25, 0.0  ;;  %v932_v60 = vmul.f32 0.25, %v896_v25  ;;  %vm1314_vm11 = vcmask 253952   ;;  %1310 = vst.msk [vmem:[#allocation4] sm:$0x3f] %vm1309_vm10, %v4873_v10 }
 0x376   : > { %975 = vst.msk [vmem:[#allocation3 + $0x41] sm:$0xff] %vm947_vm4, %v942_v38 }
 0x377   : > { %v940_v35 = vsel %vm924_vm12, %v896_v25, %v932_v60  ;;  %1312 = vst.msk [vmem:[#allocation4 + $0x28] sm:$0x3f] %vm1309_vm10, %v4873_v10  ;;  %vm1323_vm12 = vcmask 257024   ;;  %vm1784_vm10 = vcmask 386048  }
 0x378   : > { %973 = vst.msk [vmem:[#allocation3 + $0x21] sm:$0xff] %vm947_vm4, %v940_v35 }
 0x379   : > { %v1043_v5 = vld [vmem:[#allocation3 + $0x30] ss:$2 sm:$0xf]  ;;  %v1063_v23 = vld [vmem:[#allocation3 + $0x31] ss:$2 sm:$0xf] }
 0x37a   : > { %v1053_v13 = vmul.f32 %v4280_v43, %v1043_v5  ;;  %v1073_v18 = vmul.f32 %v4290_v17, %v1063_v23  ;;  %1315 = vst.msk [vmem:[#allocation4 + $0x8] sm:$0x1] %vm1314_vm11, %v4873_v10  ;;  %1316 = vst.msk [vmem:[#allocation4 + $0x10] sm:$0x1] %vm1314_vm11, %v4873_v10 }
 0x37b   : > { %v1041_v42 = vld [vmem:[#allocation3 + $0x10] ss:$2 sm:$0xf]  ;;  %v1061_v63 = vld [vmem:[#allocation3 + $0x11] ss:$2 sm:$0xf] }
 0x37c   : > { %v1052_v39 = vmul.f32 %v4280_v43, %v1041_v42  ;;  %v1072_v35 = vmul.f32 %v4290_v17, %v1061_v63  ;;  %v1081_v2 = vld [vmem:[#allocation3 + $0x12] ss:$2 sm:$0xf]  ;;  %1317 = vst.msk [vmem:[#allocation4 + $0x18] sm:$0x1] %vm1314_vm11, %v4873_v10 }
 0x37d   : > { %v986_v34 = vld [vmem:[#allocation3 + $0x40] ss:$2 sm:$0xf]  ;;  %v1006_v51 = vld [vmem:[#allocation3 + $0x41] ss:$2 sm:$0xf] }
 0x37e   : > { %v995_v49 = vmul.f32 %v4264_v32, %v986_v34  ;;  %v1015_v16 = vmul.f32 %v4268_v55, %v1006_v51  ;;  %v1056_v25 = vadd.f32 %v1052_v39, %v1037_v37  ;;  %v1026_v38 = vld [vmem:[#allocation3 + $0x42] ss:$2 sm:$0xf]  ;;  %v1123_v34 = vld [vmem:[#allocation3 + $0x41] ss:$2 sm:$0xf] }
 0x37f   : > { %v984_v3 = vld [vmem:[#allocation3 + $0x20] ss:$2 sm:$0xf]  ;;  %v1004_v6 = vld [vmem:[#allocation3 + $0x21] ss:$2 sm:$0xf] }
 0x380   : > { %v994_v50 = vmul.f32 %v4264_v32, %v984_v3  ;;  %v1014_v12 = vmul.f32 %v4268_v55, %v1004_v6  ;;  %v1024_v9 = vld [vmem:[#allocation3 + $0x22] ss:$2 sm:$0xf]  ;;  %v1019_v44 = vadd.f32 %v1015_v16, %v995_v49  ;;  %v1076_v26 = vadd.f32 %v1072_v35, %v1056_v25  ;;  %v3375_v49 = vld [vmem:[%s4865_s2 + $0x80] ss:$0 sm:$0xff] }
 0x381   : > { %v1034_v56 = vmul.f32 %v4272_v46, %v1024_v9  ;;  %v4309_v3 = vrot.slane %v4259_v45, %v4056_v21  ;;  %v1035_v6 = vmul.f32 %v4272_v46, %v1026_v38  ;;  %v1101_v28 = vld [vmem:[#allocation3 + $0x20] ss:$2 sm:$0xf]  ;;  %1318 = vst.msk [vmem:[#allocation4 + $0x20] sm:$0x1] %vm1314_vm11, %v4873_v10 }
 0x382   : > { %v1018_v31 = vadd.f32 %v1014_v12, %v994_v50  ;;  %v1103_v50 = vld [vmem:[#allocation3 + $0x40] ss:$2 sm:$0xf]  ;;  %1319 = vst.msk [vmem:[#allocation4 + $0xd] sm:$0x1] %vm1314_vm11, %v4873_v10 }
 0x383   : > { %v3558_v14 = vpop.f32.mrf.mxu0  ;;  %v1039_v58 = vadd.f32 %v1035_v6, %v1019_v44  ;;  %v1112_v39 = vmul.f32 %v4309_v3, %v1101_v28  ;;  %v1141_v35 = vld [vmem:[#allocation3 + $0x22] ss:$2 sm:$0xf]  ;;  %1320 = vst.msk [vmem:[#allocation4 + $0x15] sm:$0x1] %vm1314_vm11, %v4873_v10 }
 0x384   : > { %v917_v59 = vadd.f32 %v3558_v14, %v4247_v27  ;;  %v1038_v47 = vadd.f32 %v1034_v56, %v1018_v31  ;;  %v1092_v56 = vmul.f32 %v4301_v57, %v1081_v2  ;;  %1321 = vst.msk [vmem:[#allocation4 + $0x1d] sm:$0x1] %vm1314_vm11, %v4873_v10  ;;  %1322 = vst.msk [vmem:[#allocation4 + $0x25] sm:$0x1] %vm1314_vm11, %v4873_v10  ;;  %vm1793_vm11 = vcmask 388096  }
 0x385   : > { %v908_v1 = vpop.f32.mrf.mxu0  ;;  %1785 = vst.msk [vmem:[#allocation5 + $0x10] sm:$0x3] %vm1784_vm10, %v4873_v10  ;;  %1786 = vst.msk [vmem:[#allocation5 + $0x18] sm:$0x3] %vm1784_vm10, %v4873_v10 }
 0x386   : > { %vm929_vm14 = vcmp.ge.f32.partialorder %v917_v59, 0.0  ;;  %v937_v19 = vmul.f32 0.25, %v917_v59  ;;  %v909_v7 = vadd.f32 %v908_v1, %v4247_v27  ;;  %v1057_v48 = vadd.f32 %v1053_v13, %v1038_v47  ;;  %1789 = vst.msk [vmem:[#allocation5 + $0x16] sm:$0x3] %vm1784_vm10, %v4873_v10  ;;  %1790 = vst.msk [vmem:[#allocation5 + $0x1e] sm:$0x3] %vm1784_vm10, %v4873_v10 }
 0x387   : > { %v3559_v36 = vpop.f32.mrf.mxu0  ;;  %v1096_v42 = vadd.f32 %v1092_v56, %v1076_v26  ;;  %v1131_v1 = vrot.slane %v4259_v45, %v4059_v22  ;;  %2429 = vst.msk [vmem:[#allocation6] sm:$0xf] %vm1793_vm11, %v4873_v10  ;;  %2431 = vst.msk [vmem:[#allocation6 + $0xc] sm:$0xf] %vm1793_vm11, %v4873_v10 }
 0x388   : > { %v945_v52 = vsel %vm929_vm14, %v917_v59, %v937_v19  ;;  %vm927_vm15 = vcmp.ge.f32.partialorder %v909_v7, 0.0  ;;  %v935_v53 = vmul.f32 0.25, %v909_v7  ;;  %v920_v54 = vadd.f32 %v3559_v36, %v4247_v27  ;;  %1787 = vst.msk [vmem:[#allocation5 + $0x20] sm:$0x3] %vm1784_vm10, %v4873_v10  ;;  %1788 = vst.msk [vmem:[#allocation5 + $0x28] sm:$0x3] %vm1784_vm10, %v4873_v10 }
 0x389   : > { %978 = vst.msk [vmem:[#allocation3 + $0x71] sm:$0xff] %vm947_vm4, %v945_v52  ;;  %v911_v33 = vpop.f32.mrf.mxu0  ;;  %v1077_v40 = vadd.f32 %v1073_v18, %v1057_v48  ;;  %v1113_v59 = vmul.f32 %v4309_v3, %v1103_v50  ;;  %v1116_v48 = vadd.f32 %v1112_v39, %v1096_v42  ;;  %v1160_v50 = vld [vmem:[%s4865_s2 + $0x90] ss:$0 sm:$0xff] }
 0x38a   : > { %v943_v15 = vsel %vm927_vm15, %v909_v7, %v935_v53  ;;  %vm930_vm0 = vcmp.ge.f32.partialorder %v920_v54, 0.0  ;;  %v938_v24 = vmul.f32 0.25, %v920_v54  ;;  %v912_v11 = vadd.f32 %v911_v33, %v4247_v27  ;;  %v1083_v27 = vld [vmem:[#allocation3 + $0x32] ss:$2 sm:$0xf] }
 0x38b   : > { %976 = vst.msk [vmem:[#allocation3 + $0x51] sm:$0xff] %vm947_vm4, %v943_v15  ;;  %v1093_v41 = vmul.f32 %v4301_v57, %v1083_v27  ;;  %v1121_v7 = vld [vmem:[#allocation3 + $0x21] ss:$2 sm:$0xf]  ;;  %v1162_v56 = vcombine.high %v1160_v50, %v1160_v50  ;;  %vm1326_vm15 = vcmask 261124  }
 0x38c   : > { %v946_v8 = vsel %vm930_vm0, %v920_v54, %v938_v24  ;;  %vm928_vm1 = vcmp.ge.f32.partialorder %v912_v11, 0.0  ;;  %v936_v0 = vmul.f32 0.25, %v912_v11  ;;  %v1133_v24 = vmul.f32 %v1131_v1, %v1123_v34  ;;  %1791 = vst.msk [vmem:[#allocation5 + $0x26] sm:$0x3] %vm1784_vm10, %v4873_v10  ;;  %1792 = vst.msk [vmem:[#allocation5 + $0x2e] sm:$0x3] %vm1784_vm10, %v4873_v10 }
 0x38d   : > { %979 = vst.msk [vmem:[#allocation3 + $0x81] sm:$0xff] %vm947_vm4, %v946_v8  ;;  %v1097_v14 = vadd.f32 %v1093_v41, %v1077_v40  ;;  %v1132_v8 = vmul.f32 %v1131_v1, %v1121_v7 }
 0x38e   : > { %v944_v60 = vsel %vm928_vm1, %v912_v11, %v936_v0 }
 0x38f   : > { %977 = vst.msk [vmem:[#allocation3 + $0x61] sm:$0xff] %vm947_vm4, %v944_v60  ;;  %v1117_v13 = vadd.f32 %v1113_v59, %v1097_v14  ;;  %v1136_v41 = vadd.f32 %v1132_v8, %v1116_v48 }
 0x390   : > { %v1047_v45 = vld [vmem:[#allocation3 + $0x70] ss:$2 sm:$0xf]  ;;  %v1067_v18 = vld [vmem:[#allocation3 + $0x71] ss:$2 sm:$0xf] }
 0x391   : > { %v1137_v0 = vadd.f32 %v1133_v24, %v1117_v13  ;;  %v1055_v27 = vmul.f32 %v4280_v43, %v1047_v45  ;;  %v1087_v40 = vld [vmem:[#allocation3 + $0x72] ss:$2 sm:$0xf]  ;;  %v1075_v26 = vmul.f32 %v4290_v17, %v1067_v18 }
 0x392   : > { %v1045_v12 = vld [vmem:[#allocation3 + $0x50] ss:$2 sm:$0xf]  ;;  %v1065_v9 = vld [vmem:[#allocation3 + $0x51] ss:$2 sm:$0xf] }
 0x393   : > { %v1054_v31 = vmul.f32 %v4280_v43, %v1045_v12  ;;  %v1085_v5 = vld [vmem:[#allocation3 + $0x52] ss:$2 sm:$0xf]  ;;  %v1074_v19 = vmul.f32 %v4290_v17, %v1065_v9  ;;  %v1152_v9 = vmul.f32 %v3375_v49, %v1141_v35  ;;  %v1095_v43 = vmul.f32 %v4301_v57, %v1087_v40  ;;  %v1332_v35 = vld [vmem:[%s4865_s2 + $0xc0] sm:$0xff] }
 0x394   : > { %v1094_v54 = vmul.f32 %v4301_v57, %v1085_v5  ;;  %v1107_v12 = vld [vmem:[#allocation3 + $0x80] ss:$2 sm:$0xf]  ;;  %v1127_v28 = vld [vmem:[#allocation3 + $0x81] ss:$2 sm:$0xf] }
 0x395   : > { %v1058_v47 = vadd.f32 %v1054_v31, %v1039_v58  ;;  %v1115_v42 = vmul.f32 %v4309_v3, %v1107_v12  ;;  %v1156_v59 = vadd.f32 %v1152_v9, %v1136_v41  ;;  %v1135_v7 = vmul.f32 %v1131_v1, %v1127_v28  ;;  %v1334_v41 = vld [vmem:[#allocation4] sm:$0xf] }
 0x396   : > { %v988_v36 = vld [vmem:[#allocation3 + $0x60] ss:$2 sm:$0xf]  ;;  %v1008_v37 = vld [vmem:[#allocation3 + $0x61] ss:$2 sm:$0xf]  ;;  %v1373_v28 = vrot.slane %v1332_v35, %v4041_v4 }
 0x397   : > { %v996_v23 = vmul.f32 %v4264_v32, %v988_v36  ;;  %v1016_v51 = vmul.f32 %v4268_v55, %v1008_v37  ;;  %v1028_v52 = vld [vmem:[#allocation3 + $0x62] ss:$2 sm:$0xf]  ;;  %v1078_v53 = vadd.f32 %v1074_v19, %v1058_v47  ;;  %v1125_v15 = vld [vmem:[#allocation3 + $0x61] ss:$2 sm:$0xf]  ;;  %v1164_v39 = vadd.f32 %v1160_v50, %v1156_v59 }
 0x398   : > { %v1105_v33 = vld [vmem:[#allocation3 + $0x60] ss:$2 sm:$0xf]  ;;  %v1036_v11 = vmul.f32 %v4272_v46, %v1028_v52  ;;  %v1134_v60 = vmul.f32 %v1131_v1, %v1125_v15 }
 0x399   : > { %v1020_v16 = vadd.f32 %v1016_v51, %v996_v23  ;;  %v1098_v63 = vadd.f32 %v1094_v54, %v1078_v53  ;;  %v1114_v32 = vmul.f32 %v4309_v3, %v1105_v33  ;;  %v1143_v55 = vld [vmem:[#allocation3 + $0x42] ss:$2 sm:$0xf]  ;;  %v1172_v52 = vmul.f32 0.25, %v1164_v39 }
 0x39a   : > { %v1145_v46 = vld [vmem:[#allocation3 + $0x62] ss:$2 sm:$0xf]  ;;  %v1153_v44 = vmul.f32 %v3375_v49, %v1143_v55  ;;  %vm1168_vm5 = vcmp.ge.f32.partialorder %v1164_v39, 0.0 }
 0x39b   : > { %v1040_v25 = vadd.f32 %v1036_v11, %v1020_v16  ;;  %v1118_v38 = vadd.f32 %v1114_v32, %v1098_v63  ;;  %v1154_v58 = vmul.f32 %v3375_v49, %v1145_v46  ;;  %v1147_v47 = vld [vmem:[#allocation3 + $0x82] ss:$2 sm:$0xf]  ;;  %v1176_v33 = vsel %vm1168_vm5, %v1164_v39, %v1172_v52 }
 0x39c   : > { %v1157_v31 = vadd.f32 %v1153_v44, %v1137_v0  ;;  %v1155_v37 = vmul.f32 %v3375_v49, %v1147_v47  ;;  %v1192_v49 = vld [vmem:[%s4865_s2 + $0xa0] ss:$0 sm:$0xff]  ;;  %v1350_v12 = vld [vmem:[#allocation4 + $0x1] sm:$0xf]  ;;  %v1389_v47 = vrot.slane %v1332_v35, %v4053_v20 }
 0x39d   : > { %v1059_v2 = vadd.f32 %v1055_v27, %v1040_v25  ;;  %v1138_v6 = vadd.f32 %v1134_v60, %v1118_v38  ;;  %v3745_v0 = vld [vmem:[%s4864_s1 + $0x78] ss:$8 sps:$4 sm:$0xff]   ;;  %v3746_v25 = vld [vmem:[%s4864_s1 + $0x68] ss:$8 sps:$4 sm:$0xff]  }
 0x39e   : > { %v1165_v34 = vadd.f32 %v1162_v56, %v1157_v31  ;;  %v1581_v27 = vld [vmem:[%s4864_s1 + $0x88] sm:$0xf]  ;;  %v1252_v60 = vld [vmem:[%s4865_s2 + $0xb0] ss:$0 sm:$0xff] }
 0x39f   : > { %v1079_v14 = vadd.f32 %v1075_v26, %v1059_v2  ;;  %v1158_v17 = vadd.f32 %v1154_v58, %v1138_v6  ;;  %v1587_v38 = vsel %vm325_vm2, %v1581_v27, 0  ;;  %v1341_v2 = vrot.slane %v1332_v35, %v4021_v61 }
 0x3a0   : > { %v1173_v51 = vmul.f32 0.25, %v1165_v34  ;;  %vm1169_vm3 = vcmp.ge.f32.partialorder %v1165_v34, 0.0  ;;  %v1357_v6 = vrot.slane %v1332_v35, %v4024_v62 }
 0x3a1   : > { %v1099_v5 = vadd.f32 %v1095_v43, %v1079_v14  ;;  %v1166_v13 = vadd.f32 %v1160_v50, %v1158_v17  ;;  %v1342_v43 = vmul.f32 %v1341_v2, %v1334_v41 }
 0x3a2   : > { %v1177_v54 = vsel %vm1169_vm3, %v1165_v34, %v1173_v51  ;;  %v1358_v31 = vmul.f32 %v1357_v6, %v1350_v12 }
 0x3a3   : > { %v1119_v19 = vadd.f32 %v1115_v42, %v1099_v5  ;;  %v1174_v53 = vmul.f32 0.25, %v1166_v13  ;;  %vm1170_vm6 = vcmp.ge.f32.partialorder %v1166_v13, 0.0  ;;  %v1184_v1 = vcombine.low %v1176_v33, %v1177_v54  ;;  %v1366_v5 = vld [vmem:[#allocation4 + $0x2] sm:$0xf] }
 0x3a4   : > { %v1362_v59 = vadd.f32 %v1358_v31, %v1342_v43  ;;  %v1374_v17 = vmul.f32 %v1373_v28, %v1366_v5 }
 0x3a5   : > { %v1139_v36 = vadd.f32 %v1135_v7, %v1119_v19  ;;  %v1178_v45 = vsel %vm1170_vm6, %v1166_v13, %v1174_v53  ;;  %v1433_v19 = vld [vmem:[#allocation4 + $0x28] sm:$0xf]  ;;  %v1405_v53 = vrot.slane %v1332_v35, %v4065_v29 }
 0x3a6   : > { %v1449_v7 = vld [vmem:[#allocation4 + $0x29] sm:$0xf]  ;;  %v1378_v54 = vadd.f32 %v1374_v17, %v1362_v59 }
 0x3a7   : > { %v1159_v23 = vadd.f32 %v1155_v37, %v1139_v36 }
 0x3a9   : > { %v1167_v57 = vadd.f32 %v1162_v56, %v1159_v23 }
 0x3ab   : > { %vm1171_vm9 = vcmp.ge.f32.partialorder %v1167_v57, 0.0  ;;  %v1175_v3 = vmul.f32 0.25, %v1167_v57 }
 0x3ad   : > { %v1179_v48 = vsel %vm1171_vm9, %v1167_v57, %v1175_v3  ;;  %vm1506_vm9 = vcmask 261120  }
 0x3ae   : > { %v1185_v15 = vcombine.low %v1178_v45, %v1179_v48  ;;  %v1437_v48 = vrot.slane %v1332_v35, %v4056_v21 }
 0x3b0   : > { %v1188_v24 = vpack.c.bf16 %v1185_v15, %v1184_v1  ;;  %v4389_v1 = vrot.slane %v1332_v35, %v4059_v22 }
 0x3b2   : > { %3565 = vmatmul.mubr.msk.bf16.vlgmr.msra.gmra.mxu1 %vm947_vm4, %v1188_v24 }
 0x3b3   : > { %3578 = vmatprep.mubr.msk.bf16.mxu1 %vm3852_vm7, %v4873_v10  ;;  %3575 = vmatpush3.bf16.msra.mxu1 %v3745_v0 }
 0x3b4   : > { %3576 = vmatprep.subr.bf16.mxu1 %v4873_v10 }
 0x3b7   : > { %3577 = vmatpush3.bf16.msra.mxu1 %v3746_v25 }
 0x3b8   : > { %3588 = vmatprep.subr.bf16.mxu1 %v4873_v10 }
 0x472   : > { %v1242_v11 = vpop.f32.mrf.mxu1 }
 0x473   : > { %v4340_v32 = vadd.f32 %v1242_v11, %v1192_v49 }
 0x474   : > { %v3566_v16 = vpop.f32.mrf.mxu1 }
 0x476   : > { %v1245_v63 = vpop.f32.mrf.mxu1 }
 0x477   : > { %v4342_v55 = vadd.f32 %v1245_v63, %v1192_v49  ;;  %v1421_v63 = vrot.slane %v1332_v35, %v4068_v30 }
 0x478   : > { %v3567_v18 = vpop.f32.mrf.mxu1 }
 0x479   : > { %v1249_v8 = vpack.c.bf16 %v4342_v55, %v4340_v32 }
 0x47b   : > { %3571 = vmatmul.mubr.msk.bf16.vlgmr.msra.gmra.mxu0 %vm418_vm13, %v1249_v8 }
 0x47c   : > { %3584 = vmatprep.mubr.msk.bf16.mxu0 %vm3852_vm7, %v4873_v10  ;;  %3583 = vmatpush3.bf16.msra.mxu0 %v1587_v38  ;;  %v4392_v38 = vmul.f32 %v1437_v48, %v1433_v19 }
 0x47d   : > { %3596 = vmatprep.subr.bf16.mxu0 %v4873_v10 }
 0x53b   : > { %v1296_v40 = vpop.f32.mrf.mxu0 }
 0x53c   : > { %v1297_v46 = vadd.f32 %v1296_v40, %v1252_v60 }
 0x53d   : > { %v3572_v44 = vpop.f32.mrf.mxu0 }
 0x53e   : > { %vm1303_vm14 = vcmp.ge.f32.partialorder %v1297_v46, 0.0  ;;  %v1305_v26 = vmul.f32 0.25, %v1297_v46 }
 0x53f   : > { %v1299_v50 = vpop.f32.mrf.mxu0 }
 0x540   : > { %v1307_v9 = vsel %vm1303_vm14, %v1297_v46, %v1305_v26  ;;  %v1300_v56 = vadd.f32 %v1299_v50, %v1252_v60  ;;  %v4395_v60 = vmul.f32 %v4389_v1, %v1449_v7  ;;  %vm1796_vm14 = vcmask 392196  }
 0x541   : > { %1324 = vst.msk [vmem:[#allocation4 + $0x9] sm:$0xf] %vm1323_vm12, %v1307_v9  ;;  %v3573_v14 = vpop.f32.mrf.mxu0 }
 0x542   : > { %1327 = vst.msk [vmem:[#allocation4 + $0xd] sm:$0xf0] %vm1326_vm15, %v1307_v9  ;;  %vm1304_vm0 = vcmp.ge.f32.partialorder %v1300_v56, 0.0  ;;  %v1306_v58 = vmul.f32 0.25, %v1300_v56 }
 0x544   : > { %v1308_v42 = vsel %vm1304_vm0, %v1300_v56, %v1306_v58 }
 0x545   : > { %1329 = vst.msk [vmem:[#allocation4 + $0x19] sm:$0xf] %vm1323_vm12, %v1308_v42 }
 0x546   : > { %1331 = vst.msk [vmem:[#allocation4 + $0x1d] sm:$0xf0] %vm1326_vm15, %v1308_v42 }
 0x548   : > { %v1335_v34 = vld [vmem:[#allocation4 + $0x8] sm:$0xf] }
 0x549   : > { %v1336_v36 = vld [vmem:[#allocation4 + $0x10] sm:$0xf]  ;;  %v1351_v37 = vld [vmem:[#allocation4 + $0x9] sm:$0xf]  ;;  %v1343_v39 = vmul.f32 %v1341_v2, %v1335_v34 }
 0x54a   : > { %v1344_v13 = vmul.f32 %v1341_v2, %v1336_v36  ;;  %v1352_v23 = vld [vmem:[#allocation4 + $0x11] sm:$0xf]  ;;  %v1359_v51 = vmul.f32 %v1357_v6, %v1351_v37  ;;  %v1367_v57 = vld [vmem:[#allocation4 + $0xa] sm:$0xf] }
 0x54b   : > { %v1368_v52 = vld [vmem:[#allocation4 + $0x12] sm:$0xf]  ;;  %v1360_v3 = vmul.f32 %v1357_v6, %v1352_v23  ;;  %v1382_v33 = vld [vmem:[#allocation4 + $0x8] sm:$0xf]  ;;  %v1375_v24 = vmul.f32 %v1373_v28, %v1367_v57 }
 0x54c   : > { %v1383_v45 = vld [vmem:[#allocation4 + $0x10] sm:$0xf]  ;;  %v1363_v15 = vadd.f32 %v1359_v51, %v1343_v39  ;;  %v1390_v11 = vmul.f32 %v1389_v47, %v1382_v33  ;;  %v1398_v49 = vld [vmem:[#allocation4 + $0x9] sm:$0xf]  ;;  %v1337_v18 = vld [vmem:[#allocation4 + $0x18] sm:$0xf]  ;;  %v1376_v27 = vmul.f32 %v1373_v28, %v1368_v52 }
 0x54d   : > { %v1399_v16 = vld [vmem:[#allocation4 + $0x11] sm:$0xf]  ;;  %v1353_v8 = vld [vmem:[#allocation4 + $0x19] sm:$0xf]  ;;  %v1364_v0 = vadd.f32 %v1360_v3, %v1344_v13  ;;  %v1345_v40 = vmul.f32 %v1341_v2, %v1337_v18  ;;  %v1391_v41 = vmul.f32 %v1389_v47, %v1383_v45  ;;  %v1414_v12 = vld [vmem:[#allocation4 + $0xa] sm:$0xf]  ;;  %v1406_v43 = vmul.f32 %v1405_v53, %v1398_v49 }
 0x54e   : > { %v1369_v25 = vld [vmem:[#allocation4 + $0x1a] sm:$0xf]  ;;  %v1361_v46 = vmul.f32 %v1357_v6, %v1353_v8  ;;  %v1379_v44 = vadd.f32 %v1375_v24, %v1363_v15  ;;  %v1385_v56 = vld [vmem:[#allocation4 + $0x20] sm:$0xf]  ;;  %v1394_v14 = vadd.f32 %v1390_v11, %v1378_v54  ;;  %v1415_v58 = vld [vmem:[#allocation4 + $0x12] sm:$0xf]  ;;  %v1407_v59 = vmul.f32 %v1405_v53, %v1399_v16 }
 0x54f   : > { %v1384_v26 = vld [vmem:[#allocation4 + $0x18] sm:$0xf]  ;;  %v1380_v9 = vadd.f32 %v1376_v27, %v1364_v0  ;;  %v1377_v5 = vmul.f32 %v1373_v28, %v1369_v25  ;;  %v1430_v19 = vld [vmem:[#allocation4 + $0x10] sm:$0xf]  ;;  %v1401_v2 = vld [vmem:[#allocation4 + $0x21] sm:$0xf]  ;;  %v1422_v36 = vmul.f32 %v1421_v63, %v1414_v12  ;;  %v1393_v13 = vmul.f32 %v1389_v47, %v1385_v56 }
 0x550   : > { %v1400_v50 = vld [vmem:[#allocation4 + $0x19] sm:$0xf]  ;;  %v1392_v35 = vmul.f32 %v1389_v47, %v1384_v26  ;;  %v1365_v31 = vadd.f32 %v1361_v46, %v1345_v40  ;;  %v1395_v42 = vadd.f32 %v1391_v41, %v1379_v44  ;;  %v1410_v34 = vadd.f32 %v1406_v43, %v1394_v14  ;;  %v1432_v57 = vld [vmem:[#allocation4 + $0x20] sm:$0xf]  ;;  %v1446_v52 = vld [vmem:[#allocation4 + $0x11] sm:$0xf] }
 0x551   : > { %v1416_v17 = vld [vmem:[#allocation4 + $0x1a] sm:$0xf]  ;;  %v1408_v6 = vmul.f32 %v1405_v53, %v1400_v50  ;;  %v1423_v51 = vmul.f32 %v1421_v63, %v1415_v58  ;;  %v1417_v54 = vld [vmem:[#allocation4 + $0x22] sm:$0xf]  ;;  %v1438_v45 = vmul.f32 %v1437_v48, %v1430_v19  ;;  %v3381_v24 = vld [vmem:[%s4865_s2 + $0xd0] ss:$0 sm:$0xff]  ;;  %v1409_v49 = vmul.f32 %v1405_v53, %v1401_v2 }
 0x552   : > { %v1396_v7 = vadd.f32 %v1392_v35, %v1380_v9  ;;  %v1431_v37 = vld [vmem:[#allocation4 + $0x18] sm:$0xf]  ;;  %v1381_v39 = vadd.f32 %v1377_v5, %v1365_v31  ;;  %v1411_v23 = vadd.f32 %v1407_v59, %v1395_v42  ;;  %v1424_v33 = vmul.f32 %v1421_v63, %v1416_v17  ;;  %v1448_v8 = vld [vmem:[#allocation4 + $0x21] sm:$0xf]  ;;  %v1462_v47 = vld [vmem:[#allocation4 + $0x12] sm:$0xf] }
 0x553   : > { %v1426_v28 = vadd.f32 %v1422_v36, %v1410_v34  ;;  %v1447_v15 = vld [vmem:[#allocation4 + $0x19] sm:$0xf]  ;;  %v1439_v18 = vmul.f32 %v1437_v48, %v1431_v37  ;;  %v1440_v25 = vmul.f32 %v1437_v48, %v1432_v57  ;;  %v1454_v40 = vmul.f32 %v4389_v1, %v1446_v52  ;;  %v1464_v12 = vld [vmem:[#allocation4 + $0x22] sm:$0xf]  ;;  %v1465_v35 = vld [vmem:[#allocation4 + $0x2a] sm:$0xf] }
 0x554   : > { %v1412_v3 = vadd.f32 %v1408_v6, %v1396_v7  ;;  %v1397_v11 = vadd.f32 %v1393_v13, %v1381_v39  ;;  %v1427_v16 = vadd.f32 %v1423_v51, %v1411_v23  ;;  %v1463_v46 = vld [vmem:[#allocation4 + $0x1a] sm:$0xf]  ;;  %v1425_v26 = vmul.f32 %v1421_v63, %v1417_v54  ;;  %v1478_v48 = vld [vmem:[%s4865_s2 + $0xe0] ss:$0 sm:$0xff] }
 0x555   : > { %v1442_v27 = vadd.f32 %v1438_v45, %v1426_v28  ;;  %v1455_v50 = vmul.f32 %v4389_v1, %v1447_v15  ;;  %v1456_v56 = vmul.f32 %v4389_v1, %v1448_v8  ;;  %v1470_v14 = vmul.f32 %v3381_v24, %v1462_v47 }
 0x556   : > { %v1428_v0 = vadd.f32 %v1424_v33, %v1412_v3  ;;  %v1413_v44 = vadd.f32 %v1409_v49, %v1397_v11  ;;  %v1443_v41 = vadd.f32 %v1439_v18, %v1427_v16  ;;  %v1471_v31 = vmul.f32 %v3381_v24, %v1463_v46 }
 0x557   : > { %v1458_v53 = vadd.f32 %v1454_v40, %v1442_v27  ;;  %v1480_v5 = vcombine.high %v1478_v48, %v1478_v48  ;;  %v1472_v63 = vmul.f32 %v3381_v24, %v1464_v12  ;;  %v1473_v19 = vmul.f32 %v3381_v24, %v1465_v35  ;;  %v3747_v12 = vld [vmem:[%s4864_s1 + $0xa0] ss:$8 sps:$4 sm:$0xff]  }
 0x558   : > { %v1444_v9 = vadd.f32 %v1440_v25, %v1428_v0  ;;  %v1429_v43 = vadd.f32 %v1425_v26, %v1413_v44  ;;  %v1459_v58 = vadd.f32 %v1455_v50, %v1443_v41  ;;  %v1523_v25 = vld [vmem:[%s4865_s2 + $0xf0] ss:$0 sm:$0xff] }
 0x559   : > { %v1474_v59 = vadd.f32 %v1470_v14, %v1458_v53 }
 0x55a   : > { %v1460_v42 = vadd.f32 %v1456_v56, %v1444_v9  ;;  %v1445_v17 = vadd.f32 %v4392_v38, %v1429_v43  ;;  %v1475_v7 = vadd.f32 %v1471_v31, %v1459_v58  ;;  %v3748_v9 = vld [vmem:[%s4864_s1 + $0x90] ss:$8 sps:$4 sm:$0xff]   ;;  %v1582_v56 = vld [vmem:[%s4865_s2 + $0x100] ss:$0 sm:$0xff] }
 0x55b   : > { %v1482_v1 = vadd.f32 %v1478_v48, %v1474_v59 }
 0x55c   : > { %v1476_v2 = vadd.f32 %v1472_v63, %v1460_v42  ;;  %v1461_v6 = vadd.f32 %v4395_v60, %v1445_v17  ;;  %v1483_v34 = vadd.f32 %v1480_v5, %v1475_v7 }
 0x55d   : > { %v1490_v39 = vmul.f32 0.25, %v1482_v1  ;;  %vm1486_vm3 = vcmp.ge.f32.partialorder %v1482_v1, 0.0 }
 0x55e   : > { %v1484_v36 = vadd.f32 %v1478_v48, %v1476_v2  ;;  %v1477_v37 = vadd.f32 %v1473_v19, %v1461_v6  ;;  %vm1487_vm1 = vcmp.ge.f32.partialorder %v1483_v34, 0.0  ;;  %v1491_v13 = vmul.f32 0.25, %v1483_v34 }
 0x55f   : > { %v1494_v38 = vsel %vm1486_vm3, %v1482_v1, %v1490_v39  ;;  %vm2433_vm3 = vcmask 385024  }
 0x560   : > { %v1485_v23 = vadd.f32 %v1480_v5, %v1477_v37  ;;  %v1492_v51 = vmul.f32 0.25, %v1484_v36  ;;  %v1495_v57 = vsel %vm1487_vm1, %v1483_v34, %v1491_v13  ;;  %vm1488_vm5 = vcmp.ge.f32.partialorder %v1484_v36, 0.0  ;;  %v1658_v37 = vld [vmem:[%s4865_s2 + $0x110] ss:$0 sm:$0xff]  ;;  %2434 = vst.msk [vmem:[#allocation6 + $0x4] sm:$0x1] %vm2433_vm3, %v4873_v10 }
 0x561   : > { %v1502_v3 = vcombine.low %v1494_v38, %v1495_v57  ;;  %2435 = vst.msk [vmem:[#allocation6 + $0x8] sm:$0x1] %vm2433_vm3, %v4873_v10  ;;  %2436 = vst.msk [vmem:[#allocation6 + $0x7] sm:$0x1] %vm2433_vm3, %v4873_v10 }
 0x562   : > { %vm1489_vm6 = vcmp.ge.f32.partialorder %v1485_v23, 0.0  ;;  %v1493_v52 = vmul.f32 0.25, %v1485_v23  ;;  %v1496_v54 = vsel %vm1488_vm5, %v1484_v36, %v1492_v51  ;;  %v3749_v36 = vld [vmem:[%s4864_s1 + $0xb0] ss:$8 sps:$4 sm:$0xff]   ;;  %2437 = vst.msk [vmem:[#allocation6 + $0xb] sm:$0x1] %vm2433_vm3, %v4873_v10 }
 0x563   : > { %v1507_v60 = vsel %vm1506_vm9, %v1502_v3, 0.0 }
 0x564   : > { %v1497_v33 = vsel %vm1489_vm6, %v1485_v23, %v1493_v52  ;;  %vm2440_vm6 = vcmask 388098  }
 0x565   : > { %v1503_v28 = vcombine.low %v1496_v54, %v1497_v33 }
 0x567   : > { %v1508_v45 = vsel %vm1506_vm9, %v1503_v28, 0.0  ;;  %v3753_v28 = vld [vmem:[%s4864_s1 + $0xf0] ss:$8 sps:$4 sm:$0xff]  }
 0x568   : > { %v1509_v15 = vadd.f32 %v1508_v45, %v1507_v60  ;;  %v1802_v60 = vld [vmem:[%s4865_s2 + $0x130] sm:$0xff] }
 0x569   : > { %v1812_v45 = vrot.slane %v1802_v60, %v4021_v61 }
 0x56a   : > { %v1510_v24 = vrot.slane %v1509_v15, 4 }
 0x56c   : > { %v1511_v11 = vadd.f32 %v1510_v24, %v1509_v15  ;;  %v1824_v15 = vrot.slane %v1802_v60, %v4024_v62 }
 0x56e   : > { %v1512_v49 = vrot.slane %v1511_v11, 2 }
 0x570   : > { %v1513_v16 = vadd.f32 %v1512_v49, %v1511_v11  ;;  %v1836_v49 = vrot.slane %v1802_v60, %v4041_v4 }
 0x572   : > { %v1514_v18 = vrot.slane %v1513_v16, 1 }
 0x574   : > { %v1515_v8 = vadd.f32 %v1514_v18, %v1513_v16 }
 0x576   : > { %v1517_v47 = vmul.f32 0.0625, %v1515_v8 }
 0x578   : > { %v1518_v0 = vpack.c.bf16 %v1517_v47, %v1517_v47  ;;  %v1848_v47 = vrot.slane %v1802_v60, %v4053_v20 }
 0x57a   : > { %3579 = vmatmul.mubr.msk.bf16.vlgmr.msra.gmra.mxu1 %vm1506_vm9, %v1518_v0 }
 0x57b   : > { %3592 = vmatprep.mubr.msk.bf16.mxu1 %vm3852_vm7, %v4873_v10  ;;  %3589 = vmatpush3.bf16.msra.mxu1 %v3747_v12 }
 0x57c   : > { %3590 = vmatprep.subr.bf16.mxu1 %v4873_v10 }
 0x57f   : > { %3591 = vmatpush3.bf16.msra.mxu1 %v3748_v9 }
 0x580   : > { %3602 = vmatprep.subr.bf16.mxu1 %v4873_v10 }
 0x63a   : > { %v1573_v27 = vpop.f32.mrf.mxu1 }
 0x63b   : > { %v1574_v40 = vadd.f32 %v1573_v27, %v1523_v25 }
 0x63c   : > { %v3580_v46 = vpop.f32.mrf.mxu1 }
 0x63d   : > { %v1579_v44 = vmax.f32 %v1574_v40, 0.0  ;;  %v4496_v40 = vrot.slane %v1802_v60, %v4065_v29 }
 0x63e   : > { %v1576_v26 = vpop.f32.mrf.mxu1 }
 0x63f   : > { %v1580_v41 = vpack.c.bf16 %v1579_v44, %v1579_v44 }
 0x640   : > { %v3581_v50 = vpop.f32.mrf.mxu1 }
 0x641   : > { %3585 = vmatmul.mubr.msk.bf16.vlgmr.msra.gmra.mxu0 %vm312_vm8, %v1580_v41  ;;  %vm1777_vm8 = vcmask 392192   ;;  %v4499_v41 = vrot.slane %v1802_v60, %v4068_v30 }
 0x642   : > { %3598 = vmatprep.mubr.msk.bf16.mxu0 %vm3852_vm7, %v4873_v10  ;;  %3597 = vmatpush3.bf16.msra.mxu0 %v3749_v36  ;;  %1778 = vst.msk [vmem:[#allocation5] sm:$0xff] %vm1777_vm8, %v4873_v10  ;;  %1779 = vst.msk [vmem:[#allocation5 + $0x8] sm:$0xff] %vm1777_vm8, %v4873_v10 }
 0x643   : > { %3612 = vmatprep.subr.bf16.mxu0 %v4873_v10  ;;  %1781 = vst.msk [vmem:[#allocation5 + $0x30] sm:$0xff] %vm1777_vm8, %v4873_v10 }
 0x649   : > { %v1806_v24 = vld [vmem:[#allocation5] ss:$2 sm:$0x3]  ;;  %v1818_v11 = vld [vmem:[#allocation5 + $0x1] ss:$2 sm:$0x3] }
 0x64a   : > { %v1813_v16 = vmul.f32 %v1812_v45, %v1806_v24  ;;  %v1825_v18 = vmul.f32 %v1824_v15, %v1818_v11  ;;  %v1830_v8 = vld [vmem:[#allocation5 + $0x2] ss:$2 sm:$0x3]  ;;  %v1842_v27 = vld [vmem:[#allocation5 + $0x3] ss:$2 sm:$0x3] }
 0x64b   : > { %v1837_v25 = vmul.f32 %v1836_v49, %v1830_v8  ;;  %v1849_v44 = vmul.f32 %v1848_v47, %v1842_v27  ;;  %v1854_v26 = vld [vmem:[#allocation5 + $0x4] ss:$2 sm:$0x3]  ;;  %v1866_v9 = vld [vmem:[#allocation5 + $0x8] ss:$2 sm:$0x3] }
 0x64c   : > { %v1827_v0 = vadd.f32 %v1825_v18, %v1813_v16  ;;  %v1861_v12 = vmul.f32 %v4496_v40, %v1854_v26 }
 0x64e   : > { %v1839_v46 = vadd.f32 %v1837_v25, %v1827_v0 }
 0x650   : > { %v1851_v50 = vadd.f32 %v1849_v44, %v1839_v46 }
 0x701   : > { %v1623_v53 = vpop.f32.mrf.mxu0 }
 0x702   : > { %v1624_v35 = vadd.f32 %v1623_v53, %v1582_v56  ;;  %v4503_v56 = vrot.slane %v1802_v60, %v4056_v21  ;;  %v1863_v53 = vadd.f32 %v1861_v12, %v1851_v50 }
 0x703   : > { %v3586_v14 = vpop.f32.mrf.mxu0 }
 0x704   : > { %v1630_v48 = vmul.f32 0.16666667, %v1624_v35  ;;  %v1873_v35 = vmul.f32 %v4499_v41, %v1866_v9  ;;  %v1720_v14 = vld [vmem:[%s4865_s2 + $0x120] ss:$0 sm:$0xff] }
 0x705   : > { %v1626_v43 = vpop.f32.mrf.mxu0 }
 0x706   : > { %v1631_v58 = vadd.f32 0.5, %v1630_v48  ;;  %v1878_v48 = vld [vmem:[#allocation5 + $0x9] ss:$2 sm:$0x3] }
 0x707   : > { %v3587_v31 = vpop.f32.mrf.mxu0 }
 0x708   : > { %v1632_v5 = vmax.f32 %v1631_v58, 0.0  ;;  %v4512_v31 = vld [vmem:[%s4865_s2 + $0x140] sm:$0xff] }
 0x709   : > { %v1931_v11 = vrot.slane %v4512_v31, %v4041_v4  ;;  %v1943_v0 = vrot.slane %v4512_v31, %v4053_v20 }
 0x70a   : > { %v1633_v42 = vmin.f32 %v1632_v5, 1.0  ;;  %v4515_v5 = vrot.slane %v1802_v60, %v4059_v22 }
 0x70c   : > { %v1637_v63 = vrot.slane %v1633_v42, %v4021_v61  ;;  %v1875_v42 = vadd.f32 %v1873_v35, %v1863_v53 }
 0x70e   : > { %v1639_v59 = vcombine.high %v1637_v63, %v1637_v63  ;;  %v1641_v17 = vmul.f32 %v1637_v63, %v1494_v38  ;;  %v1643_v7 = vmul.f32 %v1637_v63, %v1496_v54  ;;  %v1885_v63 = vmul.f32 %v4503_v56, %v1878_v48 }
 0x710   : > { %v1642_v19 = vmul.f32 %v1639_v59, %v1495_v57  ;;  %v1644_v2 = vmul.f32 %v1639_v59, %v1497_v33  ;;  %v3752_v33 = vld [vmem:[%s4864_s1 + $0xc0] ss:$8 sps:$4 sm:$0xff]  }
 0x712   : > { %v1649_v1 = vcombine.low %v1641_v17, %v1642_v19  ;;  %v1650_v6 = vcombine.low %v1643_v7, %v1644_v2  ;;  %v1890_v17 = vld [vmem:[#allocation5 + $0xa] ss:$2 sm:$0x3]  ;;  %v4520_v7 = vrot.slane %v4512_v31, %v4021_v61 }
 0x713   : > { %v1897_v36 = vmul.f32 %v4515_v5, %v1890_v17 }
 0x714   : > { %v1653_v34 = vpack.c.bf16 %v1650_v6, %v1649_v1 }
 0x716   : > { %3593 = vmatmul.mubr.msk.bf16.vlgmr.msra.gmra.mxu1 %vm1506_vm9, %v1653_v34  ;;  %v1887_v34 = vadd.f32 %v1885_v63, %v1875_v42 }
 0x717   : > { %3608 = vmatprep.mubr.msk.bf16.mxu1 %vm3852_vm7, %v4873_v10 }
 0x7d6   : > { %v1708_v39 = vpop.f32.mrf.mxu1 }
 0x7d7   : > { %v1709_v23 = vadd.f32 %v1708_v39, %v1658_v37  ;;  %v1902_v39 = vld [vmem:[#allocation5 + $0xb] ss:$2 sm:$0x3] }
 0x7d8   : > { %v3594_v13 = vpop.f32.mrf.mxu1 }
 0x7d9   : > { %v1715_v38 = vadd.f32 %v1709_v23, %v4340_v32  ;;  %v3750_v32 = vld [vmem:[%s4864_s1 + $0xe0] ss:$8 sps:$4 sm:$0xff]   ;;  %v4527_v23 = vrot.slane %v4512_v31, %v4024_v62 }
 0x7da   : > { %v1711_v51 = vpop.f32.mrf.mxu1  ;;  %3603 = vmatpush3.bf16.msra.mxu1 %v3750_v32 }
 0x7db   : > { %v1712_v57 = vadd.f32 %v1711_v51, %v1658_v37  ;;  %3604 = vmatprep.subr.bf16.mxu1 %v4873_v10 }
 0x7dc   : > { %v3595_v52 = vpop.f32.mrf.mxu1 }
 0x7dd   : > { %v1716_v3 = vadd.f32 %v1712_v57, %v4342_v55  ;;  %v3751_v55 = vld [vmem:[%s4864_s1 + $0xd0] ss:$8 sps:$4 sm:$0xff]   ;;  %v1899_v57 = vadd.f32 %v1897_v36, %v1887_v34  ;;  %v1909_v52 = vmul.f32 %v4520_v7, %v1902_v39 }
 0x7de   : > { %3605 = vmatpush3.bf16.msra.mxu1 %v3751_v55 }
 0x7df   : > { %v1717_v54 = vpack.c.bf16 %v1716_v3, %v1715_v38  ;;  %3606 = vmatprep.subr.bf16.mxu1 %v4873_v10  ;;  %v1914_v38 = vld [vmem:[#allocation5 + $0xc] ss:$2 sm:$0x3]  ;;  %v1911_v32 = vadd.f32 %v1909_v52, %v1899_v57 }
 0x7e0   : > { %v1921_v55 = vmul.f32 %v4527_v23, %v1914_v38 }
 0x7e1   : > { %3599 = vmatmul.mubr.msk.bf16.vlgmr.msra.gmra.mxu0 %vm418_vm13, %v1717_v54 }
 0x7e2   : > { %3614 = vmatprep.mubr.msk.bf16.mxu0 %vm3852_vm7, %v4873_v10  ;;  %3607 = vmatpush3.bf16.msra.mxu1 %v3752_v33  ;;  %v1923_v25 = vadd.f32 %v1921_v55, %v1911_v32 }
 0x7e3   : > { %3628 = vmatprep.subr.bf16.mxu1 %v4873_v10  ;;  %3613 = vmatpush3.bf16.msra.mxu0 %v3753_v28 }
 0x7e4   : > { %3618 = vmatprep.subr.bf16.mxu0 %v4873_v10 }
 0x8a1   : > { %v1764_v43 = vpop.f32.mrf.mxu0 }
 0x8a2   : > { %v1765_v58 = vadd.f32 %v1764_v43, %v1720_v14 }
 0x8a3   : > { %v3600_v59 = vpop.f32.mrf.mxu0 }
 0x8a4   : > { %vm1771_vm12 = vcmp.ge.f32.partialorder %v1765_v58, 0.0  ;;  %v1773_v19 = vmul.f32 0.25, %v1765_v58  ;;  %v1979_v59 = vrot.slane %v4512_v31, %v4056_v21 }
 0x8a5   : > { %v1767_v2 = vpop.f32.mrf.mxu0 }
 0x8a6   : > { %v1775_v1 = vsel %vm1771_vm12, %v1765_v58, %v1773_v19  ;;  %v1768_v6 = vadd.f32 %v1767_v2, %v1720_v14  ;;  %v1967_v14 = vrot.slane %v4512_v31, %v4068_v30  ;;  %vm3221_vm12 = vcmask 73728  }
 0x8a7   : > { %1794 = vst.msk [vmem:[#allocation5 + $0x12] sm:$0xf] %vm1793_vm11, %v1775_v1  ;;  %v3601_v37 = vpop.f32.mrf.mxu0 }
 0x8a8   : > { %1797 = vst.msk [vmem:[#allocation5 + $0x16] sm:$0xf0] %vm1796_vm14, %v1775_v1  ;;  %vm1772_vm15 = vcmp.ge.f32.partialorder %v1768_v6, 0.0  ;;  %v1774_v13 = vmul.f32 0.25, %v1768_v6 }
 0x8aa   : > { %v1776_v51 = vsel %vm1772_vm15, %v1768_v6, %v1774_v13 }
 0x8ab   : > { %1799 = vst.msk [vmem:[#allocation5 + $0x22] sm:$0xf] %vm1793_vm11, %v1776_v51 }
 0x8ac   : > { %1801 = vst.msk [vmem:[#allocation5 + $0x26] sm:$0xf0] %vm1796_vm14, %v1776_v51 }
 0x8ae   : > { %v1808_v3 = vld [vmem:[#allocation5 + $0x10] ss:$2 sm:$0x3]  ;;  %v1820_v54 = vld [vmem:[#allocation5 + $0x11] ss:$2 sm:$0x3] }
 0x8af   : > { %v1814_v33 = vmul.f32 %v1812_v45, %v1808_v3  ;;  %v1826_v28 = vmul.f32 %v1824_v15, %v1820_v54  ;;  %v1832_v60 = vld [vmem:[#allocation5 + $0x12] ss:$2 sm:$0x3]  ;;  %v1844_v24 = vld [vmem:[#allocation5 + $0x13] ss:$2 sm:$0x3]  ;;  %v1955_v45 = vrot.slane %v4512_v31, %v4065_v29 }
 0x8b0   : > { %v1838_v18 = vmul.f32 %v1836_v49, %v1832_v60  ;;  %v1856_v8 = vld [vmem:[#allocation5 + $0x14] ss:$2 sm:$0x3]  ;;  %v1850_v46 = vmul.f32 %v1848_v47, %v1844_v24  ;;  %v1925_v44 = vld [vmem:[#allocation5 + $0x10] ss:$2 sm:$0x3] }
 0x8b1   : > { %v1828_v16 = vadd.f32 %v1826_v28, %v1814_v33  ;;  %v1937_v26 = vld [vmem:[#allocation5 + $0x11] ss:$2 sm:$0x3]  ;;  %v1868_v50 = vld [vmem:[#allocation5 + $0x18] ss:$2 sm:$0x3]  ;;  %v1932_v12 = vmul.f32 %v1931_v11, %v1925_v44  ;;  %v1862_v9 = vmul.f32 %v4496_v40, %v1856_v8 }
 0x8b2   : > { %v1949_v53 = vld [vmem:[#allocation5 + $0x12] ss:$2 sm:$0x3]  ;;  %v1880_v35 = vld [vmem:[#allocation5 + $0x19] ss:$2 sm:$0x3]  ;;  %v1944_v49 = vmul.f32 %v1943_v0, %v1937_v26  ;;  %v1874_v47 = vmul.f32 %v4499_v41, %v1868_v50  ;;  %v1990_v41 = vrot.slane %v4512_v31, %v4059_v22 }
 0x8b3   : > { %v1840_v27 = vadd.f32 %v1838_v18, %v1828_v16  ;;  %v1934_v48 = vadd.f32 %v1932_v12, %v1923_v25  ;;  %v1961_v58 = vld [vmem:[#allocation5 + $0x13] ss:$2 sm:$0x3]  ;;  %v1892_v42 = vld [vmem:[#allocation5 + $0x1a] ss:$2 sm:$0x3]  ;;  %v1956_v63 = vmul.f32 %v1955_v45, %v1949_v53  ;;  %v1886_v2 = vmul.f32 %v4503_v56, %v1880_v35 }
 0x8b4   : > { %v4548_v40 = vld [vmem:[%s4865_s2 + $0x150] sm:$0xff]  ;;  %v1973_v1 = vld [vmem:[#allocation5 + $0x14] ss:$2 sm:$0x3]  ;;  %v1968_v34 = vmul.f32 %v1967_v14, %v1961_v58  ;;  %v1898_v39 = vmul.f32 %v4515_v5, %v1892_v42 }
 0x8b5   : > { %v1852_v15 = vadd.f32 %v1850_v46, %v1840_v27  ;;  %v1946_v17 = vadd.f32 %v1944_v49, %v1934_v48  ;;  %v1904_v6 = vld [vmem:[#allocation5 + $0x1b] ss:$2 sm:$0x3]  ;;  %v1984_v13 = vld [vmem:[#allocation5 + $0x18] ss:$2 sm:$0x3]  ;;  %v1980_v57 = vmul.f32 %v1979_v59, %v1973_v1  ;;  %v2002_v52 = vrot.slane %v4548_v40, %v4021_v61 }
 0x8b6   : > { %v1916_v51 = vld [vmem:[#allocation5 + $0x1c] ss:$2 sm:$0x3]  ;;  %v1910_v56 = vmul.f32 %v4520_v7, %v1904_v6  ;;  %v1996_v54 = vld [vmem:[#allocation5 + $0x19] ss:$2 sm:$0x3]  ;;  %v1991_v32 = vmul.f32 %v1990_v41, %v1984_v13  ;;  %v2014_v55 = vrot.slane %v4548_v40, %v4024_v62  ;;  %v2026_v16 = vrot.slane %v4548_v40, %v4041_v4 }
 0x8b7   : > { %v1864_v43 = vadd.f32 %v1862_v9, %v1852_v15  ;;  %v1958_v36 = vadd.f32 %v1956_v63, %v1946_v17  ;;  %v1927_v31 = vld [vmem:[#allocation5 + $0x20] ss:$2 sm:$0x3]  ;;  %v1922_v5 = vmul.f32 %v4527_v23, %v1916_v51  ;;  %v2008_v60 = vld [vmem:[#allocation5 + $0x1a] ss:$2 sm:$0x3]  ;;  %v2003_v24 = vmul.f32 %v2002_v52, %v1996_v54 }
 0x8b8   : > { %v1939_v18 = vld [vmem:[#allocation5 + $0x21] ss:$2 sm:$0x3]  ;;  %v2020_v27 = vld [vmem:[#allocation5 + $0x1b] ss:$2 sm:$0x3]  ;;  %v1933_v7 = vmul.f32 %v1931_v11, %v1927_v31  ;;  %v2015_v46 = vmul.f32 %v2014_v55, %v2008_v60  ;;  %v2038_v44 = vrot.slane %v4548_v40, %v4053_v20  ;;  %v2049_v35 = vrot.slane %v4548_v40, %v4065_v29 }
 0x8b9   : > { %v1876_v19 = vadd.f32 %v1874_v47, %v1864_v43  ;;  %v1970_v38 = vadd.f32 %v1968_v34, %v1958_v36  ;;  %v1951_v26 = vld [vmem:[#allocation5 + $0x22] ss:$2 sm:$0x3]  ;;  %v2032_v12 = vld [vmem:[#allocation5 + $0x1c] ss:$2 sm:$0x3]  ;;  %v1945_v9 = vmul.f32 %v1943_v0, %v1939_v18  ;;  %v2027_v23 = vmul.f32 %v2026_v16, %v2020_v27 }
 0x8ba   : > { %v1963_v53 = vld [vmem:[#allocation5 + $0x23] ss:$2 sm:$0x3]  ;;  %v1957_v43 = vmul.f32 %v1955_v45, %v1951_v26  ;;  %v2043_v47 = vld [vmem:[#allocation5 + $0x20] ss:$2 sm:$0x3]  ;;  %v2039_v58 = vmul.f32 %v2038_v44, %v2032_v12 }
 0x8bb   : > { %v1888_v37 = vadd.f32 %v1886_v2, %v1876_v19  ;;  %v1982_v33 = vadd.f32 %v1980_v57, %v1970_v38  ;;  %v1975_v11 = vld [vmem:[#allocation5 + $0x24] ss:$2 sm:$0x3]  ;;  %v1969_v17 = vmul.f32 %v1967_v14, %v1963_v53  ;;  %v2061_v19 = vrot.slane %v4548_v40, %v4068_v30  ;;  %v1986_v2 = vld [vmem:[#allocation5 + $0x28] ss:$2 sm:$0x3] }
 0x8bc   : > { %v2050_v1 = vmul.f32 %v2049_v35, %v2043_v47  ;;  %v2055_v0 = vld [vmem:[#allocation5 + $0x21] ss:$2 sm:$0x3]  ;;  %v1981_v36 = vmul.f32 %v1979_v59, %v1975_v11  ;;  %v1992_v51 = vmul.f32 %v1990_v41, %v1986_v2  ;;  %v2073_v57 = vrot.slane %v4548_v40, %v4056_v21  ;;  %v2010_v38 = vld [vmem:[#allocation5 + $0x2a] ss:$2 sm:$0x3] }
 0x8bd   : > { %v1900_v3 = vadd.f32 %v1898_v39, %v1888_v37  ;;  %v1993_v8 = vadd.f32 %v1991_v32, %v1982_v33  ;;  %v1998_v37 = vld [vmem:[#allocation5 + $0x29] ss:$2 sm:$0x3]  ;;  %v2062_v45 = vmul.f32 %v2061_v19, %v2055_v0  ;;  %v3853_v32 = vmov 1983009808  }
 0x8be   : > { %v2105_v31 = vunpack.c.l.s4 %v3853_v32  ;;  %v2022_v33 = vld [vmem:[#allocation5 + $0x2b] ss:$2 sm:$0x3]  ;;  %v2045_v60 = vld [vmem:[#allocation5 + $0x30] ss:$2 sm:$0x3] }
 0x8bf   : > { %v1912_v28 = vadd.f32 %v1910_v56, %v1900_v3  ;;  %v2005_v50 = vadd.f32 %v2003_v24, %v1993_v8  ;;  %v2067_v3 = vld [vmem:[#allocation5 + $0x22] ss:$2 sm:$0x3]  ;;  %v2004_v56 = vmul.f32 %v2002_v52, %v1998_v37  ;;  %v2085_v24 = vrot.slane %v4548_v40, %v4059_v22  ;;  %v2034_v41 = vld [vmem:[#allocation5 + $0x2c] ss:$2 sm:$0x3] }
 0x8c0   : > { %v2074_v59 = vmul.f32 %v2073_v57, %v2067_v3  ;;  %v2079_v18 = vld [vmem:[#allocation5 + $0x23] ss:$2 sm:$0x3]  ;;  %v2040_v52 = vmul.f32 %v2038_v44, %v2034_v41  ;;  %v2051_v12 = vmul.f32 %v2049_v35, %v2045_v60  ;;  %v2093_v11 = vld [vmem:[#allocation5 + $0x34] ss:$2 sm:$0x3] }
 0x8c1   : > { %v1924_v25 = vadd.f32 %v1922_v5, %v1912_v28  ;;  %v2017_v49 = vadd.f32 %v2015_v46, %v2005_v50  ;;  %v2016_v5 = vmul.f32 %v2014_v55, %v2010_v38  ;;  %v2057_v46 = vld [vmem:[#allocation5 + $0x31] ss:$2 sm:$0x3]  ;;  %v3391_v50 = vld [vmem:[%s4865_s2 + $0x160] ss:$0 sm:$0xff]  ;;  %v2086_v55 = vmul.f32 %v2085_v24, %v2079_v18 }
 0x8c2   : > { %v2063_v53 = vmul.f32 %v2061_v19, %v2057_v46  ;;  %v2099_v19 = vmul.f32 %v3391_v50, %v2093_v11  ;;  %v3756_v46 = vld [vmem:[%s4864_s1 + $0x100] ss:$8 sps:$4 sm:$0xff]  }
 0x8c3   : > { %v1935_v15 = vadd.f32 %v1933_v7, %v1924_v25  ;;  %v2029_v42 = vadd.f32 %v2027_v23, %v2017_v49  ;;  %v2028_v25 = vmul.f32 %v2026_v16, %v2022_v33  ;;  %v2106_v7 = vunpack.c.0.s8 %v2105_v31  ;;  %v4874_v49 = vld [vmem:[#allocation10_spill] sm:$0xff] }
 0x8c4   : > { %v2081_v16 = vld [vmem:[#allocation5 + $0x33] ss:$2 sm:$0x3] }
 0x8c5   : > { %v1947_v48 = vadd.f32 %v1945_v9, %v1935_v15  ;;  %v2041_v6 = vadd.f32 %v2039_v58, %v2029_v42  ;;  %v2069_v15 = vld [vmem:[#allocation5 + $0x32] ss:$2 sm:$0x3]  ;;  %v2091_v9 = vld [vmem:[#allocation5 + $0x24] ss:$2 sm:$0x3]  ;;  %v2087_v35 = vmul.f32 %v2085_v24, %v2081_v16 }
 0x8c6   : > { %v2075_v47 = vmul.f32 %v2073_v57, %v2069_v15  ;;  %v2098_v58 = vmul.f32 %v3391_v50, %v2091_v9  ;;  %v2215_v50 = vld [vmem:[%s4865_s2 + $0x190] ss:$0 sm:$0xff] }
 0x8c7   : > { %v1959_v63 = vadd.f32 %v1957_v43, %v1947_v48  ;;  %v2052_v39 = vadd.f32 %v2050_v1, %v2041_v6  ;;  %v4576_v48 = vsub.s32 %v2106_v7, %v4874_v49  ;;  %v2102_v43 = vld [vmem:[%s4865_s2 + $0x170] ss:$0 sm:$0xff] }
 0x8c8   : > { %v3755_v7 = vld [vmem:[%s4864_s1 + $0x110] ss:$8 sps:$4 sm:$0xff]  }
 0x8c9   : > { %v1971_v34 = vadd.f32 %v1969_v17, %v1959_v63  ;;  %v2064_v54 = vadd.f32 %v2062_v45, %v2052_v39  ;;  %v2110_v17 = vrot.slane %v2102_v43, %v4576_v48 }
 0x8cb   : > { %v1983_v13 = vadd.f32 %v1981_v36, %v1971_v34  ;;  %v2076_v27 = vadd.f32 %v2074_v59, %v2064_v54  ;;  %v2111_v0 = vcombine.high %v2110_v17, %v2110_v17 }
 0x8cd   : > { %v1994_v14 = vadd.f32 %v1992_v51, %v1983_v13  ;;  %v2088_v40 = vadd.f32 %v2086_v55, %v2076_v27  ;;  %v3754_v27 = vld [vmem:[%s4864_s1 + $0x120] ss:$8 sps:$4 sm:$0xff]  }
 0x8cf   : > { %v2006_v28 = vadd.f32 %v2004_v56, %v1994_v14  ;;  %v2100_v63 = vadd.f32 %v2098_v58, %v2088_v40 }
 0x8d1   : > { %v2018_v8 = vadd.f32 %v2016_v5, %v2006_v28  ;;  %v2114_v6 = vadd.f32 %v2110_v17, %v2100_v63  ;;  %v2149_v5 = vld [vmem:[%s4865_s2 + $0x180] ss:$0 sm:$0xff]  ;;  %v3758_v17 = vld [vmem:[%s4864_s1 + $0x130] ss:$8 sps:$4 sm:$0xff]  }
 0x8d3   : > { %v2030_v26 = vadd.f32 %v2028_v25, %v2018_v8  ;;  %v2118_v37 = vmul.f32 0.25, %v2114_v6  ;;  %vm2116_vm0 = vcmp.ge.f32.partialorder %v2114_v6, 0.0 }
 0x8d5   : > { %v2042_v23 = vadd.f32 %v2040_v52, %v2030_v26  ;;  %v2120_v13 = vsel %vm2116_vm0, %v2114_v6, %v2118_v37  ;;  %v3757_v26 = vld [vmem:[%s4864_s1 + $0x140] ss:$0 sps:$4 sm:$0xff]   ;;  %v3759_v37 = vld [vmem:[%s4864_s1 + $0x168] ss:$8 sps:$4 sm:$0xff]  }
 0x8d6   : > { %v2384_v52 = vsel %vm325_vm2, %v3757_v26, 0 }
 0x8d7   : > { %v2053_v44 = vadd.f32 %v2051_v12, %v2042_v23 }
 0x8d9   : > { %v2065_v42 = vadd.f32 %v2063_v53, %v2053_v44 }
 0x8db   : > { %v2077_v2 = vadd.f32 %v2075_v47, %v2065_v42 }
 0x8dd   : > { %v2089_v1 = vadd.f32 %v2087_v35, %v2077_v2  ;;  %v2304_v2 = vld [vmem:[%s4865_s2 + $0x1a0] ss:$0 sm:$0xff] }
 0x8df   : > { %v2101_v34 = vadd.f32 %v2099_v19, %v2089_v1 }
 0x8e1   : > { %v2115_v36 = vadd.f32 %v2111_v0, %v2101_v34 }
 0x8e3   : > { %vm2117_vm1 = vcmp.ge.f32.partialorder %v2115_v36, 0.0  ;;  %v2119_v39 = vmul.f32 0.25, %v2115_v36 }
 0x8e5   : > { %v2121_v51 = vsel %vm2117_vm1, %v2115_v36, %v2119_v39  ;;  %v3760_v39 = vld [vmem:[%s4864_s1 + $0x158] ss:$8 sps:$4 sm:$0xff]  }
 0x8e6   : > { %v2124_v45 = vcombine.low %v2120_v13, %v2121_v51 }
 0x8e8   : > { %v2131_v57 = vrot.slane %v2124_v45, %v4576_v48  ;;  %v2370_v45 = vld [vmem:[%s4865_s2 + $0x1b0] ss:$0 sm:$0xff] }
 0x8ea   : > { %v2133_v38 = vsel %vm1793_vm11, %v2131_v57, 0.0  ;;  %v2442_v57 = vld [vmem:[%s4865_s2 + $0x1c0] sm:$0xff] }
 0x8eb   : > { %v2134_v3 = vrot.slane %v2133_v38, 4 }
 0x8ed   : > { %v2135_v14 = vadd.f32 %v2134_v3, %v2133_v38 }
 0x8ef   : > { %v2136_v56 = vrot.slane %v2135_v14, 2 }
 0x8f1   : > { %v2137_v54 = vadd.f32 %v2136_v56, %v2135_v14  ;;  %v2449_v14 = vrot.slane %v2442_v57, %v4021_v61  ;;  %v2459_v56 = vrot.slane %v2442_v57, %v4024_v62 }
 0x8f3   : > { %v2138_v32 = vrot.slane %v2137_v54, 1 }
 0x8f5   : > { %v2139_v31 = vadd.f32 %v2138_v32, %v2137_v54  ;;  %v2444_v54 = vld [vmem:[#allocation6] sm:$0x3] }
 0x8f6   : > { %v2454_v32 = vld [vmem:[#allocation6 + $0x1] sm:$0x3] }
 0x8f7   : > { %v2141_v33 = vmul.f32 0.25, %v2139_v31 }
 0x8f9   : > { %v2142_v28 = vpack.c.bf16 %v2141_v33, %v2141_v33 }
 0x8fb   : > { %3609 = vmatmul.mubr.msk.bf16.vlgmr.msra.gmra.mxu1 %vm1777_vm8, %v2142_v28 }
 0x8fc   : > { %3632 = vmatprep.mubr.msk.bf16.mxu1 %vm3852_vm7, %v4873_v10  ;;  %3629 = vmatpush3.bf16.msra.mxu1 %v2384_v52  ;;  %v2489_v52 = vrot.slane %v2442_v57, %v4065_v29 }
 0x8fd   : > { %3630 = vmatprep.subr.bf16.mxu1 %v4873_v10 }
 0x900   : > { %3631 = vmatpush3.bf16.msra.mxu1 %v3758_v17  ;;  %v2505_v17 = vld [vmem:[#allocation6 + $0xc] sm:$0x3] }
 0x901   : > { %3636 = vmatprep.subr.bf16.mxu1 %v4873_v10 }
 0x9bb   : > { %v2205_v60 = vpop.f32.mrf.mxu1 }
 0x9bc   : > { %v2206_v59 = vadd.f32 %v2205_v60, %v2149_v5  ;;  %v2450_v60 = vmul.f32 %v2449_v14, %v2444_v54 }
 0x9bd   : > { %v3610_v24 = vpop.f32.mrf.mxu1 }
 0x9be   : > { %v2211_v41 = vmax.f32 %v2206_v59, 0.0  ;;  %v2460_v59 = vmul.f32 %v2459_v56, %v2454_v32  ;;  %v2469_v24 = vrot.slane %v2442_v57, %v4041_v4 }
 0x9bf   : > { %v2208_v18 = vpop.f32.mrf.mxu1 }
 0x9c0   : > { %v2212_v8 = vpack.c.bf16 %v2211_v41, %v2211_v41  ;;  %v2464_v41 = vld [vmem:[#allocation6 + $0x2] sm:$0x3] }
 0x9c1   : > { %v3611_v25 = vpop.f32.mrf.mxu1 }
 0x9c2   : > { %3615 = vmatmul.mubr.msk.bf16.vlgmr.msra.gmra.mxu0 %vm418_vm13, %v2212_v8  ;;  %v2470_v8 = vmul.f32 %v2469_v24, %v2464_v41  ;;  %v2462_v25 = vadd.f32 %v2460_v59, %v2450_v60 }
 0x9c3   : > { %3624 = vmatprep.mubr.msk.bf16.mxu0 %vm3852_vm7, %v4873_v10  ;;  %3619 = vmatpush3.bf16.msra.mxu0 %v3754_v27  ;;  %v2479_v27 = vrot.slane %v2442_v57, %v4053_v20 }
 0x9c4   : > { %3620 = vmatprep.subr.bf16.mxu0 %v4873_v10 }
 0x9c7   : > { %3621 = vmatpush3.bf16.msra.mxu0 %v3755_v7 }
 0x9c8   : > { %3622 = vmatprep.subr.bf16.mxu0 %v4873_v10 }
 0x9cb   : > { %3623 = vmatpush3.bf16.msra.mxu0 %v3756_v46 }
 0x9cc   : > { %3646 = vmatprep.subr.bf16.mxu0 %v4873_v10 }
 0xa82   : > { %v2259_v12 = vpop.f32.mrf.mxu0 }
 0xa83   : > { %v2260_v55 = vadd.f32 %v2259_v12, %v2215_v50  ;;  %v2472_v50 = vadd.f32 %v2470_v8, %v2462_v25 }
 0xa84   : > { %v3616_v15 = vpop.f32.mrf.mxu0 }
 0xa85   : > { %v2265_v9 = vmul.f32 0.16666667, %v2260_v55 }
 0xa86   : > { %v2262_v23 = vpop.f32.mrf.mxu0 }
 0xa87   : > { %v2266_v53 = vadd.f32 0.5, %v2265_v9 }
 0xa88   : > { %v3617_v40 = vpop.f32.mrf.mxu0 }
 0xa89   : > { %v2267_v49 = vmax.f32 %v2266_v53, 0.0  ;;  %v2499_v53 = vrot.slane %v2442_v57, %v4068_v30 }
 0xa8b   : > { %v2268_v16 = vmin.f32 %v2267_v49, 1.0 }
 0xa8d   : > { %v2272_v43 = vrot.slane %v2268_v16, %v4021_v61 }
 0xa8f   : > { %v2280_v44 = vrot.slane %v2272_v43, %v4576_v48 }
 0xa91   : > { %v2281_v47 = vcombine.high %v2280_v44, %v2280_v44  ;;  %v2284_v58 = vmul.f32 %v2280_v44, %v2120_v13  ;;  %v3761_v13 = vld [vmem:[%s4864_s1 + $0x148] ss:$8 sps:$4 sm:$0xff]  }
 0xa93   : > { %v2285_v11 = vmul.f32 %v2281_v47, %v2121_v51  ;;  %v3764_v51 = vld [vmem:[%s4864_s1 + $0x178] ss:$8 sps:$4 sm:$0xff]   ;;  %v2509_v47 = vrot.slane %v2442_v57, %v4056_v21 }
 0xa95   : > { %v2288_v42 = vcombine.low %v2284_v58, %v2285_v11 }
 0xa97   : > { %v2295_v35 = vrot.slane %v2288_v42, %v4576_v48 }
 0xa99   : > { %v2297_v63 = vpack.c.bf16 %v2295_v35, %v2295_v35 }
 0xa9b   : > { %3625 = vmatmul.mubr.msk.bf16.vlgmr.msra.gmra.mxu0 %vm1777_vm8, %v2297_v63 }
 0xa9c   : > { %3648 = vmatprep.mubr.msk.bf16.mxu0 %vm3852_vm7, %v4873_v10  ;;  %3647 = vmatpush3.bf16.msra.mxu0 %v3764_v51  ;;  %v2511_v51 = vmul.f32 %v2509_v47, %v2505_v17 }
 0xa9d   : > { %3652 = vmatprep.subr.bf16.mxu0 %v4873_v10 }
 0xb5b   : > { %v2360_v19 = vpop.f32.mrf.mxu0 }
 0xb5c   : > { %v4626_v1 = vadd.f32 %v2360_v19, %v2304_v2  ;;  %v2519_v2 = vrot.slane %v2442_v57, %v4059_v22  ;;  %v2525_v57 = vld [vmem:[#allocation6 + $0xe] sm:$0x3] }
 0xb5d   : > { %v3626_v0 = vpop.f32.mrf.mxu0 }
 0xb5e   : > { %v4630_v6 = vpack.c.bf16 %v4626_v1, %v4626_v1 }
 0xb5f   : > { %v2363_v34 = vpop.f32.mrf.mxu0 }
 0xb60   : > { %3633 = vmatmul.mubr.msk.bf16.vlgmr.msra.gmra.mxu1 %vm947_vm4, %v4630_v6 }
 0xb61   : > { %v3627_v36 = vpop.f32.mrf.mxu0  ;;  %3642 = vmatprep.mubr.msk.bf16.mxu1 %vm3852_vm7, %v4873_v10  ;;  %3637 = vmatpush3.bf16.msra.mxu1 %v3759_v37  ;;  %v2515_v37 = vld [vmem:[#allocation6 + $0xd] sm:$0x3] }
 0xb62   : > { %3638 = vmatprep.subr.bf16.mxu1 %v4873_v10 }
 0xb65   : > { %3639 = vmatpush3.bf16.msra.mxu1 %v3760_v39  ;;  %v3405_v39 = vld [vmem:[%s4865_s2 + $0x1d0] ss:$0 sm:$0xff] }
 0xb66   : > { %3640 = vmatprep.subr.bf16.mxu1 %v4873_v10 }
 0xb69   : > { %3641 = vmatpush3.bf16.msra.mxu1 %v3761_v13 }
 0xb6a   : > { %3662 = vmatprep.subr.bf16.mxu1 %v4873_v10 }
 0xc20   : > { %v2420_v38 = vpop.f32.mrf.mxu1 }
 0xc21   : > { %v2421_v3 = vadd.f32 %v2420_v38, %v2370_v45  ;;  %v2534_v38 = vld [vmem:[%s4865_s2 + $0x1e0] ss:$0 sm:$0xff] }
 0xc22   : > { %v3634_v31 = vpop.f32.mrf.mxu1 }
 0xc23   : > { %vm2426_vm5 = vcmp.ge.f32.partialorder %v2421_v3, 0.0  ;;  %v2427_v33 = vmul.f32 0.25, %v2421_v3  ;;  %v2542_v31 = vrot.slane %v2534_v38, %v4576_v48 }
 0xc24   : > { %v2423_v28 = vpop.f32.mrf.mxu1 }
 0xc25   : > { %v2428_v5 = vsel %vm2426_vm5, %v2421_v3, %v2427_v33  ;;  %v2531_v28 = vmul.f32 %v3405_v39, %v2525_v57  ;;  %v2543_v59 = vcombine.high %v2542_v31, %v2542_v31 }
 0xc26   : > { %2438 = vst.msk [vmem:[#allocation6 + $0x5] sm:$0x3] %vm1784_vm10, %v2428_v5  ;;  %v3635_v18 = vpop.f32.mrf.mxu1 }
 0xc27   : > { %2441 = vst.msk [vmem:[#allocation6 + $0x7] sm:$0xc] %vm2440_vm6, %v2428_v5 }
 0xc2d   : > { %v2445_v7 = vld [vmem:[#allocation6 + $0x4] sm:$0x3]  ;;  %v2465_v26 = vld [vmem:[#allocation6 + $0x6] sm:$0x3] }
 0xc2e   : > { %v2455_v46 = vld [vmem:[#allocation6 + $0x5] sm:$0x3]  ;;  %v2451_v12 = vmul.f32 %v2449_v14, %v2445_v7  ;;  %v2475_v4 = vld [vmem:[#allocation6 + $0x8] sm:$0x3]  ;;  %v2471_v49 = vmul.f32 %v2469_v24, %v2465_v26  ;;  %v2495_v42 = vld [vmem:[#allocation6 + $0xa] sm:$0x3] }
 0xc2f   : > { %v2461_v55 = vmul.f32 %v2459_v56, %v2455_v46  ;;  %v2474_v15 = vld [vmem:[#allocation6 + $0x4] sm:$0x3]  ;;  %v2494_v16 = vld [vmem:[#allocation6 + $0x6] sm:$0x3]  ;;  %v2485_v43 = vld [vmem:[#allocation6 + $0x9] sm:$0x3]  ;;  %v2481_v11 = vmul.f32 %v2479_v27, %v2475_v4  ;;  %v2501_v13 = vmul.f32 %v2499_v53, %v2495_v42  ;;  %v2521_v56 = vmul.f32 %v2519_v2, %v2515_v37 }
 0xc30   : > { %v2484_v9 = vld [vmem:[#allocation6 + $0x5] sm:$0x3]  ;;  %v2480_v23 = vmul.f32 %v2479_v27, %v2474_v15  ;;  %v2504_v29 = vld [vmem:[#allocation6 + $0x8] sm:$0x3]  ;;  %v2500_v63 = vmul.f32 %v2499_v53, %v2494_v16  ;;  %v2491_v19 = vmul.f32 %v2489_v52, %v2485_v43  ;;  %v2524_v45 = vld [vmem:[#allocation6 + $0xa] sm:$0x3] }
 0xc31   : > { %v2463_v40 = vadd.f32 %v2461_v55, %v2451_v12  ;;  %v2490_v44 = vmul.f32 %v2489_v52, %v2484_v9  ;;  %v2514_v30 = vld [vmem:[#allocation6 + $0x9] sm:$0x3]  ;;  %v2510_v36 = vmul.f32 %v2509_v47, %v2504_v29  ;;  %v2530_v32 = vmul.f32 %v3405_v39, %v2524_v45  ;;  %v2580_v43 = vld [vmem:[%s4865_s2 + $0x1f0] ss:$0 sm:$0xff] }
 0xc32   : > { %v2482_v20 = vadd.f32 %v2480_v23, %v2472_v50  ;;  %v2520_v22 = vmul.f32 %v2519_v2, %v2514_v30  ;;  %v3762_v23 = vld [vmem:[%s4864_s1 + $0x1e0] ss:$0 sps:$4 sm:$0xff]   ;;  %v3763_v16 = vld [vmem:[%s4864_s1 + $0x1d0] ss:$8 sps:$4 sm:$0xff]   ;;  %v3768_v30 = vld [vmem:[%s4864_s1 + $0x1c8] ss:$0 sps:$4 sm:$0xff]  }
 0xc33   : > { %v2473_v58 = vadd.f32 %v2471_v49, %v2463_v40  ;;  %v2815_v49 = vsel %vm325_vm2, %v3762_v23, 0  ;;  %v3765_v2 = vld [vmem:[%s4864_s1 + $0x1a8] ss:$8 sps:$4 sm:$0xff]  }
 0xc34   : > { %v2492_v35 = vadd.f32 %v2490_v44, %v2482_v20 }
 0xc35   : > { %v2483_v0 = vadd.f32 %v2481_v11, %v2473_v58 }
 0xc36   : > { %v2502_v34 = vadd.f32 %v2500_v63, %v2492_v35 }
 0xc37   : > { %v2493_v21 = vadd.f32 %v2491_v19, %v2483_v0  ;;  %v3766_v19 = vld [vmem:[%s4864_s1 + $0x198] ss:$8 sps:$4 sm:$0xff]   ;;  %v3767_v0 = vld [vmem:[%s4864_s1 + $0x188] ss:$8 sps:$4 sm:$0xff]  }
 0xc38   : > { %v2512_v3 = vadd.f32 %v2510_v36, %v2502_v34  ;;  %v2870_v34 = vsel %vm325_vm2, %v3768_v30, 0  ;;  %v2646_v36 = vld [vmem:[%s4865_s2 + $0x200] ss:$0 sm:$0xff] }
 0xc39   : > { %v2503_v14 = vadd.f32 %v2501_v13, %v2493_v21 }
 0xc3a   : > { %v2522_v54 = vadd.f32 %v2520_v22, %v2512_v3 }
 0xc3b   : > { %v2513_v33 = vadd.f32 %v2511_v51, %v2503_v14 }
 0xc3c   : > { %v2532_v5 = vadd.f32 %v2530_v32, %v2522_v54 }
 0xc3d   : > { %v2523_v60 = vadd.f32 %v2521_v56, %v2513_v33 }
 0xc3e   : > { %v2546_v24 = vadd.f32 %v2542_v31, %v2532_v5  ;;  %v3769_v5 = vld [vmem:[%s4864_s1 + $0x1b8] ss:$8 sps:$4 sm:$0xff]  }
 0xc3f   : > { %v2533_v41 = vadd.f32 %v2531_v28, %v2523_v60  ;;  %v2735_v60 = vld [vmem:[%s4865_s2 + $0x210] ss:$0 sm:$0xff] }
 0xc40   : > { %v2550_v8 = vmul.f32 0.25, %v2546_v24  ;;  %vm2548_vm9 = vcmp.ge.f32.partialorder %v2546_v24, 0.0 }
 0xc41   : > { %v2547_v18 = vadd.f32 %v2543_v59, %v2533_v41 }
 0xc42   : > { %v4678_v27 = vsel %vm2548_vm9, %v2546_v24, %v2550_v8 }
 0xc43   : > { %vm2549_vm10 = vcmp.ge.f32.partialorder %v2547_v18, 0.0  ;;  %v2551_v25 = vmul.f32 0.25, %v2547_v18 }
 0xc45   : > { %v4680_v7 = vsel %vm2549_vm10, %v2547_v18, %v2551_v25 }
 0xc46   : > { %v2556_v46 = vcombine.low %v4678_v27, %v4680_v7 }
 0xc48   : > { %v2563_v26 = vrot.slane %v2556_v46, %v4576_v48 }
 0xc4a   : > { %v2565_v52 = vsel %vm1793_vm11, %v2563_v26, 0.0  ;;  %v3774_v26 = vld [vmem:[%s4864_s1 + $0x1ec] ss:$8 sps:$4 sm:$0xff]   ;;  %vm3012_vm11 = vcmask 125952  }
 0xc4b   : > { %v2566_v50 = vrot.slane %v2565_v52, 4 }
 0xc4d   : > { %v2567_v12 = vadd.f32 %v2566_v50, %v2565_v52  ;;  %v3854_v52 = vmov 0  }
 0xc4f   : > { %v2568_v55 = vrot.slane %v2567_v12, 2 }
 0xc51   : > { %v2569_v15 = vadd.f32 %v2568_v55, %v2567_v12  ;;  %v3772_v12 = vld [vmem:[%s4864_s1 + $0x1e8] ss:$8 sps:$4 sm:$0xff]  }
 0xc52   : > { %v3776_v55 = vld [vmem:[%s4864_s1 + $0x260] ss:$8 sps:$4 sm:$0xff]  }
 0xc53   : > { %v2570_v9 = vrot.slane %v2569_v15, 1 }
 0xc55   : > { %v2571_v4 = vadd.f32 %v2570_v9, %v2569_v15  ;;  %v3777_v15 = vld [vmem:[%s4864_s1 + $0x250] ss:$8 sps:$4 sm:$0xff]  }
 0xc57   : > { %v2572_v53 = vmul.f32 0.25, %v2571_v4  ;;  %v2912_v4 = vld [vmem:[%s4865_s2 + $0x220] ss:$0 sm:$0xff] }
 0xc59   : > { %v2573_v40 = vpack.c.bf16 %v2572_v53, %v2572_v53 }
 0xc5b   : > { %3643 = vmatmul.mubr.msk.bf16.vlgmr.msra.gmra.mxu1 %vm1777_vm8, %v2573_v40 }
 0xc5c   : > { %3663 = vmatpush3.bf16.msra.mxu1 %v2815_v49  ;;  %3666 = vmatprep.mubr.msk.bf16.mxu1 %vm3852_vm7, %v4873_v10 }
 0xc5d   : > { %3664 = vmatprep.subr.bf16.mxu1 %v4873_v10 }
 0xc60   : > { %3665 = vmatpush3.bf16.msra.mxu1 %v3763_v16 }
 0xc61   : > { %3670 = vmatprep.subr.bf16.mxu1 %v4873_v10 }
 0xc63   : > { %3667 = vmatmul.mubr.msk.bf16.vlgmr.msra.gmra.mxu1 %vm947_vm4, %v4630_v6 }
 0xc64   : > { %3674 = vmatprep.mubr.msk.bf16.mxu1 %vm3852_vm7, %v4873_v10  ;;  %3671 = vmatpush3.bf16.msra.mxu1 %v2870_v34 }
 0xc65   : > { %3672 = vmatprep.subr.bf16.mxu1 %v4873_v10 }
 0xc68   : > { %3673 = vmatpush3.bf16.msra.mxu1 %v3769_v5 }
 0xc69   : > { %3100 = vmatprep.subr.bf16.mxu1 %v3854_v52 }
 0xd1b   : > { %v2636_v44 = vpop.f32.mrf.mxu1 }
 0xd1c   : > { %v2637_v20 = vadd.f32 %v2636_v44, %v2580_v43 }
 0xd1d   : > { %v3644_v47 = vpop.f32.mrf.mxu1 }
 0xd1e   : > { %v2642_v58 = vmax.f32 %v2637_v20, 0.0  ;;  %v3778_v47 = vld [vmem:[%s4864_s1 + $0x240] ss:$8 sps:$4 sm:$0xff]  }
 0xd1f   : > { %v2639_v11 = vpop.f32.mrf.mxu1 }
 0xd20   : > { %v2643_v29 = vpack.c.bf16 %v2642_v58, %v2642_v58  ;;  %v3779_v58 = vld [vmem:[%s4864_s1 + $0x230] ss:$8 sps:$4 sm:$0xff]   ;;  %v3780_v11 = vld [vmem:[%s4864_s1 + $0x220] ss:$8 sps:$4 sm:$0xff]  }
 0xd21   : > { %v3645_v42 = vpop.f32.mrf.mxu1 }
 0xd22   : > { %3649 = vmatmul.mubr.msk.bf16.vlgmr.msra.gmra.mxu0 %vm418_vm13, %v2643_v29  ;;  %v3781_v29 = vld [vmem:[%s4864_s1 + $0x210] ss:$8 sps:$4 sm:$0xff]   ;;  %v3784_v42 = vld [vmem:[%s4864_s1 + $0x2c0] ss:$8 sps:$4 sm:$0xff]  }
 0xd23   : > { %v4706_v35 = vpop.f32.mrf.mxu1  ;;  %3658 = vmatprep.mubr.msk.bf16.mxu0 %vm3852_vm7, %v4873_v10  ;;  %3653 = vmatpush3.bf16.msra.mxu0 %v3765_v2 }
 0xd24   : > { %3654 = vmatprep.subr.bf16.mxu0 %v4873_v10 }
 0xd25   : > { %v3668_v6 = vpop.f32.mrf.mxu1 }
 0xd26   : > { %v3785_v6 = vld [vmem:[%s4864_s1 + $0x2b0] ss:$8 sps:$4 sm:$0xff]  }
 0xd27   : > { %v2854_v63 = vpop.f32.mrf.mxu1  ;;  %3655 = vmatpush3.bf16.msra.mxu0 %v3766_v19 }
 0xd28   : > { %3656 = vmatprep.subr.bf16.mxu0 %v4873_v10  ;;  %v3783_v63 = vld [vmem:[%s4864_s1 + $0x280] ss:$8 sps:$4 sm:$0xff]  }
 0xd29   : > { %v3669_v17 = vpop.f32.mrf.mxu1 }
 0xd2a   : > { %v3422_v17 = vld [vmem:[%s4865_s2 + $0x230] ss:$8 sm:$0x3] }
 0xd2b   : > { %3657 = vmatpush3.bf16.msra.mxu0 %v3767_v0  ;;  %v2927_v2 = vrot.slane %v3422_v17, %v4021_v61  ;;  %v2931_v19 = vrot.slane %v3422_v17, %v4024_v62 }
 0xde2   : > { %v2690_v37 = vpop.f32.mrf.mxu0 }
 0xde3   : > { %v2691_v39 = vadd.f32 %v2690_v37, %v2646_v36 }
 0xde4   : > { %v3650_v21 = vpop.f32.mrf.mxu0 }
 0xde5   : > { %v2696_v13 = vmul.f32 0.16666667, %v2691_v39 }
 0xde6   : > { %v2693_v51 = vpop.f32.mrf.mxu0 }
 0xde7   : > { %v2697_v45 = vadd.f32 0.5, %v2696_v13 }
 0xde8   : > { %v3651_v38 = vpop.f32.mrf.mxu0 }
 0xde9   : > { %v2698_v3 = vmax.f32 %v2697_v45, 0.0 }
 0xdeb   : > { %v2699_v22 = vmin.f32 %v2698_v3, 1.0 }
 0xded   : > { %v2703_v57 = vrot.slane %v2699_v22, %v4021_v61 }
 0xdef   : > { %v2711_v14 = vrot.slane %v2703_v57, %v4576_v48 }
 0xdf1   : > { %v2712_v56 = vcombine.high %v2711_v14, %v2711_v14  ;;  %v2715_v54 = vmul.f32 %v2711_v14, %v4678_v27  ;;  %v2920_v27 = vld [vmem:[%s4864_s1 + $0x1f8] sm:$0xff] }
 0xdf2   : > { %v3425_v46 = vcombine.low %v2920_v27, %v2920_v27 }
 0xdf3   : > { %v2716_v32 = vmul.f32 %v2712_v56, %v4680_v7  ;;  %v3426_v7 = vcombine.high %v2920_v27, %v2920_v27 }
 0xdf4   : > { %v2953_v50 = vsel %vm325_vm2, %v3425_v46, 0 }
 0xdf5   : > { %v2719_v31 = vcombine.low %v2715_v54, %v2716_v32  ;;  %3427 = vmatprep.subr.msk.bf16.mxu0 %vm325_vm2, %v3426_v7 }
 0xdf7   : > { %v2726_v33 = vrot.slane %v2719_v31, %v4576_v48 }
 0xdf9   : > { %v2728_v28 = vpack.c.bf16 %v2726_v33, %v2726_v33 }
 0xdfb   : > { %3659 = vmatmul.mubr.msk.bf16.vlgmr.msra.gmra.mxu0 %vm1777_vm8, %v2728_v28 }
 0xdfc   : > { %2990 = vmatprep.mubr.bf16.mxu0 %v3854_v52  ;;  %2971 = vmatpush1.bf16.msra.mxu0 %v2953_v50 }
 0xdfd   : > { %2972 = vmatprep.subr.bf16.mxu0 %v3774_v26 }
 0xe00   : > { %2973 = vmatpush1.bf16.msra.mxu0 %v3772_v12 }
 0xe01   : > { %3678 = vmatprep.subr.bf16.mxu0 %v4873_v10 }
 0xebb   : > { %v2791_v59 = vpop.f32.mrf.mxu0 }
 0xebc   : > { %v2792_v24 = vadd.f32 %v2791_v59, %v2735_v60 }
 0xebd   : > { %v3660_v41 = vpop.f32.mrf.mxu0 }
 0xebe   : > { %v2797_v18 = vadd.f32 %v2792_v24, %v4626_v1  ;;  %v3775_v1 = vld [vmem:[%s4864_s1 + $0x270] ss:$8 sps:$4 sm:$0xff]  }
 0xebf   : > { %v2794_v8 = vpop.f32.mrf.mxu0 }
 0xec0   : > { %v2798_v25 = vpack.c.bf16 %v2797_v18, %v2797_v18  ;;  %v3786_v18 = vld [vmem:[%s4864_s1 + $0x2a0] ss:$8 sps:$4 sm:$0xff]   ;;  %v3787_v8 = vld [vmem:[%s4864_s1 + $0x290] ss:$8 sps:$4 sm:$0xff]  }
 0xec1   : > { %v3661_v48 = vpop.f32.mrf.mxu0 }
 0xec2   : > { %3675 = vmatmul.mubr.msk.bf16.vlgmr.msra.gmra.mxu1 %vm947_vm4, %v2798_v25  ;;  %v3042_v25 = vld [vmem:[%s4865_s2 + $0x240] ss:$0 sm:$0xff] }
 0xec3   : > { %3101 = vmatpush1.bf16.msra.mxu1 %v3775_v1 }
 0xec4   : > { %3102 = vmatprep.subr.bf16.mxu1 %v3854_v52 }
 0xec7   : > { %3103 = vmatpush1.bf16.msra.mxu1 %v3776_v55 }
 0xec8   : > { %3104 = vmatprep.subr.bf16.mxu1 %v3854_v52 }
 0xecb   : > { %3105 = vmatpush1.bf16.msra.mxu1 %v3777_v15 }
 0xecc   : > { %3106 = vmatprep.subr.bf16.mxu1 %v3854_v52 }
 0xecf   : > { %3107 = vmatpush1.bf16.msra.mxu1 %v3778_v47 }
 0xed0   : > { %3108 = vmatprep.subr.bf16.mxu1 %v3854_v52 }
 0xed3   : > { %3109 = vmatpush1.bf16.msra.mxu1 %v3779_v58 }
 0xed4   : > { %3110 = vmatprep.subr.bf16.mxu1 %v3854_v52 }
 0xed7   : > { %3111 = vmatpush1.bf16.msra.mxu1 %v3780_v11 }
 0xed8   : > { %3112 = vmatprep.subr.bf16.mxu1 %v3854_v52 }
 0xedb   : > { %3113 = vmatpush1.bf16.msra.mxu1 %v3781_v29 }
 0xedc   : > { %3114 = vmatprep.subr.bf16.mxu1 %v3854_v52 }
 0xf82   : > { %v2906_v9 = vpop.f32.mrf.mxu1 }
 0xf83   : > { %v2907_v23 = vadd.f32 %v2906_v9, %v4706_v35  ;;  %v3782_v35 = vld [vmem:[%s4864_s1 + $0x200] ss:$8 sps:$4 sm:$0xff]  }
 0xf84   : > { %v3676_v53 = vpop.f32.mrf.mxu1  ;;  %3115 = vmatpush1.bf16.msra.mxu1 %v3782_v35 }
 0xf85   : > { %v2913_v40 = vadd.f32 %v2912_v4, %v2907_v23  ;;  %3130 = vmatprep.subr.bf16.mxu1 %v3854_v52 }
 0xf86   : > { %v2909_v49 = vpop.f32.mrf.mxu1 }
 0xf87   : > { %vm2914_vm8 = vcmp.ge.f32.partialorder %v2913_v40, 0.0  ;;  %v2915_v16 = vmul.f32 0.25, %v2913_v40 }
 0xf88   : > { %v3677_v43 = vpop.f32.mrf.mxu1  ;;  %3131 = vmatpush2.bf16.msra.mxu1 %v3783_v63 }
 0xf89   : > { %v2916_v44 = vsel %vm2914_vm8, %v2913_v40, %v2915_v16 }
 0xf8a   : > { %v2917_v20 = vpack.c.bf16 %v2916_v44, %v2916_v44 }
 0xf8c   : > { %3428 = vmatmul.mubr.msk.bf16.vlgmr.msra.gmra.mxu0 %vm947_vm4, %v2917_v20 }
 0xf8d   : > { %3686 = vmatprep.mubr.msk.bf16.mxu0 %vm3852_vm7, %v4873_v10  ;;  %3679 = vmatpush3.bf16.msra.mxu0 %v3784_v42 }
 0xf8e   : > { %3680 = vmatprep.subr.bf16.mxu0 %v4873_v10 }
 0xf91   : > { %3681 = vmatpush3.bf16.msra.mxu0 %v3785_v6 }
 0xf92   : > { %3682 = vmatprep.subr.bf16.mxu0 %v4873_v10 }
 0xf95   : > { %3683 = vmatpush3.bf16.msra.mxu0 %v3786_v18 }
 0xf96   : > { %3684 = vmatprep.subr.bf16.mxu0 %v4873_v10  ;;  %v3152_v10 = vld [vmem:[%s4865_s2 + $0x250] ss:$0 sm:$0xff] }
 0xf99   : > { %3685 = vmatpush3.bf16.msra.mxu0 %v3787_v8 }
0x104c   : > { %v2992_v0 = vpop.f32.mrf.mxu0 }
0x104d   : > { %v2993_v30 = vadd.f32 %v2992_v0, %v2927_v2 }
0x104e   : > { %v2994_v34 = vpop.f32.mrf.mxu0 }
0x104f   : > { %vm2999_vm4 = vcmp.ge.f32.partialorder %v2993_v30, 0.0  ;;  %v3001_v36 = vmul.f32 0.25, %v2993_v30  ;;  %v2995_v37 = vadd.f32 %v2994_v34, %v2931_v19 }
0x1050   : > { %v2996_v39 = vpop.f32.mrf.mxu0 }
0x1051   : > { %v3003_v21 = vsel %vm2999_vm4, %v2993_v30, %v3001_v36  ;;  %vm3000_vm7 = vcmp.ge.f32.partialorder %v2995_v37, 0.0  ;;  %v3002_v13 = vmul.f32 0.25, %v2995_v37 }
0x1052   : > { %v3005_v51 = vsel %vm325_vm2, %v3003_v21, 0.0  ;;  %v2997_v45 = vpop.f32.mrf.mxu0 }
0x1053   : > { %v3006_v38 = vrot.slane %v3005_v51, 4  ;;  %v3004_v3 = vsel %vm3000_vm7, %v2995_v37, %v3002_v13 }
0x1054   : > { %v3013_v22 = vsel %vm3012_vm11, %v3004_v3, 0.0 }
0x1055   : > { %v3007_v61 = vadd.f32 %v3006_v38, %v3005_v51  ;;  %v3014_v57 = vrot.slane %v3013_v22, 4 }
0x1057   : > { %v3008_v62 = vrot.slane %v3007_v61, 2  ;;  %v3015_v14 = vadd.f32 %v3014_v57, %v3013_v22 }
0x1059   : > { %v3009_v56 = vadd.f32 %v3008_v62, %v3007_v61  ;;  %v3016_v54 = vrot.slane %v3015_v14, 2 }
0x105b   : > { %v3017_v32 = vadd.f32 %v3016_v54, %v3015_v14  ;;  %v3010_v31 = vrot.slane %v3009_v56, 1 }
0x105d   : > { %v3018_v33 = vrot.slane %v3017_v32, 1  ;;  %v3011_v28 = vadd.f32 %v3010_v31, %v3009_v56 }
0x105f   : > { %v3019_v5 = vadd.f32 %v3018_v33, %v3017_v32  ;;  %v3020_v60 = vmul.f32 0.25, %v3011_v28 }
0x1061   : > { %v3021_v59 = vmul.f32 0.25, %v3019_v5  ;;  %v3022_v41 = vpack.c.bf16 %v3020_v60, %v3020_v60 }
0x1063   : > { %v3023_v24 = vpack.c.bf16 %v3021_v59, %v3021_v59 }
0x1065   : > { %3438 = vmatprep.mubr.msk.bf16.mxu1 %vm418_vm13, %v3023_v24  ;;  %vm3177_vm13 = vcmask 523264  }
0x1066   : > { %3133 = vmatmul.mubr.bf16.vlgmr.msra.gmra.mxu1 %v3022_v41 }
0x1126   : > { %v3134_v48 = vpop.f32.mrf.mxu1 }
0x1127   : > { %v3135_v27 = vadd.f32 %v3134_v48, %v3042_v25 }
0x1128   : > { %v3136_v7 = vpop.f32.mrf.mxu1 }
0x1129   : > { %vm3140_vm2 = vcmp.ge.f32.partialorder %v3135_v27, 0.0  ;;  %v3141_v46 = vmul.f32 0.25, %v3135_v27 }
0x112a   : > { %v3137_v26 = vpop.f32.mrf.mxu1 }
0x112b   : > { %v3142_v52 = vsel %vm3140_vm2, %v3135_v27, %v3141_v46 }
0x112c   : > { %v3143_v1 = vpack.c.bf16 %v3142_v52, %v3142_v52  ;;  %v3138_v50 = vpop.f32.mrf.mxu1 }
0x112e   : > { %3687 = vmatmul.mubr.msk.bf16.vlgmr.msra.gmra.mxu0 %vm3177_vm13, %v3143_v1 }
0x11ee   : > { %v3215_v12 = vpop.f32.mrf.mxu0 }
0x11ef   : > { %v3216_v55 = vadd.f32 %v3215_v12, %v3152_v10 }
0x11f0   : > { %v3688_v15 = vpop.f32.mrf.mxu0 }
0x11f1   : > { %3222 = vst.msk [vmem:[%s162_s27] sm:$0x1] %vm3221_vm12, %v3216_v55 }
0x11f2   : > { %v3218_v9 = vpop.f32.mrf.mxu0 }
0x11f3   : > { %3801 = shalt.err (!%p3798_p3)
}
0x11f4   : > { %s3802_s9 = scalar_lea.hbm %s4822_s4, 16  ;;  %s3806_s17 = scalar_lea.hbm %s4866_s3, 32 }
0x11f5   : > { %p3803_p4 = scmp.ne.s32.totalorder %s4822_s4, %s3802_s9  ;;  %p3807_p9 = scmp.lt.s32.totalorder %s4822_s4, %s4866_s3 }
0x11f6   : > { %p3808_p10 = scmp.lt.s32.totalorder %s3806_s17, %s3802_s9 }
0x11f7   : > { %p3804_p7 = pnand %p3803_p4, %p3914_p5 }
0x11f8   : > { %p3809_p11 = por %p3808_p10, %p3807_p9 }
0x11f9   : > { %p3805_p8 = pneg %p3804_p7 }
0x11fb   : > { %p3810_p12 = pnand %p3809_p11, %p3805_p8 }
0x11fd   : > { %3813 = shalt.err (!%p3810_p12)
}
0x11fe   : > { %3695 = dma.vmem_to_hbm [thread:$0]  (%p3914_p5), %s4824_s28, 16, %s4822_s4, %s3224_s5   ;;  %v3689_v4 = vpop.f32.mrf.mxu0 }
0x11ff PF: > { %p3701_p13 = scmp.ge.s32.totalorder %s3848_s15, 2  ;;  %s3248_s24 = sand.u32 1, %s3836_s12  }
0x1200   : > { %s3249_s25 = scalar_lea.sflag [#allocation8], %s3248_s24 }
0x1201   : > { %p3698_p0 = pnand %p3701_p13, %p3918_p6 }
0x1203   : > { %p3699_p1 = pneg %p3698_p0 }
0x1205   : > { %3831 = dma.done.wait (%p3699_p1), %s3249_s25, 16  }
0x1206   : > { %3833 = vsyncadd (%p3699_p1), %s3249_s25, 4294967280  ;;  %p13_p2 = scmp.ge.s32.totalorder %s3901_s18, 4   ;;  %s4875_s12 = smov %s3840_s13 }
0x1207   : > { %s4876_s13 = smov %s3844_s14  ;;  %s4877_s14 = smov %s3912_s21 }
0x1208   : > { %s4878_s15 = smov %s3901_s18  ;;  %15 = sbr.rel (!%p13_p2) target bundleno = 3 (0x3), region = 166 }
0x120d   :  { %3253 = vsyncpa [#allocation8], 1 }
0x120e   :  { %3255 = vsyncpa [#allocation8 + $0x1], 1 }

</bundles_post_ra>
